<compile_context>
chip_gen: v7x
topology: tpu7x:2x2x1
jax: 0.10.0
libtpu: 0.0.40
codegen_flags: <defaults>
</compile_context>

<pallas_src>
import jax
import jax.numpy as jnp
import numpy as np
from jax.experimental import pallas as pl
from jax.experimental.pallas import tpu as pltpu

# ----- hyperparameters (small config consistent with DeepConvLSTM_mod) -----
N_CHANNELS = 4
LEN_SEQ = 24
N_HIDDEN = 32
N_LAYERS = 2
N_FILTERS = 16
N_CLASSES = 2
FILTER_SIZE = 5
N_CONV = 4
BATCH = 2
L_OUT = LEN_SEQ - N_CONV * (FILTER_SIZE - 1)       # 24 -> 20 -> 16 -> 12 -> 8
N_CHUNKS = N_FILTERS // L_OUT                      # torch .view scramble factor (=2)
T_STEPS = (N_FILTERS * L_OUT) // N_FILTERS         # LSTM sequence length (=8)
assert N_FILTERS % L_OUT == 0, "scramble folding assumes n_filters % L_out == 0"


# ---------------------------------------------------------------------------
# The single fused kernel
# ---------------------------------------------------------------------------
def _fused_kernel(x_ref,
                  w1_ref, b1_ref, w2_ref, b2_ref, w3_ref, b3_ref, w4_ref, b4_ref,
                  wih0r_ref, whh0_ref, bg0_ref,
                  wih1_ref, whh1_ref, bg1_ref,
                  wp_ref, bp_ref,
                  hin_ref, cin_ref,
                  out_ref, hn_ref, cn_ref):
    B = x_ref.shape[0]
    H = N_HIDDEN
    G4 = 4 * H
    K = FILTER_SIZE

    # ---------------- conv stack: channels-first, whole batch at once --------
    # `y` holds (Cin, B*L) with y[c, b*L + l] == activation[b, c, l]  (NCL).
    y = jnp.concatenate([x_ref[b] for b in range(B)], axis=1)        # (C, B*LEN_SEQ)
    length = LEN_SEQ
    for w_ref, b_ref in ((w1_ref, b1_ref), (w2_ref, b2_ref),
                         (w3_ref, b3_ref), (w4_ref, b4_ref)):
        lout = length - K + 1
        # im2col: cols[k*Cin + c, b*lout + l] = y[c, b*length + l + k]
        cols = jnp.concatenate(
            [jnp.concatenate(
                [y[:, b * length + k: b * length + k + lout] for b in range(B)],
                axis=1)
             for k in range(K)],
            axis=0)                                                   # (K*Cin, B*lout)
        y = (jnp.dot(w_ref[...], cols, preferred_element_type=jnp.float32)
             + b_ref[...])                                            # (Cout, B*lout)
        length = lout
    # y: (F, B*L_OUT), y[f, b*L_OUT + l] == torch conv output[b, f, l].

    # --- torch .view(B,-1,F) scramble folded into hoisted layer-0 input proj ---
    # seq[b, t, q*L_OUT + r] == y[t*N_CHUNKS + q, b*L_OUT + r]  (raw NCL reshape), so
    # X0[b, t, :] = sum_q (R @ W_q)[b*F + t*N_CHUNKS + q, :]  with
    # R[b*F + f, :] = y[f, b-th L_OUT block] and W_q = wih0[q*L_OUT:(q+1)*L_OUT, :]
    # (the W_q blocks are pre-concatenated on the host into wih0r).
    r_all = jnp.concatenate([y[:, b * L_OUT:(b + 1) * L_OUT] for b in range(B)],
                            axis=0)                                   # (B*F, L_OUT)
    z_all = jnp.dot(r_all, wih0r_ref[...],
                    preferred_element_type=jnp.float32)               # (B*F, N_CHUNKS*4H)
    z3 = z_all.reshape(B, N_FILTERS, N_CHUNKS * G4)                   # tile-aligned regroup
    xproj = []
    for t in range(T_STEPS):
        row = z3[:, t * N_CHUNKS, 0:G4]
        for q in range(1, N_CHUNKS):
            row = row + z3[:, t * N_CHUNKS + q, q * G4:(q + 1) * G4]
        xproj.append(row + bg0_ref[...])                              # (B, 4H)

    # ---------------- 2-layer LSTM recurrence (statically unrolled) ----------
    h0 = hin_ref[0]
    c0 = cin_ref[0]
    h1 = hin_ref[1]
    c1 = cin_ref[1]

    def cell(gates, c_prev):
        # Full-width (B, 4H) sigmoid/tanh, then lane-slice i, f, g, o (PyTorch order).
        sg = jax.nn.sigmoid(gates)
        tg = jnp.tanh(gates)
        i_g = sg[:, 0:H]
        f_g = sg[:, H:2 * H]
        g_g = tg[:, 2 * H:3 * H]
        o_g = sg[:, 3 * H:4 * H]
        c_new = f_g * c_prev + i_g * g_g
        h_new = o_g * jnp.tanh(c_new)
        return h_new, c_new

    for t in range(T_STEPS):
        gates0 = xproj[t] + jnp.dot(h0, whh0_ref[...],
                                    preferred_element_type=jnp.float32)
        h0, c0 = cell(gates0, c0)
        gates1 = (jnp.dot(h0, wih1_ref[...], preferred_element_type=jnp.float32)
                  + jnp.dot(h1, whh1_ref[...], preferred_element_type=jnp.float32)
                  + bg1_ref[...])
        h1, c1 = cell(gates1, c1)

    # TODO(synk): nn.Dropout(p=0.5) treated as identity (inference / eval mode).
    out_ref[...] = (jnp.dot(h1, wp_ref[...], preferred_element_type=jnp.float32)
                    + bp_ref[...])
    hn_ref[0] = h0
    hn_ref[1] = h1
    cn_ref[0] = c0
    cn_ref[1] = c1


# ---------------------------------------------------------------------------
# Wrapper (mirrors DeepConvLSTM_mod.forward)
# ---------------------------------------------------------------------------
@jax.jit
def deepconvlstm_forward(x, hidden, kp):
    h0, c0 = hidden
    B = x.shape[0]
    vmem = pl.BlockSpec(memory_space=pltpu.MemorySpace.VMEM)
    args = (x,
            kp["conv"][0][0], kp["conv"][0][1],
            kp["conv"][1][0], kp["conv"][1][1],
            kp["conv"][2][0], kp["conv"][2][1],
            kp["conv"][3][0], kp["conv"][3][1],
            kp["wih0r"], kp["whh0"], kp["bg0"],
            kp["wih1"], kp["whh1"], kp["bg1"],
            kp["wp"], kp["bp"],
            h0, c0)
    out, hn, cn = pl.pallas_call(
        _fused_kernel,
        out_shape=(jax.ShapeDtypeStruct((B, N_CLASSES), jnp.float32),
                   jax.ShapeDtypeStruct((N_LAYERS, B, N_HIDDEN), jnp.float32),
                   jax.ShapeDtypeStruct((N_LAYERS, B, N_HIDDEN), jnp.float32)),
        in_specs=[vmem] * len(args),
        out_specs=(vmem, vmem, vmem),
    )(*args)
    return out, (hn, cn)


# ---------------------------------------------------------------------------
# Deterministic parameter init (shapes from DeepConvLSTM_mod.__init__)
# ---------------------------------------------------------------------------
def init_params(key):
    ks = jax.random.split(key, 32)
    ki = 0

    def u(shape, fan_in):
        nonlocal ki
        bound = 1.0 / np.sqrt(fan_in)
        v = jax.random.uniform(ks[ki], shape, jnp.float32, -bound, bound)
        ki += 1
        return v

    raw = {"conv": [], "lstm": [], "pred": None}
    cin = N_CHANNELS
    for _ in range(N_CONV):
        w = u((N_FILTERS, cin, FILTER_SIZE), cin * FILTER_SIZE)
        b = u((N_FILTERS,), cin * FILTER_SIZE)
        raw["conv"].append((w, b))
        cin = N_FILTERS

    in_size = N_FILTERS
    for _ in range(N_LAYERS):
        wih = u((4 * N_HIDDEN, in_size), N_HIDDEN)
        whh = u((4 * N_HIDDEN, N_HIDDEN), N_HIDDEN)
        bih = u((4 * N_HIDDEN,), N_HIDDEN)
        bhh = u((4 * N_HIDDEN,), N_HIDDEN)
        raw["lstm"].append((wih, whh, bih, bhh))
        in_size = N_HIDDEN

    wp = u((N_CLASSES, N_HIDDEN), N_HIDDEN)
    bp = u((N_CLASSES,), N_HIDDEN)
    raw["pred"] = (wp, bp)

    # ---- kernel-form parameters (all layout prep done once, on the host) ----
    kp = {"conv": []}
    for (w, b) in raw["conv"]:
        cout, cinl, kk = w.shape
        wf = jnp.transpose(w, (0, 2, 1)).reshape(cout, kk * cinl)   # [o, k*Cin + c]
        kp["conv"].append((wf, b.reshape(cout, 1)))

    wih0, whh0, bih0, bhh0 = raw["lstm"][0]
    wih0u = wih0.T                                                  # (F, 4H)
    kp["wih0r"] = jnp.concatenate(
        [wih0u[q * L_OUT:(q + 1) * L_OUT, :] for q in range(N_CHUNKS)],
        axis=1)                                                     # (L_OUT, N_CHUNKS*4H)
    kp["whh0"] = whh0.T
    kp["bg0"] = (bih0 + bhh0).reshape(1, -1)

    wih1, whh1, bih1, bhh1 = raw["lstm"][1]
    kp["wih1"] = wih1.T
    kp["whh1"] = whh1.T
    kp["bg1"] = (bih1 + bhh1).reshape(1, -1)

    kp["wp"] = raw["pred"][0].T
    kp["bp"] = raw["pred"][1].reshape(1, -1)
    return raw, kp


# ---------------------------------------------------------------------------
# Pure-JAX reference of the PyTorch forward (correctness sanity check)
# ---------------------------------------------------------------------------
def reference_forward(x, hidden, raw):
    h_all, c_all = hidden

    def ref_conv1d(x_ncl, w, b):
        Lout = x_ncl.shape[2] - w.shape[2] + 1
        y = jnp.zeros((x_ncl.shape[0], w.shape[0], Lout), jnp.float32)
        for k in range(w.shape[2]):
            y = y + jnp.einsum("bcl,oc->bol", x_ncl[:, :, k:k + Lout], w[:, :, k])
        return y + b[None, :, None]

    y = x
    for (w, b) in raw["conv"]:
        y = ref_conv1d(y, w, b)
    B = x.shape[0]
    seq = y.reshape(B, -1, N_FILTERS)                 # torch .view semantics

    hs = [h_all[l] for l in range(N_LAYERS)]
    cs = [c_all[l] for l in range(N_LAYERS)]
    H = N_HIDDEN
    last = None
    for t in range(seq.shape[1]):
        inp = seq[:, t, :]
        for l in range(N_LAYERS):
            wih, whh, bih, bhh = raw["lstm"][l]
            gates = inp @ wih.T + bih + hs[l] @ whh.T + bhh
            i = jax.nn.sigmoid(gates[:, :H])
            f = jax.nn.sigmoid(gates[:, H:2 * H])
            g = jnp.tanh(gates[:, 2 * H:3 * H])
            o = jax.nn.sigmoid(gates[:, 3 * H:4 * H])
            cs[l] = f * cs[l] + i * g
            hs[l] = o * jnp.tanh(cs[l])
            inp = hs[l]
        last = inp
    wp, bp = raw["pred"]
    out = last @ wp.T + bp
    return out, (jnp.stack(hs), jnp.stack(cs))


if __name__ == "__main__":
    key = jax.random.PRNGKey(0)
    pkey, xkey = jax.random.split(key)
    raw, kparams = init_params(pkey)

    x = jax.random.normal(xkey, (BATCH, N_CHANNELS, LEN_SEQ), jnp.float32)
    hidden = (jnp.zeros((N_LAYERS, BATCH, N_HIDDEN), jnp.float32),
              jnp.zeros((N_LAYERS, BATCH, N_HIDDEN), jnp.float32))

    out, (hn, cn) = deepconvlstm_forward(x, hidden, kparams)
    jax.block_until_ready((out, hn, cn))

    ref_out, (ref_hn, ref_cn) = reference_forward(x, hidden, raw)
    np.testing.assert_allclose(np.asarray(out), np.asarray(ref_out), rtol=2e-3, atol=2e-3)
    np.testing.assert_allclose(np.asarray(hn), np.asarray(ref_hn), rtol=2e-3, atol=2e-3)
    np.testing.assert_allclose(np.asarray(cn), np.asarray(ref_cn), rtol=2e-3, atol=2e-3)

    print("KERNEL_OK")
</pallas_src>

<mosaic_0001>
module attributes {stable_mosaic.version = 11 : i64} {
  func.func @_fused_kernel(%arg0: memref<2x4x24xf32, #tpu.memory_space<vmem>>, %arg1: memref<16x20xf32, #tpu.memory_space<vmem>>, %arg2: memref<16x1xf32, #tpu.memory_space<vmem>>, %arg3: memref<16x80xf32, #tpu.memory_space<vmem>>, %arg4: memref<16x1xf32, #tpu.memory_space<vmem>>, %arg5: memref<16x80xf32, #tpu.memory_space<vmem>>, %arg6: memref<16x1xf32, #tpu.memory_space<vmem>>, %arg7: memref<16x80xf32, #tpu.memory_space<vmem>>, %arg8: memref<16x1xf32, #tpu.memory_space<vmem>>, %arg9: memref<8x256xf32, #tpu.memory_space<vmem>>, %arg10: memref<32x128xf32, #tpu.memory_space<vmem>>, %arg11: memref<1x128xf32, #tpu.memory_space<vmem>>, %arg12: memref<32x128xf32, #tpu.memory_space<vmem>>, %arg13: memref<32x128xf32, #tpu.memory_space<vmem>>, %arg14: memref<1x128xf32, #tpu.memory_space<vmem>>, %arg15: memref<32x2xf32, #tpu.memory_space<vmem>>, %arg16: memref<1x2xf32, #tpu.memory_space<vmem>>, %arg17: memref<2x2x32xf32, #tpu.memory_space<vmem>>, %arg18: memref<2x2x32xf32, #tpu.memory_space<vmem>>, %arg19: memref<2x2xf32, #tpu.memory_space<vmem>>, %arg20: memref<2x2x32xf32, #tpu.memory_space<vmem>>, %arg21: memref<2x2x32xf32, #tpu.memory_space<vmem>>) attributes {dimension_semantics = [], scalar_prefetch = 0 : i64, scratch_operands = 0 : i64, tpu.core_type = #tpu.core_type<tc>} {
    %c0 = arith.constant 0 : index
    %c0_0 = arith.constant 0 : index
    %c0_1 = arith.constant 0 : index
    %0 = vector.load %arg0[%c0, %c0_0, %c0_1] : memref<2x4x24xf32, #tpu.memory_space<vmem>>, vector<1x4x24xf32>
    %1 = vector.shape_cast %0 : vector<1x4x24xf32> to vector<4x24xf32>
    %c1 = arith.constant 1 : index
    %c0_2 = arith.constant 0 : index
    %c0_3 = arith.constant 0 : index
    %2 = vector.load %arg0[%c1, %c0_2, %c0_3] : memref<2x4x24xf32, #tpu.memory_space<vmem>>, vector<1x4x24xf32>
    %3 = vector.shape_cast %2 : vector<1x4x24xf32> to vector<4x24xf32>
    %4 = tpu.concatenate %1, %3 in 1 : vector<4x24xf32>, vector<4x24xf32> -> vector<4x48xf32>
    %5 = vector.extract_strided_slice %4 {offsets = [0, 0], sizes = [4, 20], strides = [1, 1]} : vector<4x48xf32> to vector<4x20xf32>
    %6 = vector.extract_strided_slice %4 {offsets = [0, 24], sizes = [4, 20], strides = [1, 1]} : vector<4x48xf32> to vector<4x20xf32>
    %7 = tpu.concatenate %5, %6 in 1 : vector<4x20xf32>, vector<4x20xf32> -> vector<4x40xf32>
    %8 = vector.extract_strided_slice %4 {offsets = [0, 1], sizes = [4, 20], strides = [1, 1]} : vector<4x48xf32> to vector<4x20xf32>
    %9 = vector.extract_strided_slice %4 {offsets = [0, 25], sizes = [4, 20], strides = [1, 1]} : vector<4x48xf32> to vector<4x20xf32>
    %10 = tpu.concatenate %8, %9 in 1 : vector<4x20xf32>, vector<4x20xf32> -> vector<4x40xf32>
    %11 = vector.extract_strided_slice %4 {offsets = [0, 2], sizes = [4, 20], strides = [1, 1]} : vector<4x48xf32> to vector<4x20xf32>
    %12 = vector.extract_strided_slice %4 {offsets = [0, 26], sizes = [4, 20], strides = [1, 1]} : vector<4x48xf32> to vector<4x20xf32>
    %13 = tpu.concatenate %11, %12 in 1 : vector<4x20xf32>, vector<4x20xf32> -> vector<4x40xf32>
    %14 = vector.extract_strided_slice %4 {offsets = [0, 3], sizes = [4, 20], strides = [1, 1]} : vector<4x48xf32> to vector<4x20xf32>
    %15 = vector.extract_strided_slice %4 {offsets = [0, 27], sizes = [4, 20], strides = [1, 1]} : vector<4x48xf32> to vector<4x20xf32>
    %16 = tpu.concatenate %14, %15 in 1 : vector<4x20xf32>, vector<4x20xf32> -> vector<4x40xf32>
    %17 = vector.extract_strided_slice %4 {offsets = [0, 4], sizes = [4, 20], strides = [1, 1]} : vector<4x48xf32> to vector<4x20xf32>
    %18 = vector.extract_strided_slice %4 {offsets = [0, 28], sizes = [4, 20], strides = [1, 1]} : vector<4x48xf32> to vector<4x20xf32>
    %19 = tpu.concatenate %17, %18 in 1 : vector<4x20xf32>, vector<4x20xf32> -> vector<4x40xf32>
    %20 = tpu.concatenate %7, %10, %13, %16, %19 in 0 : vector<4x40xf32>, vector<4x40xf32>, vector<4x40xf32>, vector<4x40xf32>, vector<4x40xf32> -> vector<20x40xf32>
    %c0_4 = arith.constant 0 : index
    %c0_5 = arith.constant 0 : index
    %21 = vector.load %arg1[%c0_4, %c0_5] : memref<16x20xf32, #tpu.memory_space<vmem>>, vector<16x20xf32>
    %cst = arith.constant dense<0.000000e+00> : vector<16x40xf32>
    %22 = tpu.matmul %21, %20, %cst {dimension_numbers = #tpu.dot_dimension_numbers<[1], [0], [0], [1], [0, 0, 1, 1], [], []>} : vector<16x20xf32>, vector<20x40xf32>, vector<16x40xf32> -> vector<16x40xf32>
    %c0_6 = arith.constant 0 : index
    %c0_7 = arith.constant 0 : index
    %23 = vector.load %arg2[%c0_6, %c0_7] : memref<16x1xf32, #tpu.memory_space<vmem>>, vector<16x1xf32>
    %24 = vector.broadcast %23 : vector<16x1xf32> to vector<16x40xf32>
    %25 = arith.addf %22, %24 : vector<16x40xf32>
    %26 = vector.extract_strided_slice %25 {offsets = [0, 0], sizes = [16, 16], strides = [1, 1]} : vector<16x40xf32> to vector<16x16xf32>
    %27 = vector.extract_strided_slice %25 {offsets = [0, 20], sizes = [16, 16], strides = [1, 1]} : vector<16x40xf32> to vector<16x16xf32>
    %28 = tpu.concatenate %26, %27 in 1 : vector<16x16xf32>, vector<16x16xf32> -> vector<16x32xf32>
    %29 = vector.extract_strided_slice %25 {offsets = [0, 1], sizes = [16, 16], strides = [1, 1]} : vector<16x40xf32> to vector<16x16xf32>
    %30 = vector.extract_strided_slice %25 {offsets = [0, 21], sizes = [16, 16], strides = [1, 1]} : vector<16x40xf32> to vector<16x16xf32>
    %31 = tpu.concatenate %29, %30 in 1 : vector<16x16xf32>, vector<16x16xf32> -> vector<16x32xf32>
    %32 = vector.extract_strided_slice %25 {offsets = [0, 2], sizes = [16, 16], strides = [1, 1]} : vector<16x40xf32> to vector<16x16xf32>
    %33 = vector.extract_strided_slice %25 {offsets = [0, 22], sizes = [16, 16], strides = [1, 1]} : vector<16x40xf32> to vector<16x16xf32>
    %34 = tpu.concatenate %32, %33 in 1 : vector<16x16xf32>, vector<16x16xf32> -> vector<16x32xf32>
    %35 = vector.extract_strided_slice %25 {offsets = [0, 3], sizes = [16, 16], strides = [1, 1]} : vector<16x40xf32> to vector<16x16xf32>
    %36 = vector.extract_strided_slice %25 {offsets = [0, 23], sizes = [16, 16], strides = [1, 1]} : vector<16x40xf32> to vector<16x16xf32>
    %37 = tpu.concatenate %35, %36 in 1 : vector<16x16xf32>, vector<16x16xf32> -> vector<16x32xf32>
    %38 = vector.extract_strided_slice %25 {offsets = [0, 4], sizes = [16, 16], strides = [1, 1]} : vector<16x40xf32> to vector<16x16xf32>
    %39 = vector.extract_strided_slice %25 {offsets = [0, 24], sizes = [16, 16], strides = [1, 1]} : vector<16x40xf32> to vector<16x16xf32>
    %40 = tpu.concatenate %38, %39 in 1 : vector<16x16xf32>, vector<16x16xf32> -> vector<16x32xf32>
    %41 = tpu.concatenate %28, %31, %34, %37, %40 in 0 : vector<16x32xf32>, vector<16x32xf32>, vector<16x32xf32>, vector<16x32xf32>, vector<16x32xf32> -> vector<80x32xf32>
    %c0_8 = arith.constant 0 : index
    %c0_9 = arith.constant 0 : index
    %42 = vector.load %arg3[%c0_8, %c0_9] : memref<16x80xf32, #tpu.memory_space<vmem>>, vector<16x80xf32>
    %cst_10 = arith.constant dense<0.000000e+00> : vector<16x32xf32>
    %43 = tpu.matmul %42, %41, %cst_10 {dimension_numbers = #tpu.dot_dimension_numbers<[1], [0], [0], [1], [0, 0, 1, 1], [], []>} : vector<16x80xf32>, vector<80x32xf32>, vector<16x32xf32> -> vector<16x32xf32>
    %c0_11 = arith.constant 0 : index
    %c0_12 = arith.constant 0 : index
    %44 = vector.load %arg4[%c0_11, %c0_12] : memref<16x1xf32, #tpu.memory_space<vmem>>, vector<16x1xf32>
    %45 = vector.broadcast %44 : vector<16x1xf32> to vector<16x32xf32>
    %46 = arith.addf %43, %45 : vector<16x32xf32>
    %47 = vector.extract_strided_slice %46 {offsets = [0, 0], sizes = [16, 12], strides = [1, 1]} : vector<16x32xf32> to vector<16x12xf32>
    %48 = vector.extract_strided_slice %46 {offsets = [0, 16], sizes = [16, 12], strides = [1, 1]} : vector<16x32xf32> to vector<16x12xf32>
    %49 = tpu.concatenate %47, %48 in 1 : vector<16x12xf32>, vector<16x12xf32> -> vector<16x24xf32>
    %50 = vector.extract_strided_slice %46 {offsets = [0, 1], sizes = [16, 12], strides = [1, 1]} : vector<16x32xf32> to vector<16x12xf32>
    %51 = vector.extract_strided_slice %46 {offsets = [0, 17], sizes = [16, 12], strides = [1, 1]} : vector<16x32xf32> to vector<16x12xf32>
    %52 = tpu.concatenate %50, %51 in 1 : vector<16x12xf32>, vector<16x12xf32> -> vector<16x24xf32>
    %53 = vector.extract_strided_slice %46 {offsets = [0, 2], sizes = [16, 12], strides = [1, 1]} : vector<16x32xf32> to vector<16x12xf32>
    %54 = vector.extract_strided_slice %46 {offsets = [0, 18], sizes = [16, 12], strides = [1, 1]} : vector<16x32xf32> to vector<16x12xf32>
    %55 = tpu.concatenate %53, %54 in 1 : vector<16x12xf32>, vector<16x12xf32> -> vector<16x24xf32>
    %56 = vector.extract_strided_slice %46 {offsets = [0, 3], sizes = [16, 12], strides = [1, 1]} : vector<16x32xf32> to vector<16x12xf32>
    %57 = vector.extract_strided_slice %46 {offsets = [0, 19], sizes = [16, 12], strides = [1, 1]} : vector<16x32xf32> to vector<16x12xf32>
    %58 = tpu.concatenate %56, %57 in 1 : vector<16x12xf32>, vector<16x12xf32> -> vector<16x24xf32>
    %59 = vector.extract_strided_slice %46 {offsets = [0, 4], sizes = [16, 12], strides = [1, 1]} : vector<16x32xf32> to vector<16x12xf32>
    %60 = vector.extract_strided_slice %46 {offsets = [0, 20], sizes = [16, 12], strides = [1, 1]} : vector<16x32xf32> to vector<16x12xf32>
    %61 = tpu.concatenate %59, %60 in 1 : vector<16x12xf32>, vector<16x12xf32> -> vector<16x24xf32>
    %62 = tpu.concatenate %49, %52, %55, %58, %61 in 0 : vector<16x24xf32>, vector<16x24xf32>, vector<16x24xf32>, vector<16x24xf32>, vector<16x24xf32> -> vector<80x24xf32>
    %c0_13 = arith.constant 0 : index
    %c0_14 = arith.constant 0 : index
    %63 = vector.load %arg5[%c0_13, %c0_14] : memref<16x80xf32, #tpu.memory_space<vmem>>, vector<16x80xf32>
    %cst_15 = arith.constant dense<0.000000e+00> : vector<16x24xf32>
    %64 = tpu.matmul %63, %62, %cst_15 {dimension_numbers = #tpu.dot_dimension_numbers<[1], [0], [0], [1], [0, 0, 1, 1], [], []>} : vector<16x80xf32>, vector<80x24xf32>, vector<16x24xf32> -> vector<16x24xf32>
    %c0_16 = arith.constant 0 : index
    %c0_17 = arith.constant 0 : index
    %65 = vector.load %arg6[%c0_16, %c0_17] : memref<16x1xf32, #tpu.memory_space<vmem>>, vector<16x1xf32>
    %66 = vector.broadcast %65 : vector<16x1xf32> to vector<16x24xf32>
    %67 = arith.addf %64, %66 : vector<16x24xf32>
    %68 = vector.extract_strided_slice %67 {offsets = [0, 0], sizes = [16, 8], strides = [1, 1]} : vector<16x24xf32> to vector<16x8xf32>
    %69 = vector.extract_strided_slice %67 {offsets = [0, 12], sizes = [16, 8], strides = [1, 1]} : vector<16x24xf32> to vector<16x8xf32>
    %70 = tpu.concatenate %68, %69 in 1 : vector<16x8xf32>, vector<16x8xf32> -> vector<16x16xf32>
    %71 = vector.extract_strided_slice %67 {offsets = [0, 1], sizes = [16, 8], strides = [1, 1]} : vector<16x24xf32> to vector<16x8xf32>
    %72 = vector.extract_strided_slice %67 {offsets = [0, 13], sizes = [16, 8], strides = [1, 1]} : vector<16x24xf32> to vector<16x8xf32>
    %73 = tpu.concatenate %71, %72 in 1 : vector<16x8xf32>, vector<16x8xf32> -> vector<16x16xf32>
    %74 = vector.extract_strided_slice %67 {offsets = [0, 2], sizes = [16, 8], strides = [1, 1]} : vector<16x24xf32> to vector<16x8xf32>
    %75 = vector.extract_strided_slice %67 {offsets = [0, 14], sizes = [16, 8], strides = [1, 1]} : vector<16x24xf32> to vector<16x8xf32>
    %76 = tpu.concatenate %74, %75 in 1 : vector<16x8xf32>, vector<16x8xf32> -> vector<16x16xf32>
    %77 = vector.extract_strided_slice %67 {offsets = [0, 3], sizes = [16, 8], strides = [1, 1]} : vector<16x24xf32> to vector<16x8xf32>
    %78 = vector.extract_strided_slice %67 {offsets = [0, 15], sizes = [16, 8], strides = [1, 1]} : vector<16x24xf32> to vector<16x8xf32>
    %79 = tpu.concatenate %77, %78 in 1 : vector<16x8xf32>, vector<16x8xf32> -> vector<16x16xf32>
    %80 = vector.extract_strided_slice %67 {offsets = [0, 4], sizes = [16, 8], strides = [1, 1]} : vector<16x24xf32> to vector<16x8xf32>
    %81 = vector.extract_strided_slice %67 {offsets = [0, 16], sizes = [16, 8], strides = [1, 1]} : vector<16x24xf32> to vector<16x8xf32>
    %82 = tpu.concatenate %80, %81 in 1 : vector<16x8xf32>, vector<16x8xf32> -> vector<16x16xf32>
    %83 = tpu.concatenate %70, %73, %76, %79, %82 in 0 : vector<16x16xf32>, vector<16x16xf32>, vector<16x16xf32>, vector<16x16xf32>, vector<16x16xf32> -> vector<80x16xf32>
    %c0_18 = arith.constant 0 : index
    %c0_19 = arith.constant 0 : index
    %84 = vector.load %arg7[%c0_18, %c0_19] : memref<16x80xf32, #tpu.memory_space<vmem>>, vector<16x80xf32>
    %cst_20 = arith.constant dense<0.000000e+00> : vector<16x16xf32>
    %85 = tpu.matmul %84, %83, %cst_20 {dimension_numbers = #tpu.dot_dimension_numbers<[1], [0], [0], [1], [0, 0, 1, 1], [], []>} : vector<16x80xf32>, vector<80x16xf32>, vector<16x16xf32> -> vector<16x16xf32>
    %c0_21 = arith.constant 0 : index
    %c0_22 = arith.constant 0 : index
    %86 = vector.load %arg8[%c0_21, %c0_22] : memref<16x1xf32, #tpu.memory_space<vmem>>, vector<16x1xf32>
    %87 = vector.broadcast %86 : vector<16x1xf32> to vector<16x16xf32>
    %88 = arith.addf %85, %87 : vector<16x16xf32>
    %89 = vector.extract_strided_slice %88 {offsets = [0, 0], sizes = [16, 8], strides = [1, 1]} : vector<16x16xf32> to vector<16x8xf32>
    %90 = vector.extract_strided_slice %88 {offsets = [0, 8], sizes = [16, 8], strides = [1, 1]} : vector<16x16xf32> to vector<16x8xf32>
    %91 = tpu.concatenate %89, %90 in 0 : vector<16x8xf32>, vector<16x8xf32> -> vector<32x8xf32>
    %c0_23 = arith.constant 0 : index
    %c0_24 = arith.constant 0 : index
    %92 = vector.load %arg9[%c0_23, %c0_24] : memref<8x256xf32, #tpu.memory_space<vmem>>, vector<8x256xf32>
    %cst_25 = arith.constant dense<0.000000e+00> : vector<32x256xf32>
    %93 = tpu.matmul %91, %92, %cst_25 {dimension_numbers = #tpu.dot_dimension_numbers<[1], [0], [0], [1], [0, 0, 1, 1], [], []>} : vector<32x8xf32>, vector<8x256xf32>, vector<32x256xf32> -> vector<32x256xf32>
    %94 = vector.shape_cast %93 : vector<32x256xf32> to vector<2x16x256xf32>
    %95 = vector.extract_strided_slice %94 {offsets = [0, 0, 0], sizes = [2, 1, 128], strides = [1, 1, 1]} : vector<2x16x256xf32> to vector<2x1x128xf32>
    %96 = vector.shape_cast %95 : vector<2x1x128xf32> to vector<2x128xf32>
    %97 = vector.extract_strided_slice %94 {offsets = [0, 1, 128], sizes = [2, 1, 128], strides = [1, 1, 1]} : vector<2x16x256xf32> to vector<2x1x128xf32>
    %98 = vector.shape_cast %97 : vector<2x1x128xf32> to vector<2x128xf32>
    %99 = arith.addf %96, %98 : vector<2x128xf32>
    %c0_26 = arith.constant 0 : index
    %c0_27 = arith.constant 0 : index
    %100 = vector.load %arg11[%c0_26, %c0_27] : memref<1x128xf32, #tpu.memory_space<vmem>>, vector<1x128xf32>
    %101 = vector.broadcast %100 : vector<1x128xf32> to vector<2x128xf32>
    %102 = arith.addf %99, %101 : vector<2x128xf32>
    %103 = vector.extract_strided_slice %94 {offsets = [0, 2, 0], sizes = [2, 1, 128], strides = [1, 1, 1]} : vector<2x16x256xf32> to vector<2x1x128xf32>
    %104 = vector.shape_cast %103 : vector<2x1x128xf32> to vector<2x128xf32>
    %105 = vector.extract_strided_slice %94 {offsets = [0, 3, 128], sizes = [2, 1, 128], strides = [1, 1, 1]} : vector<2x16x256xf32> to vector<2x1x128xf32>
    %106 = vector.shape_cast %105 : vector<2x1x128xf32> to vector<2x128xf32>
    %107 = arith.addf %104, %106 : vector<2x128xf32>
    %c0_28 = arith.constant 0 : index
    %c0_29 = arith.constant 0 : index
    %108 = vector.load %arg11[%c0_28, %c0_29] : memref<1x128xf32, #tpu.memory_space<vmem>>, vector<1x128xf32>
    %109 = vector.broadcast %108 : vector<1x128xf32> to vector<2x128xf32>
    %110 = arith.addf %107, %109 : vector<2x128xf32>
    %111 = vector.extract_strided_slice %94 {offsets = [0, 4, 0], sizes = [2, 1, 128], strides = [1, 1, 1]} : vector<2x16x256xf32> to vector<2x1x128xf32>
    %112 = vector.shape_cast %111 : vector<2x1x128xf32> to vector<2x128xf32>
    %113 = vector.extract_strided_slice %94 {offsets = [0, 5, 128], sizes = [2, 1, 128], strides = [1, 1, 1]} : vector<2x16x256xf32> to vector<2x1x128xf32>
    %114 = vector.shape_cast %113 : vector<2x1x128xf32> to vector<2x128xf32>
    %115 = arith.addf %112, %114 : vector<2x128xf32>
    %c0_30 = arith.constant 0 : index
    %c0_31 = arith.constant 0 : index
    %116 = vector.load %arg11[%c0_30, %c0_31] : memref<1x128xf32, #tpu.memory_space<vmem>>, vector<1x128xf32>
    %117 = vector.broadcast %116 : vector<1x128xf32> to vector<2x128xf32>
    %118 = arith.addf %115, %117 : vector<2x128xf32>
    %119 = vector.extract_strided_slice %94 {offsets = [0, 6, 0], sizes = [2, 1, 128], strides = [1, 1, 1]} : vector<2x16x256xf32> to vector<2x1x128xf32>
    %120 = vector.shape_cast %119 : vector<2x1x128xf32> to vector<2x128xf32>
    %121 = vector.extract_strided_slice %94 {offsets = [0, 7, 128], sizes = [2, 1, 128], strides = [1, 1, 1]} : vector<2x16x256xf32> to vector<2x1x128xf32>
    %122 = vector.shape_cast %121 : vector<2x1x128xf32> to vector<2x128xf32>
    %123 = arith.addf %120, %122 : vector<2x128xf32>
    %c0_32 = arith.constant 0 : index
    %c0_33 = arith.constant 0 : index
    %124 = vector.load %arg11[%c0_32, %c0_33] : memref<1x128xf32, #tpu.memory_space<vmem>>, vector<1x128xf32>
    %125 = vector.broadcast %124 : vector<1x128xf32> to vector<2x128xf32>
    %126 = arith.addf %123, %125 : vector<2x128xf32>
    %127 = vector.extract_strided_slice %94 {offsets = [0, 8, 0], sizes = [2, 1, 128], strides = [1, 1, 1]} : vector<2x16x256xf32> to vector<2x1x128xf32>
    %128 = vector.shape_cast %127 : vector<2x1x128xf32> to vector<2x128xf32>
    %129 = vector.extract_strided_slice %94 {offsets = [0, 9, 128], sizes = [2, 1, 128], strides = [1, 1, 1]} : vector<2x16x256xf32> to vector<2x1x128xf32>
    %130 = vector.shape_cast %129 : vector<2x1x128xf32> to vector<2x128xf32>
    %131 = arith.addf %128, %130 : vector<2x128xf32>
    %c0_34 = arith.constant 0 : index
    %c0_35 = arith.constant 0 : index
    %132 = vector.load %arg11[%c0_34, %c0_35] : memref<1x128xf32, #tpu.memory_space<vmem>>, vector<1x128xf32>
    %133 = vector.broadcast %132 : vector<1x128xf32> to vector<2x128xf32>
    %134 = arith.addf %131, %133 : vector<2x128xf32>
    %135 = vector.extract_strided_slice %94 {offsets = [0, 10, 0], sizes = [2, 1, 128], strides = [1, 1, 1]} : vector<2x16x256xf32> to vector<2x1x128xf32>
    %136 = vector.shape_cast %135 : vector<2x1x128xf32> to vector<2x128xf32>
    %137 = vector.extract_strided_slice %94 {offsets = [0, 11, 128], sizes = [2, 1, 128], strides = [1, 1, 1]} : vector<2x16x256xf32> to vector<2x1x128xf32>
    %138 = vector.shape_cast %137 : vector<2x1x128xf32> to vector<2x128xf32>
    %139 = arith.addf %136, %138 : vector<2x128xf32>
    %c0_36 = arith.constant 0 : index
    %c0_37 = arith.constant 0 : index
    %140 = vector.load %arg11[%c0_36, %c0_37] : memref<1x128xf32, #tpu.memory_space<vmem>>, vector<1x128xf32>
    %141 = vector.broadcast %140 : vector<1x128xf32> to vector<2x128xf32>
    %142 = arith.addf %139, %141 : vector<2x128xf32>
    %143 = vector.extract_strided_slice %94 {offsets = [0, 12, 0], sizes = [2, 1, 128], strides = [1, 1, 1]} : vector<2x16x256xf32> to vector<2x1x128xf32>
    %144 = vector.shape_cast %143 : vector<2x1x128xf32> to vector<2x128xf32>
    %145 = vector.extract_strided_slice %94 {offsets = [0, 13, 128], sizes = [2, 1, 128], strides = [1, 1, 1]} : vector<2x16x256xf32> to vector<2x1x128xf32>
    %146 = vector.shape_cast %145 : vector<2x1x128xf32> to vector<2x128xf32>
    %147 = arith.addf %144, %146 : vector<2x128xf32>
    %c0_38 = arith.constant 0 : index
    %c0_39 = arith.constant 0 : index
    %148 = vector.load %arg11[%c0_38, %c0_39] : memref<1x128xf32, #tpu.memory_space<vmem>>, vector<1x128xf32>
    %149 = vector.broadcast %148 : vector<1x128xf32> to vector<2x128xf32>
    %150 = arith.addf %147, %149 : vector<2x128xf32>
    %151 = vector.extract_strided_slice %94 {offsets = [0, 14, 0], sizes = [2, 1, 128], strides = [1, 1, 1]} : vector<2x16x256xf32> to vector<2x1x128xf32>
    %152 = vector.shape_cast %151 : vector<2x1x128xf32> to vector<2x128xf32>
    %153 = vector.extract_strided_slice %94 {offsets = [0, 15, 128], sizes = [2, 1, 128], strides = [1, 1, 1]} : vector<2x16x256xf32> to vector<2x1x128xf32>
    %154 = vector.shape_cast %153 : vector<2x1x128xf32> to vector<2x128xf32>
    %155 = arith.addf %152, %154 : vector<2x128xf32>
    %c0_40 = arith.constant 0 : index
    %c0_41 = arith.constant 0 : index
    %156 = vector.load %arg11[%c0_40, %c0_41] : memref<1x128xf32, #tpu.memory_space<vmem>>, vector<1x128xf32>
    %157 = vector.broadcast %156 : vector<1x128xf32> to vector<2x128xf32>
    %158 = arith.addf %155, %157 : vector<2x128xf32>
    %c0_42 = arith.constant 0 : index
    %c0_43 = arith.constant 0 : index
    %c0_44 = arith.constant 0 : index
    %159 = vector.load %arg17[%c0_42, %c0_43, %c0_44] : memref<2x2x32xf32, #tpu.memory_space<vmem>>, vector<1x2x32xf32>
    %160 = vector.shape_cast %159 : vector<1x2x32xf32> to vector<2x32xf32>
    %c0_45 = arith.constant 0 : index
    %c0_46 = arith.constant 0 : index
    %c0_47 = arith.constant 0 : index
    %161 = vector.load %arg18[%c0_45, %c0_46, %c0_47] : memref<2x2x32xf32, #tpu.memory_space<vmem>>, vector<1x2x32xf32>
    %162 = vector.shape_cast %161 : vector<1x2x32xf32> to vector<2x32xf32>
    %c1_48 = arith.constant 1 : index
    %c0_49 = arith.constant 0 : index
    %c0_50 = arith.constant 0 : index
    %163 = vector.load %arg17[%c1_48, %c0_49, %c0_50] : memref<2x2x32xf32, #tpu.memory_space<vmem>>, vector<1x2x32xf32>
    %164 = vector.shape_cast %163 : vector<1x2x32xf32> to vector<2x32xf32>
    %c1_51 = arith.constant 1 : index
    %c0_52 = arith.constant 0 : index
    %c0_53 = arith.constant 0 : index
    %165 = vector.load %arg18[%c1_51, %c0_52, %c0_53] : memref<2x2x32xf32, #tpu.memory_space<vmem>>, vector<1x2x32xf32>
    %166 = vector.shape_cast %165 : vector<1x2x32xf32> to vector<2x32xf32>
    %c0_54 = arith.constant 0 : index
    %c0_55 = arith.constant 0 : index
    %167 = vector.load %arg10[%c0_54, %c0_55] : memref<32x128xf32, #tpu.memory_space<vmem>>, vector<32x128xf32>
    %cst_56 = arith.constant dense<0.000000e+00> : vector<2x128xf32>
    %168 = tpu.matmul %160, %167, %cst_56 {dimension_numbers = #tpu.dot_dimension_numbers<[1], [0], [0], [1], [0, 0, 1, 1], [], []>} : vector<2x32xf32>, vector<32x128xf32>, vector<2x128xf32> -> vector<2x128xf32>
    %169 = arith.addf %102, %168 : vector<2x128xf32>
    %170 = arith.negf %169 : vector<2x128xf32>
    %171 = math.exp %170 : vector<2x128xf32>
    %cst_57 = arith.constant 1.000000e+00 : f32
    %172 = vector.broadcast %cst_57 : f32 to vector<2x128xf32>
    %173 = arith.addf %172, %171 : vector<2x128xf32>
    %174 = arith.divf %172, %173 : vector<2x128xf32>
    %175 = math.tanh %169 : vector<2x128xf32>
    %176 = vector.extract_strided_slice %174 {offsets = [0, 0], sizes = [2, 32], strides = [1, 1]} : vector<2x128xf32> to vector<2x32xf32>
    %177 = vector.extract_strided_slice %174 {offsets = [0, 32], sizes = [2, 32], strides = [1, 1]} : vector<2x128xf32> to vector<2x32xf32>
    %178 = vector.extract_strided_slice %175 {offsets = [0, 64], sizes = [2, 32], strides = [1, 1]} : vector<2x128xf32> to vector<2x32xf32>
    %179 = vector.extract_strided_slice %174 {offsets = [0, 96], sizes = [2, 32], strides = [1, 1]} : vector<2x128xf32> to vector<2x32xf32>
    %180 = arith.mulf %177, %162 : vector<2x32xf32>
    %181 = arith.mulf %176, %178 : vector<2x32xf32>
    %182 = arith.addf %180, %181 : vector<2x32xf32>
    %183 = math.tanh %182 : vector<2x32xf32>
    %184 = arith.mulf %179, %183 : vector<2x32xf32>
    %c0_58 = arith.constant 0 : index
    %c0_59 = arith.constant 0 : index
    %185 = vector.load %arg12[%c0_58, %c0_59] : memref<32x128xf32, #tpu.memory_space<vmem>>, vector<32x128xf32>
    %cst_60 = arith.constant dense<0.000000e+00> : vector<2x128xf32>
    %186 = tpu.matmul %184, %185, %cst_60 {dimension_numbers = #tpu.dot_dimension_numbers<[1], [0], [0], [1], [0, 0, 1, 1], [], []>} : vector<2x32xf32>, vector<32x128xf32>, vector<2x128xf32> -> vector<2x128xf32>
    %c0_61 = arith.constant 0 : index
    %c0_62 = arith.constant 0 : index
    %187 = vector.load %arg13[%c0_61, %c0_62] : memref<32x128xf32, #tpu.memory_space<vmem>>, vector<32x128xf32>
    %cst_63 = arith.constant dense<0.000000e+00> : vector<2x128xf32>
    %188 = tpu.matmul %164, %187, %cst_63 {dimension_numbers = #tpu.dot_dimension_numbers<[1], [0], [0], [1], [0, 0, 1, 1], [], []>} : vector<2x32xf32>, vector<32x128xf32>, vector<2x128xf32> -> vector<2x128xf32>
    %189 = arith.addf %186, %188 : vector<2x128xf32>
    %c0_64 = arith.constant 0 : index
    %c0_65 = arith.constant 0 : index
    %190 = vector.load %arg14[%c0_64, %c0_65] : memref<1x128xf32, #tpu.memory_space<vmem>>, vector<1x128xf32>
    %191 = vector.broadcast %190 : vector<1x128xf32> to vector<2x128xf32>
    %192 = arith.addf %189, %191 : vector<2x128xf32>
    %193 = arith.negf %192 : vector<2x128xf32>
    %194 = math.exp %193 : vector<2x128xf32>
    %cst_66 = arith.constant 1.000000e+00 : f32
    %195 = vector.broadcast %cst_66 : f32 to vector<2x128xf32>
    %196 = arith.addf %195, %194 : vector<2x128xf32>
    %197 = arith.divf %195, %196 : vector<2x128xf32>
    %198 = math.tanh %192 : vector<2x128xf32>
    %199 = vector.extract_strided_slice %197 {offsets = [0, 0], sizes = [2, 32], strides = [1, 1]} : vector<2x128xf32> to vector<2x32xf32>
    %200 = vector.extract_strided_slice %197 {offsets = [0, 32], sizes = [2, 32], strides = [1, 1]} : vector<2x128xf32> to vector<2x32xf32>
    %201 = vector.extract_strided_slice %198 {offsets = [0, 64], sizes = [2, 32], strides = [1, 1]} : vector<2x128xf32> to vector<2x32xf32>
    %202 = vector.extract_strided_slice %197 {offsets = [0, 96], sizes = [2, 32], strides = [1, 1]} : vector<2x128xf32> to vector<2x32xf32>
    %203 = arith.mulf %200, %166 : vector<2x32xf32>
    %204 = arith.mulf %199, %201 : vector<2x32xf32>
    %205 = arith.addf %203, %204 : vector<2x32xf32>
    %206 = math.tanh %205 : vector<2x32xf32>
    %207 = arith.mulf %202, %206 : vector<2x32xf32>
    %c0_67 = arith.constant 0 : index
    %c0_68 = arith.constant 0 : index
    %208 = vector.load %arg10[%c0_67, %c0_68] : memref<32x128xf32, #tpu.memory_space<vmem>>, vector<32x128xf32>
    %cst_69 = arith.constant dense<0.000000e+00> : vector<2x128xf32>
    %209 = tpu.matmul %184, %208, %cst_69 {dimension_numbers = #tpu.dot_dimension_numbers<[1], [0], [0], [1], [0, 0, 1, 1], [], []>} : vector<2x32xf32>, vector<32x128xf32>, vector<2x128xf32> -> vector<2x128xf32>
    %210 = arith.addf %110, %209 : vector<2x128xf32>
    %211 = arith.negf %210 : vector<2x128xf32>
    %212 = math.exp %211 : vector<2x128xf32>
    %cst_70 = arith.constant 1.000000e+00 : f32
    %213 = vector.broadcast %cst_70 : f32 to vector<2x128xf32>
    %214 = arith.addf %213, %212 : vector<2x128xf32>
    %215 = arith.divf %213, %214 : vector<2x128xf32>
    %216 = math.tanh %210 : vector<2x128xf32>
    %217 = vector.extract_strided_slice %215 {offsets = [0, 0], sizes = [2, 32], strides = [1, 1]} : vector<2x128xf32> to vector<2x32xf32>
    %218 = vector.extract_strided_slice %215 {offsets = [0, 32], sizes = [2, 32], strides = [1, 1]} : vector<2x128xf32> to vector<2x32xf32>
    %219 = vector.extract_strided_slice %216 {offsets = [0, 64], sizes = [2, 32], strides = [1, 1]} : vector<2x128xf32> to vector<2x32xf32>
    %220 = vector.extract_strided_slice %215 {offsets = [0, 96], sizes = [2, 32], strides = [1, 1]} : vector<2x128xf32> to vector<2x32xf32>
    %221 = arith.mulf %218, %182 : vector<2x32xf32>
    %222 = arith.mulf %217, %219 : vector<2x32xf32>
    %223 = arith.addf %221, %222 : vector<2x32xf32>
    %224 = math.tanh %223 : vector<2x32xf32>
    %225 = arith.mulf %220, %224 : vector<2x32xf32>
    %c0_71 = arith.constant 0 : index
    %c0_72 = arith.constant 0 : index
    %226 = vector.load %arg12[%c0_71, %c0_72] : memref<32x128xf32, #tpu.memory_space<vmem>>, vector<32x128xf32>
    %cst_73 = arith.constant dense<0.000000e+00> : vector<2x128xf32>
    %227 = tpu.matmul %225, %226, %cst_73 {dimension_numbers = #tpu.dot_dimension_numbers<[1], [0], [0], [1], [0, 0, 1, 1], [], []>} : vector<2x32xf32>, vector<32x128xf32>, vector<2x128xf32> -> vector<2x128xf32>
    %c0_74 = arith.constant 0 : index
    %c0_75 = arith.constant 0 : index
    %228 = vector.load %arg13[%c0_74, %c0_75] : memref<32x128xf32, #tpu.memory_space<vmem>>, vector<32x128xf32>
    %cst_76 = arith.constant dense<0.000000e+00> : vector<2x128xf32>
    %229 = tpu.matmul %207, %228, %cst_76 {dimension_numbers = #tpu.dot_dimension_numbers<[1], [0], [0], [1], [0, 0, 1, 1], [], []>} : vector<2x32xf32>, vector<32x128xf32>, vector<2x128xf32> -> vector<2x128xf32>
    %230 = arith.addf %227, %229 : vector<2x128xf32>
    %c0_77 = arith.constant 0 : index
    %c0_78 = arith.constant 0 : index
    %231 = vector.load %arg14[%c0_77, %c0_78] : memref<1x128xf32, #tpu.memory_space<vmem>>, vector<1x128xf32>
    %232 = vector.broadcast %231 : vector<1x128xf32> to vector<2x128xf32>
    %233 = arith.addf %230, %232 : vector<2x128xf32>
    %234 = arith.negf %233 : vector<2x128xf32>
    %235 = math.exp %234 : vector<2x128xf32>
    %cst_79 = arith.constant 1.000000e+00 : f32
    %236 = vector.broadcast %cst_79 : f32 to vector<2x128xf32>
    %237 = arith.addf %236, %235 : vector<2x128xf32>
    %238 = arith.divf %236, %237 : vector<2x128xf32>
    %239 = math.tanh %233 : vector<2x128xf32>
    %240 = vector.extract_strided_slice %238 {offsets = [0, 0], sizes = [2, 32], strides = [1, 1]} : vector<2x128xf32> to vector<2x32xf32>
    %241 = vector.extract_strided_slice %238 {offsets = [0, 32], sizes = [2, 32], strides = [1, 1]} : vector<2x128xf32> to vector<2x32xf32>
    %242 = vector.extract_strided_slice %239 {offsets = [0, 64], sizes = [2, 32], strides = [1, 1]} : vector<2x128xf32> to vector<2x32xf32>
    %243 = vector.extract_strided_slice %238 {offsets = [0, 96], sizes = [2, 32], strides = [1, 1]} : vector<2x128xf32> to vector<2x32xf32>
    %244 = arith.mulf %241, %205 : vector<2x32xf32>
    %245 = arith.mulf %240, %242 : vector<2x32xf32>
    %246 = arith.addf %244, %245 : vector<2x32xf32>
    %247 = math.tanh %246 : vector<2x32xf32>
    %248 = arith.mulf %243, %247 : vector<2x32xf32>
    %c0_80 = arith.constant 0 : index
    %c0_81 = arith.constant 0 : index
    %249 = vector.load %arg10[%c0_80, %c0_81] : memref<32x128xf32, #tpu.memory_space<vmem>>, vector<32x128xf32>
    %cst_82 = arith.constant dense<0.000000e+00> : vector<2x128xf32>
    %250 = tpu.matmul %225, %249, %cst_82 {dimension_numbers = #tpu.dot_dimension_numbers<[1], [0], [0], [1], [0, 0, 1, 1], [], []>} : vector<2x32xf32>, vector<32x128xf32>, vector<2x128xf32> -> vector<2x128xf32>
    %251 = arith.addf %118, %250 : vector<2x128xf32>
    %252 = arith.negf %251 : vector<2x128xf32>
    %253 = math.exp %252 : vector<2x128xf32>
    %cst_83 = arith.constant 1.000000e+00 : f32
    %254 = vector.broadcast %cst_83 : f32 to vector<2x128xf32>
    %255 = arith.addf %254, %253 : vector<2x128xf32>
    %256 = arith.divf %254, %255 : vector<2x128xf32>
    %257 = math.tanh %251 : vector<2x128xf32>
    %258 = vector.extract_strided_slice %256 {offsets = [0, 0], sizes = [2, 32], strides = [1, 1]} : vector<2x128xf32> to vector<2x32xf32>
    %259 = vector.extract_strided_slice %256 {offsets = [0, 32], sizes = [2, 32], strides = [1, 1]} : vector<2x128xf32> to vector<2x32xf32>
    %260 = vector.extract_strided_slice %257 {offsets = [0, 64], sizes = [2, 32], strides = [1, 1]} : vector<2x128xf32> to vector<2x32xf32>
    %261 = vector.extract_strided_slice %256 {offsets = [0, 96], sizes = [2, 32], strides = [1, 1]} : vector<2x128xf32> to vector<2x32xf32>
    %262 = arith.mulf %259, %223 : vector<2x32xf32>
    %263 = arith.mulf %258, %260 : vector<2x32xf32>
    %264 = arith.addf %262, %263 : vector<2x32xf32>
    %265 = math.tanh %264 : vector<2x32xf32>
    %266 = arith.mulf %261, %265 : vector<2x32xf32>
    %c0_84 = arith.constant 0 : index
    %c0_85 = arith.constant 0 : index
    %267 = vector.load %arg12[%c0_84, %c0_85] : memref<32x128xf32, #tpu.memory_space<vmem>>, vector<32x128xf32>
    %cst_86 = arith.constant dense<0.000000e+00> : vector<2x128xf32>
    %268 = tpu.matmul %266, %267, %cst_86 {dimension_numbers = #tpu.dot_dimension_numbers<[1], [0], [0], [1], [0, 0, 1, 1], [], []>} : vector<2x32xf32>, vector<32x128xf32>, vector<2x128xf32> -> vector<2x128xf32>
    %c0_87 = arith.constant 0 : index
    %c0_88 = arith.constant 0 : index
    %269 = vector.load %arg13[%c0_87, %c0_88] : memref<32x128xf32, #tpu.memory_space<vmem>>, vector<32x128xf32>
    %cst_89 = arith.constant dense<0.000000e+00> : vector<2x128xf32>
    %270 = tpu.matmul %248, %269, %cst_89 {dimension_numbers = #tpu.dot_dimension_numbers<[1], [0], [0], [1], [0, 0, 1, 1], [], []>} : vector<2x32xf32>, vector<32x128xf32>, vector<2x128xf32> -> vector<2x128xf32>
    %271 = arith.addf %268, %270 : vector<2x128xf32>
    %c0_90 = arith.constant 0 : index
    %c0_91 = arith.constant 0 : index
    %272 = vector.load %arg14[%c0_90, %c0_91] : memref<1x128xf32, #tpu.memory_space<vmem>>, vector<1x128xf32>
    %273 = vector.broadcast %272 : vector<1x128xf32> to vector<2x128xf32>
    %274 = arith.addf %271, %273 : vector<2x128xf32>
    %275 = arith.negf %274 : vector<2x128xf32>
    %276 = math.exp %275 : vector<2x128xf32>
    %cst_92 = arith.constant 1.000000e+00 : f32
    %277 = vector.broadcast %cst_92 : f32 to vector<2x128xf32>
    %278 = arith.addf %277, %276 : vector<2x128xf32>
    %279 = arith.divf %277, %278 : vector<2x128xf32>
    %280 = math.tanh %274 : vector<2x128xf32>
    %281 = vector.extract_strided_slice %279 {offsets = [0, 0], sizes = [2, 32], strides = [1, 1]} : vector<2x128xf32> to vector<2x32xf32>
    %282 = vector.extract_strided_slice %279 {offsets = [0, 32], sizes = [2, 32], strides = [1, 1]} : vector<2x128xf32> to vector<2x32xf32>
    %283 = vector.extract_strided_slice %280 {offsets = [0, 64], sizes = [2, 32], strides = [1, 1]} : vector<2x128xf32> to vector<2x32xf32>
    %284 = vector.extract_strided_slice %279 {offsets = [0, 96], sizes = [2, 32], strides = [1, 1]} : vector<2x128xf32> to vector<2x32xf32>
    %285 = arith.mulf %282, %246 : vector<2x32xf32>
    %286 = arith.mulf %281, %283 : vector<2x32xf32>
    %287 = arith.addf %285, %286 : vector<2x32xf32>
    %288 = math.tanh %287 : vector<2x32xf32>
    %289 = arith.mulf %284, %288 : vector<2x32xf32>
    %c0_93 = arith.constant 0 : index
    %c0_94 = arith.constant 0 : index
    %290 = vector.load %arg10[%c0_93, %c0_94] : memref<32x128xf32, #tpu.memory_space<vmem>>, vector<32x128xf32>
    %cst_95 = arith.constant dense<0.000000e+00> : vector<2x128xf32>
    %291 = tpu.matmul %266, %290, %cst_95 {dimension_numbers = #tpu.dot_dimension_numbers<[1], [0], [0], [1], [0, 0, 1, 1], [], []>} : vector<2x32xf32>, vector<32x128xf32>, vector<2x128xf32> -> vector<2x128xf32>
    %292 = arith.addf %126, %291 : vector<2x128xf32>
    %293 = arith.negf %292 : vector<2x128xf32>
    %294 = math.exp %293 : vector<2x128xf32>
    %cst_96 = arith.constant 1.000000e+00 : f32
    %295 = vector.broadcast %cst_96 : f32 to vector<2x128xf32>
    %296 = arith.addf %295, %294 : vector<2x128xf32>
    %297 = arith.divf %295, %296 : vector<2x128xf32>
    %298 = math.tanh %292 : vector<2x128xf32>
    %299 = vector.extract_strided_slice %297 {offsets = [0, 0], sizes = [2, 32], strides = [1, 1]} : vector<2x128xf32> to vector<2x32xf32>
    %300 = vector.extract_strided_slice %297 {offsets = [0, 32], sizes = [2, 32], strides = [1, 1]} : vector<2x128xf32> to vector<2x32xf32>
    %301 = vector.extract_strided_slice %298 {offsets = [0, 64], sizes = [2, 32], strides = [1, 1]} : vector<2x128xf32> to vector<2x32xf32>
    %302 = vector.extract_strided_slice %297 {offsets = [0, 96], sizes = [2, 32], strides = [1, 1]} : vector<2x128xf32> to vector<2x32xf32>
    %303 = arith.mulf %300, %264 : vector<2x32xf32>
    %304 = arith.mulf %299, %301 : vector<2x32xf32>
    %305 = arith.addf %303, %304 : vector<2x32xf32>
    %306 = math.tanh %305 : vector<2x32xf32>
    %307 = arith.mulf %302, %306 : vector<2x32xf32>
    %c0_97 = arith.constant 0 : index
    %c0_98 = arith.constant 0 : index
    %308 = vector.load %arg12[%c0_97, %c0_98] : memref<32x128xf32, #tpu.memory_space<vmem>>, vector<32x128xf32>
    %cst_99 = arith.constant dense<0.000000e+00> : vector<2x128xf32>
    %309 = tpu.matmul %307, %308, %cst_99 {dimension_numbers = #tpu.dot_dimension_numbers<[1], [0], [0], [1], [0, 0, 1, 1], [], []>} : vector<2x32xf32>, vector<32x128xf32>, vector<2x128xf32> -> vector<2x128xf32>
    %c0_100 = arith.constant 0 : index
    %c0_101 = arith.constant 0 : index
    %310 = vector.load %arg13[%c0_100, %c0_101] : memref<32x128xf32, #tpu.memory_space<vmem>>, vector<32x128xf32>
    %cst_102 = arith.constant dense<0.000000e+00> : vector<2x128xf32>
    %311 = tpu.matmul %289, %310, %cst_102 {dimension_numbers = #tpu.dot_dimension_numbers<[1], [0], [0], [1], [0, 0, 1, 1], [], []>} : vector<2x32xf32>, vector<32x128xf32>, vector<2x128xf32> -> vector<2x128xf32>
    %312 = arith.addf %309, %311 : vector<2x128xf32>
    %c0_103 = arith.constant 0 : index
    %c0_104 = arith.constant 0 : index
    %313 = vector.load %arg14[%c0_103, %c0_104] : memref<1x128xf32, #tpu.memory_space<vmem>>, vector<1x128xf32>
    %314 = vector.broadcast %313 : vector<1x128xf32> to vector<2x128xf32>
    %315 = arith.addf %312, %314 : vector<2x128xf32>
    %316 = arith.negf %315 : vector<2x128xf32>
    %317 = math.exp %316 : vector<2x128xf32>
    %cst_105 = arith.constant 1.000000e+00 : f32
    %318 = vector.broadcast %cst_105 : f32 to vector<2x128xf32>
    %319 = arith.addf %318, %317 : vector<2x128xf32>
    %320 = arith.divf %318, %319 : vector<2x128xf32>
    %321 = math.tanh %315 : vector<2x128xf32>
    %322 = vector.extract_strided_slice %320 {offsets = [0, 0], sizes = [2, 32], strides = [1, 1]} : vector<2x128xf32> to vector<2x32xf32>
    %323 = vector.extract_strided_slice %320 {offsets = [0, 32], sizes = [2, 32], strides = [1, 1]} : vector<2x128xf32> to vector<2x32xf32>
    %324 = vector.extract_strided_slice %321 {offsets = [0, 64], sizes = [2, 32], strides = [1, 1]} : vector<2x128xf32> to vector<2x32xf32>
    %325 = vector.extract_strided_slice %320 {offsets = [0, 96], sizes = [2, 32], strides = [1, 1]} : vector<2x128xf32> to vector<2x32xf32>
    %326 = arith.mulf %323, %287 : vector<2x32xf32>
    %327 = arith.mulf %322, %324 : vector<2x32xf32>
    %328 = arith.addf %326, %327 : vector<2x32xf32>
    %329 = math.tanh %328 : vector<2x32xf32>
    %330 = arith.mulf %325, %329 : vector<2x32xf32>
    %c0_106 = arith.constant 0 : index
    %c0_107 = arith.constant 0 : index
    %331 = vector.load %arg10[%c0_106, %c0_107] : memref<32x128xf32, #tpu.memory_space<vmem>>, vector<32x128xf32>
    %cst_108 = arith.constant dense<0.000000e+00> : vector<2x128xf32>
    %332 = tpu.matmul %307, %331, %cst_108 {dimension_numbers = #tpu.dot_dimension_numbers<[1], [0], [0], [1], [0, 0, 1, 1], [], []>} : vector<2x32xf32>, vector<32x128xf32>, vector<2x128xf32> -> vector<2x128xf32>
    %333 = arith.addf %134, %332 : vector<2x128xf32>
    %334 = arith.negf %333 : vector<2x128xf32>
    %335 = math.exp %334 : vector<2x128xf32>
    %cst_109 = arith.constant 1.000000e+00 : f32
    %336 = vector.broadcast %cst_109 : f32 to vector<2x128xf32>
    %337 = arith.addf %336, %335 : vector<2x128xf32>
    %338 = arith.divf %336, %337 : vector<2x128xf32>
    %339 = math.tanh %333 : vector<2x128xf32>
    %340 = vector.extract_strided_slice %338 {offsets = [0, 0], sizes = [2, 32], strides = [1, 1]} : vector<2x128xf32> to vector<2x32xf32>
    %341 = vector.extract_strided_slice %338 {offsets = [0, 32], sizes = [2, 32], strides = [1, 1]} : vector<2x128xf32> to vector<2x32xf32>
    %342 = vector.extract_strided_slice %339 {offsets = [0, 64], sizes = [2, 32], strides = [1, 1]} : vector<2x128xf32> to vector<2x32xf32>
    %343 = vector.extract_strided_slice %338 {offsets = [0, 96], sizes = [2, 32], strides = [1, 1]} : vector<2x128xf32> to vector<2x32xf32>
    %344 = arith.mulf %341, %305 : vector<2x32xf32>
    %345 = arith.mulf %340, %342 : vector<2x32xf32>
    %346 = arith.addf %344, %345 : vector<2x32xf32>
    %347 = math.tanh %346 : vector<2x32xf32>
    %348 = arith.mulf %343, %347 : vector<2x32xf32>
    %c0_110 = arith.constant 0 : index
    %c0_111 = arith.constant 0 : index
    %349 = vector.load %arg12[%c0_110, %c0_111] : memref<32x128xf32, #tpu.memory_space<vmem>>, vector<32x128xf32>
    %cst_112 = arith.constant dense<0.000000e+00> : vector<2x128xf32>
    %350 = tpu.matmul %348, %349, %cst_112 {dimension_numbers = #tpu.dot_dimension_numbers<[1], [0], [0], [1], [0, 0, 1, 1], [], []>} : vector<2x32xf32>, vector<32x128xf32>, vector<2x128xf32> -> vector<2x128xf32>
    %c0_113 = arith.constant 0 : index
    %c0_114 = arith.constant 0 : index
    %351 = vector.load %arg13[%c0_113, %c0_114] : memref<32x128xf32, #tpu.memory_space<vmem>>, vector<32x128xf32>
    %cst_115 = arith.constant dense<0.000000e+00> : vector<2x128xf32>
    %352 = tpu.matmul %330, %351, %cst_115 {dimension_numbers = #tpu.dot_dimension_numbers<[1], [0], [0], [1], [0, 0, 1, 1], [], []>} : vector<2x32xf32>, vector<32x128xf32>, vector<2x128xf32> -> vector<2x128xf32>
    %353 = arith.addf %350, %352 : vector<2x128xf32>
    %c0_116 = arith.constant 0 : index
    %c0_117 = arith.constant 0 : index
    %354 = vector.load %arg14[%c0_116, %c0_117] : memref<1x128xf32, #tpu.memory_space<vmem>>, vector<1x128xf32>
    %355 = vector.broadcast %354 : vector<1x128xf32> to vector<2x128xf32>
    %356 = arith.addf %353, %355 : vector<2x128xf32>
    %357 = arith.negf %356 : vector<2x128xf32>
    %358 = math.exp %357 : vector<2x128xf32>
    %cst_118 = arith.constant 1.000000e+00 : f32
    %359 = vector.broadcast %cst_118 : f32 to vector<2x128xf32>
    %360 = arith.addf %359, %358 : vector<2x128xf32>
    %361 = arith.divf %359, %360 : vector<2x128xf32>
    %362 = math.tanh %356 : vector<2x128xf32>
    %363 = vector.extract_strided_slice %361 {offsets = [0, 0], sizes = [2, 32], strides = [1, 1]} : vector<2x128xf32> to vector<2x32xf32>
    %364 = vector.extract_strided_slice %361 {offsets = [0, 32], sizes = [2, 32], strides = [1, 1]} : vector<2x128xf32> to vector<2x32xf32>
    %365 = vector.extract_strided_slice %362 {offsets = [0, 64], sizes = [2, 32], strides = [1, 1]} : vector<2x128xf32> to vector<2x32xf32>
    %366 = vector.extract_strided_slice %361 {offsets = [0, 96], sizes = [2, 32], strides = [1, 1]} : vector<2x128xf32> to vector<2x32xf32>
    %367 = arith.mulf %364, %328 : vector<2x32xf32>
    %368 = arith.mulf %363, %365 : vector<2x32xf32>
    %369 = arith.addf %367, %368 : vector<2x32xf32>
    %370 = math.tanh %369 : vector<2x32xf32>
    %371 = arith.mulf %366, %370 : vector<2x32xf32>
    %c0_119 = arith.constant 0 : index
    %c0_120 = arith.constant 0 : index
    %372 = vector.load %arg10[%c0_119, %c0_120] : memref<32x128xf32, #tpu.memory_space<vmem>>, vector<32x128xf32>
    %cst_121 = arith.constant dense<0.000000e+00> : vector<2x128xf32>
    %373 = tpu.matmul %348, %372, %cst_121 {dimension_numbers = #tpu.dot_dimension_numbers<[1], [0], [0], [1], [0, 0, 1, 1], [], []>} : vector<2x32xf32>, vector<32x128xf32>, vector<2x128xf32> -> vector<2x128xf32>
    %374 = arith.addf %142, %373 : vector<2x128xf32>
    %375 = arith.negf %374 : vector<2x128xf32>
    %376 = math.exp %375 : vector<2x128xf32>
    %cst_122 = arith.constant 1.000000e+00 : f32
    %377 = vector.broadcast %cst_122 : f32 to vector<2x128xf32>
    %378 = arith.addf %377, %376 : vector<2x128xf32>
    %379 = arith.divf %377, %378 : vector<2x128xf32>
    %380 = math.tanh %374 : vector<2x128xf32>
    %381 = vector.extract_strided_slice %379 {offsets = [0, 0], sizes = [2, 32], strides = [1, 1]} : vector<2x128xf32> to vector<2x32xf32>
    %382 = vector.extract_strided_slice %379 {offsets = [0, 32], sizes = [2, 32], strides = [1, 1]} : vector<2x128xf32> to vector<2x32xf32>
    %383 = vector.extract_strided_slice %380 {offsets = [0, 64], sizes = [2, 32], strides = [1, 1]} : vector<2x128xf32> to vector<2x32xf32>
    %384 = vector.extract_strided_slice %379 {offsets = [0, 96], sizes = [2, 32], strides = [1, 1]} : vector<2x128xf32> to vector<2x32xf32>
    %385 = arith.mulf %382, %346 : vector<2x32xf32>
    %386 = arith.mulf %381, %383 : vector<2x32xf32>
    %387 = arith.addf %385, %386 : vector<2x32xf32>
    %388 = math.tanh %387 : vector<2x32xf32>
    %389 = arith.mulf %384, %388 : vector<2x32xf32>
    %c0_123 = arith.constant 0 : index
    %c0_124 = arith.constant 0 : index
    %390 = vector.load %arg12[%c0_123, %c0_124] : memref<32x128xf32, #tpu.memory_space<vmem>>, vector<32x128xf32>
    %cst_125 = arith.constant dense<0.000000e+00> : vector<2x128xf32>
    %391 = tpu.matmul %389, %390, %cst_125 {dimension_numbers = #tpu.dot_dimension_numbers<[1], [0], [0], [1], [0, 0, 1, 1], [], []>} : vector<2x32xf32>, vector<32x128xf32>, vector<2x128xf32> -> vector<2x128xf32>
    %c0_126 = arith.constant 0 : index
    %c0_127 = arith.constant 0 : index
    %392 = vector.load %arg13[%c0_126, %c0_127] : memref<32x128xf32, #tpu.memory_space<vmem>>, vector<32x128xf32>
    %cst_128 = arith.constant dense<0.000000e+00> : vector<2x128xf32>
    %393 = tpu.matmul %371, %392, %cst_128 {dimension_numbers = #tpu.dot_dimension_numbers<[1], [0], [0], [1], [0, 0, 1, 1], [], []>} : vector<2x32xf32>, vector<32x128xf32>, vector<2x128xf32> -> vector<2x128xf32>
    %394 = arith.addf %391, %393 : vector<2x128xf32>
    %c0_129 = arith.constant 0 : index
    %c0_130 = arith.constant 0 : index
    %395 = vector.load %arg14[%c0_129, %c0_130] : memref<1x128xf32, #tpu.memory_space<vmem>>, vector<1x128xf32>
    %396 = vector.broadcast %395 : vector<1x128xf32> to vector<2x128xf32>
    %397 = arith.addf %394, %396 : vector<2x128xf32>
    %398 = arith.negf %397 : vector<2x128xf32>
    %399 = math.exp %398 : vector<2x128xf32>
    %cst_131 = arith.constant 1.000000e+00 : f32
    %400 = vector.broadcast %cst_131 : f32 to vector<2x128xf32>
    %401 = arith.addf %400, %399 : vector<2x128xf32>
    %402 = arith.divf %400, %401 : vector<2x128xf32>
    %403 = math.tanh %397 : vector<2x128xf32>
    %404 = vector.extract_strided_slice %402 {offsets = [0, 0], sizes = [2, 32], strides = [1, 1]} : vector<2x128xf32> to vector<2x32xf32>
    %405 = vector.extract_strided_slice %402 {offsets = [0, 32], sizes = [2, 32], strides = [1, 1]} : vector<2x128xf32> to vector<2x32xf32>
    %406 = vector.extract_strided_slice %403 {offsets = [0, 64], sizes = [2, 32], strides = [1, 1]} : vector<2x128xf32> to vector<2x32xf32>
    %407 = vector.extract_strided_slice %402 {offsets = [0, 96], sizes = [2, 32], strides = [1, 1]} : vector<2x128xf32> to vector<2x32xf32>
    %408 = arith.mulf %405, %369 : vector<2x32xf32>
    %409 = arith.mulf %404, %406 : vector<2x32xf32>
    %410 = arith.addf %408, %409 : vector<2x32xf32>
    %411 = math.tanh %410 : vector<2x32xf32>
    %412 = arith.mulf %407, %411 : vector<2x32xf32>
    %c0_132 = arith.constant 0 : index
    %c0_133 = arith.constant 0 : index
    %413 = vector.load %arg10[%c0_132, %c0_133] : memref<32x128xf32, #tpu.memory_space<vmem>>, vector<32x128xf32>
    %cst_134 = arith.constant dense<0.000000e+00> : vector<2x128xf32>
    %414 = tpu.matmul %389, %413, %cst_134 {dimension_numbers = #tpu.dot_dimension_numbers<[1], [0], [0], [1], [0, 0, 1, 1], [], []>} : vector<2x32xf32>, vector<32x128xf32>, vector<2x128xf32> -> vector<2x128xf32>
    %415 = arith.addf %150, %414 : vector<2x128xf32>
    %416 = arith.negf %415 : vector<2x128xf32>
    %417 = math.exp %416 : vector<2x128xf32>
    %cst_135 = arith.constant 1.000000e+00 : f32
    %418 = vector.broadcast %cst_135 : f32 to vector<2x128xf32>
    %419 = arith.addf %418, %417 : vector<2x128xf32>
    %420 = arith.divf %418, %419 : vector<2x128xf32>
    %421 = math.tanh %415 : vector<2x128xf32>
    %422 = vector.extract_strided_slice %420 {offsets = [0, 0], sizes = [2, 32], strides = [1, 1]} : vector<2x128xf32> to vector<2x32xf32>
    %423 = vector.extract_strided_slice %420 {offsets = [0, 32], sizes = [2, 32], strides = [1, 1]} : vector<2x128xf32> to vector<2x32xf32>
    %424 = vector.extract_strided_slice %421 {offsets = [0, 64], sizes = [2, 32], strides = [1, 1]} : vector<2x128xf32> to vector<2x32xf32>
    %425 = vector.extract_strided_slice %420 {offsets = [0, 96], sizes = [2, 32], strides = [1, 1]} : vector<2x128xf32> to vector<2x32xf32>
    %426 = arith.mulf %423, %387 : vector<2x32xf32>
    %427 = arith.mulf %422, %424 : vector<2x32xf32>
    %428 = arith.addf %426, %427 : vector<2x32xf32>
    %429 = math.tanh %428 : vector<2x32xf32>
    %430 = arith.mulf %425, %429 : vector<2x32xf32>
    %c0_136 = arith.constant 0 : index
    %c0_137 = arith.constant 0 : index
    %431 = vector.load %arg12[%c0_136, %c0_137] : memref<32x128xf32, #tpu.memory_space<vmem>>, vector<32x128xf32>
    %cst_138 = arith.constant dense<0.000000e+00> : vector<2x128xf32>
    %432 = tpu.matmul %430, %431, %cst_138 {dimension_numbers = #tpu.dot_dimension_numbers<[1], [0], [0], [1], [0, 0, 1, 1], [], []>} : vector<2x32xf32>, vector<32x128xf32>, vector<2x128xf32> -> vector<2x128xf32>
    %c0_139 = arith.constant 0 : index
    %c0_140 = arith.constant 0 : index
    %433 = vector.load %arg13[%c0_139, %c0_140] : memref<32x128xf32, #tpu.memory_space<vmem>>, vector<32x128xf32>
    %cst_141 = arith.constant dense<0.000000e+00> : vector<2x128xf32>
    %434 = tpu.matmul %412, %433, %cst_141 {dimension_numbers = #tpu.dot_dimension_numbers<[1], [0], [0], [1], [0, 0, 1, 1], [], []>} : vector<2x32xf32>, vector<32x128xf32>, vector<2x128xf32> -> vector<2x128xf32>
    %435 = arith.addf %432, %434 : vector<2x128xf32>
    %c0_142 = arith.constant 0 : index
    %c0_143 = arith.constant 0 : index
    %436 = vector.load %arg14[%c0_142, %c0_143] : memref<1x128xf32, #tpu.memory_space<vmem>>, vector<1x128xf32>
    %437 = vector.broadcast %436 : vector<1x128xf32> to vector<2x128xf32>
    %438 = arith.addf %435, %437 : vector<2x128xf32>
    %439 = arith.negf %438 : vector<2x128xf32>
    %440 = math.exp %439 : vector<2x128xf32>
    %cst_144 = arith.constant 1.000000e+00 : f32
    %441 = vector.broadcast %cst_144 : f32 to vector<2x128xf32>
    %442 = arith.addf %441, %440 : vector<2x128xf32>
    %443 = arith.divf %441, %442 : vector<2x128xf32>
    %444 = math.tanh %438 : vector<2x128xf32>
    %445 = vector.extract_strided_slice %443 {offsets = [0, 0], sizes = [2, 32], strides = [1, 1]} : vector<2x128xf32> to vector<2x32xf32>
    %446 = vector.extract_strided_slice %443 {offsets = [0, 32], sizes = [2, 32], strides = [1, 1]} : vector<2x128xf32> to vector<2x32xf32>
    %447 = vector.extract_strided_slice %444 {offsets = [0, 64], sizes = [2, 32], strides = [1, 1]} : vector<2x128xf32> to vector<2x32xf32>
    %448 = vector.extract_strided_slice %443 {offsets = [0, 96], sizes = [2, 32], strides = [1, 1]} : vector<2x128xf32> to vector<2x32xf32>
    %449 = arith.mulf %446, %410 : vector<2x32xf32>
    %450 = arith.mulf %445, %447 : vector<2x32xf32>
    %451 = arith.addf %449, %450 : vector<2x32xf32>
    %452 = math.tanh %451 : vector<2x32xf32>
    %453 = arith.mulf %448, %452 : vector<2x32xf32>
    %c0_145 = arith.constant 0 : index
    %c0_146 = arith.constant 0 : index
    %454 = vector.load %arg10[%c0_145, %c0_146] : memref<32x128xf32, #tpu.memory_space<vmem>>, vector<32x128xf32>
    %cst_147 = arith.constant dense<0.000000e+00> : vector<2x128xf32>
    %455 = tpu.matmul %430, %454, %cst_147 {dimension_numbers = #tpu.dot_dimension_numbers<[1], [0], [0], [1], [0, 0, 1, 1], [], []>} : vector<2x32xf32>, vector<32x128xf32>, vector<2x128xf32> -> vector<2x128xf32>
    %456 = arith.addf %158, %455 : vector<2x128xf32>
    %457 = arith.negf %456 : vector<2x128xf32>
    %458 = math.exp %457 : vector<2x128xf32>
    %cst_148 = arith.constant 1.000000e+00 : f32
    %459 = vector.broadcast %cst_148 : f32 to vector<2x128xf32>
    %460 = arith.addf %459, %458 : vector<2x128xf32>
    %461 = arith.divf %459, %460 : vector<2x128xf32>
    %462 = math.tanh %456 : vector<2x128xf32>
    %463 = vector.extract_strided_slice %461 {offsets = [0, 0], sizes = [2, 32], strides = [1, 1]} : vector<2x128xf32> to vector<2x32xf32>
    %464 = vector.extract_strided_slice %461 {offsets = [0, 32], sizes = [2, 32], strides = [1, 1]} : vector<2x128xf32> to vector<2x32xf32>
    %465 = vector.extract_strided_slice %462 {offsets = [0, 64], sizes = [2, 32], strides = [1, 1]} : vector<2x128xf32> to vector<2x32xf32>
    %466 = vector.extract_strided_slice %461 {offsets = [0, 96], sizes = [2, 32], strides = [1, 1]} : vector<2x128xf32> to vector<2x32xf32>
    %467 = arith.mulf %464, %428 : vector<2x32xf32>
    %468 = arith.mulf %463, %465 : vector<2x32xf32>
    %469 = arith.addf %467, %468 : vector<2x32xf32>
    %470 = math.tanh %469 : vector<2x32xf32>
    %471 = arith.mulf %466, %470 : vector<2x32xf32>
    %c0_149 = arith.constant 0 : index
    %c0_150 = arith.constant 0 : index
    %472 = vector.load %arg12[%c0_149, %c0_150] : memref<32x128xf32, #tpu.memory_space<vmem>>, vector<32x128xf32>
    %cst_151 = arith.constant dense<0.000000e+00> : vector<2x128xf32>
    %473 = tpu.matmul %471, %472, %cst_151 {dimension_numbers = #tpu.dot_dimension_numbers<[1], [0], [0], [1], [0, 0, 1, 1], [], []>} : vector<2x32xf32>, vector<32x128xf32>, vector<2x128xf32> -> vector<2x128xf32>
    %c0_152 = arith.constant 0 : index
    %c0_153 = arith.constant 0 : index
    %474 = vector.load %arg13[%c0_152, %c0_153] : memref<32x128xf32, #tpu.memory_space<vmem>>, vector<32x128xf32>
    %cst_154 = arith.constant dense<0.000000e+00> : vector<2x128xf32>
    %475 = tpu.matmul %453, %474, %cst_154 {dimension_numbers = #tpu.dot_dimension_numbers<[1], [0], [0], [1], [0, 0, 1, 1], [], []>} : vector<2x32xf32>, vector<32x128xf32>, vector<2x128xf32> -> vector<2x128xf32>
    %476 = arith.addf %473, %475 : vector<2x128xf32>
    %c0_155 = arith.constant 0 : index
    %c0_156 = arith.constant 0 : index
    %477 = vector.load %arg14[%c0_155, %c0_156] : memref<1x128xf32, #tpu.memory_space<vmem>>, vector<1x128xf32>
    %478 = vector.broadcast %477 : vector<1x128xf32> to vector<2x128xf32>
    %479 = arith.addf %476, %478 : vector<2x128xf32>
    %480 = arith.negf %479 : vector<2x128xf32>
    %481 = math.exp %480 : vector<2x128xf32>
    %cst_157 = arith.constant 1.000000e+00 : f32
    %482 = vector.broadcast %cst_157 : f32 to vector<2x128xf32>
    %483 = arith.addf %482, %481 : vector<2x128xf32>
    %484 = arith.divf %482, %483 : vector<2x128xf32>
    %485 = math.tanh %479 : vector<2x128xf32>
    %486 = vector.extract_strided_slice %484 {offsets = [0, 0], sizes = [2, 32], strides = [1, 1]} : vector<2x128xf32> to vector<2x32xf32>
    %487 = vector.extract_strided_slice %484 {offsets = [0, 32], sizes = [2, 32], strides = [1, 1]} : vector<2x128xf32> to vector<2x32xf32>
    %488 = vector.extract_strided_slice %485 {offsets = [0, 64], sizes = [2, 32], strides = [1, 1]} : vector<2x128xf32> to vector<2x32xf32>
    %489 = vector.extract_strided_slice %484 {offsets = [0, 96], sizes = [2, 32], strides = [1, 1]} : vector<2x128xf32> to vector<2x32xf32>
    %490 = arith.mulf %487, %451 : vector<2x32xf32>
    %491 = arith.mulf %486, %488 : vector<2x32xf32>
    %492 = arith.addf %490, %491 : vector<2x32xf32>
    %493 = math.tanh %492 : vector<2x32xf32>
    %494 = arith.mulf %489, %493 : vector<2x32xf32>
    %c0_158 = arith.constant 0 : index
    %c0_159 = arith.constant 0 : index
    %495 = vector.load %arg15[%c0_158, %c0_159] : memref<32x2xf32, #tpu.memory_space<vmem>>, vector<32x2xf32>
    %cst_160 = arith.constant dense<0.000000e+00> : vector<2x2xf32>
    %496 = tpu.matmul %494, %495, %cst_160 {dimension_numbers = #tpu.dot_dimension_numbers<[1], [0], [0], [1], [0, 0, 1, 1], [], []>} : vector<2x32xf32>, vector<32x2xf32>, vector<2x2xf32> -> vector<2x2xf32>
    %c0_161 = arith.constant 0 : index
    %c0_162 = arith.constant 0 : index
    %497 = vector.load %arg16[%c0_161, %c0_162] : memref<1x2xf32, #tpu.memory_space<vmem>>, vector<1x2xf32>
    %498 = vector.broadcast %497 : vector<1x2xf32> to vector<2x2xf32>
    %499 = arith.addf %496, %498 : vector<2x2xf32>
    %c0_163 = arith.constant 0 : index
    %c0_164 = arith.constant 0 : index
    %500 = vector.load %arg19[%c0_163, %c0_164] : memref<2x2xf32, #tpu.memory_space<vmem>>, vector<2x2xf32>
    tpu.vector_store %arg19[%c0_163, %c0_164], %499 {strides = array<i32>} : memref<2x2xf32, #tpu.memory_space<vmem>>, vector<2x2xf32>,
    %c0_165 = arith.constant 0 : index
    %c0_166 = arith.constant 0 : index
    %c0_167 = arith.constant 0 : index
    %501 = vector.load %arg20[%c0_165, %c0_166, %c0_167] : memref<2x2x32xf32, #tpu.memory_space<vmem>>, vector<1x2x32xf32>
    %502 = vector.shape_cast %501 : vector<1x2x32xf32> to vector<2x32xf32>
    %503 = vector.shape_cast %471 : vector<2x32xf32> to vector<1x2x32xf32>
    tpu.vector_store %arg20[%c0_165, %c0_166, %c0_167], %503 {strides = array<i32>} : memref<2x2x32xf32, #tpu.memory_space<vmem>>, vector<1x2x32xf32>,
    %c1_168 = arith.constant 1 : index
    %c0_169 = arith.constant 0 : index
    %c0_170 = arith.constant 0 : index
    %504 = vector.load %arg20[%c1_168, %c0_169, %c0_170] : memref<2x2x32xf32, #tpu.memory_space<vmem>>, vector<1x2x32xf32>
    %505 = vector.shape_cast %504 : vector<1x2x32xf32> to vector<2x32xf32>
    %506 = vector.shape_cast %494 : vector<2x32xf32> to vector<1x2x32xf32>
    tpu.vector_store %arg20[%c1_168, %c0_169, %c0_170], %506 {strides = array<i32>} : memref<2x2x32xf32, #tpu.memory_space<vmem>>, vector<1x2x32xf32>,
    %c0_171 = arith.constant 0 : index
    %c0_172 = arith.constant 0 : index
    %c0_173 = arith.constant 0 : index
    %507 = vector.load %arg21[%c0_171, %c0_172, %c0_173] : memref<2x2x32xf32, #tpu.memory_space<vmem>>, vector<1x2x32xf32>
    %508 = vector.shape_cast %507 : vector<1x2x32xf32> to vector<2x32xf32>
    %509 = vector.shape_cast %469 : vector<2x32xf32> to vector<1x2x32xf32>
    tpu.vector_store %arg21[%c0_171, %c0_172, %c0_173], %509 {strides = array<i32>} : memref<2x2x32xf32, #tpu.memory_space<vmem>>, vector<1x2x32xf32>,
    %c1_174 = arith.constant 1 : index
    %c0_175 = arith.constant 0 : index
    %c0_176 = arith.constant 0 : index
    %510 = vector.load %arg21[%c1_174, %c0_175, %c0_176] : memref<2x2x32xf32, #tpu.memory_space<vmem>>, vector<1x2x32xf32>
    %511 = vector.shape_cast %510 : vector<1x2x32xf32> to vector<2x32xf32>
    %512 = vector.shape_cast %492 : vector<2x32xf32> to vector<1x2x32xf32>
    tpu.vector_store %arg21[%c1_174, %c0_175, %c0_176], %512 {strides = array<i32>} : memref<2x2x32xf32, #tpu.memory_space<vmem>>, vector<1x2x32xf32>,
    return
  }
}

</mosaic_0001>

<bundles_post_ra>
// kernel: deepconvlstm_forward.1
= control target key start
LH: loop header
LB: loop body
LE: loop exit
PB: predicated region body
PF: predicated region fallthrough
CT: control target
= control target key end

     0   :  { %s5831_s0 = inlined_call_operand.hbm [shape: f32[2,4,24], index: 0, kind: input, shape index: {}]   ;;  %s5832_s1 = inlined_call_operand.vmem [shape: f32[16,20], index: 1, kind: input, shape index: {}]   ;;  %s5833_s2 = inlined_call_operand.vmem [shape: f32[16,1], index: 2, kind: input, shape index: {}]   ;;  %s5834_s3 = inlined_call_operand.vmem [shape: f32[16,80], index: 3, kind: input, shape index: {}]   ;;  %s5835_s4 = inlined_call_operand.vmem [shape: f32[16,1], index: 4, kind: input, shape index: {}]   ;;  %s5836_s5 = inlined_call_operand.hbm [shape: f32[16,80], index: 5, kind: input, shape index: {}]   ;;  %s5837_s6 = inlined_call_operand.vmem [shape: f32[16,1], index: 6, kind: input, shape index: {}]   ;;  %s5838_s7 = inlined_call_operand.vmem [shape: f32[16,80], index: 7, kind: input, shape index: {}]   ;;  %s5839_s8 = inlined_call_operand.vmem [shape: f32[16,1], index: 8, kind: input, shape index: {}]   ;;  %s5840_s9 = inlined_call_operand.vmem [shape: f32[8,256], index: 9, kind: input, shape index: {}]   ;;  %s5841_s10 = inlined_call_operand.vmem [shape: f32[32,128], index: 10, kind: input, shape index: {}]   ;;  %s5842_s11 = inlined_call_operand.hbm [shape: f32[1,128], index: 11, kind: input, shape index: {}]   ;;  %s5843_s12 = inlined_call_operand.vmem [shape: f32[32,128], index: 12, kind: input, shape index: {}]   ;;  %s5844_s13 = inlined_call_operand.vmem [shape: f32[32,128], index: 13, kind: input, shape index: {}]   ;;  %s5845_s14 = inlined_call_operand.hbm [shape: f32[1,128], index: 14, kind: input, shape index: {}]   ;;  %s5846_s15 = inlined_call_operand.vmem [shape: f32[32,2], index: 15, kind: input, shape index: {}]   ;;  %s5847_s16 = inlined_call_operand.hbm [shape: f32[1,2], index: 16, kind: input, shape index: {}]   ;;  %s5848_s17 = inlined_call_operand.hbm [shape: f32[2,2,32], index: 17, kind: input, shape index: {}]   ;;  %s5849_s18 = inlined_call_operand.hbm [shape: f32[2,2,32], index: 18, kind: input, shape index: {}]   ;;  %s5850_s19 = inlined_call_operand.hbm [shape: f32[2,2], index: 19, kind: output, shape index: {0}]   ;;  %s5851_s20 = inlined_call_operand.hbm [shape: f32[2,2,32], index: 20, kind: output, shape index: {1}]   ;;  %s5852_s21 = inlined_call_operand.hbm [shape: f32[2,2,32], index: 21, kind: output, shape index: {2}]  }
   0x1   :  { %5861 = sst [smem:[#allocation24_spill]] %s5831_s0 }
   0x2   :  { %5862 = sst [smem:[#allocation25_spill]] %s5832_s1 }
   0x3   :  { %5863 = sst [smem:[#allocation26_spill]] %s5833_s2 }
   0x4   :  { %5864 = sst [smem:[#allocation27_spill]] %s5834_s3 }
   0x5   :  { %5865 = sst [smem:[#allocation28_spill]] %s5835_s4 }
   0x6   :  { %5866 = sst [smem:[#allocation29_spill]] %s5836_s5 }
   0x7   :  { %5867 = sst [smem:[#allocation30_spill]] %s5850_s19 }
   0x8   :  { %5868 = sst [smem:[#allocation31_spill]] %s5852_s21 }
   0x9   :  { %27 = vsyncpa [#allocation3], 0 }
   0xa   :  { %28 = vsyncpa [#allocation6], 0 }
   0xb   :  { %29 = vsyncpa [#allocation9], 0 }
   0xc   :  { %30 = vsyncpa [#allocation12], 0 }
   0xd   :  { %31 = vsyncpa [#allocation4], 0 }
   0xe   :  { %32 = vsyncpa [#allocation16], 0  ;;  %s4954_s2 = smov [#allocation5]   ;;  %s5869_s3 = sld [smem:[#allocation29_spill]] }
   0xf   :  { %s58_s25 = sshll.u32 %s4954_s2, 4  ;;  %s59_s25 = int_to_ptr.vmem [resolvable:$true] %s58_s25 }
  0x14   :  { %s4722_s28 = scalar_lea.hbm %s5869_s3, 256 }
  0x15   :  { %p4723_p0 = scmp.ne.s32.totalorder %s5869_s3, %s4722_s28  ;;  %p4726_p1 = scmp.lt.u32.totalorder %s4722_s28, %s5869_s3 }
  0x17   :  { %p4728_p2 = pnand %p4726_p1, %p4723_p0 }
  0x19   :  { %4731 = shalt.err (!%p4728_p2)
}
  0x1a   :  { %s4732_s5 = scalar_lea.vmem %s59_s25, 256  ;;  %p4737_p4 = scmp.lt.s32.totalorder %s59_s25, %s59_s25 }
  0x1b   :  { %p4733_p3 = scmp.ne.s32.totalorder %s59_s25, %s4732_s5  ;;  %p4738_p5 = scmp.lt.s32.totalorder %s4732_s5, %s4732_s5 }
  0x1d   :  { %p4739_p6 = por %p4738_p5, %p4737_p4 }
  0x1f   :  { %p4740_p7 = pnand %p4739_p6, %p4733_p3 }
  0x21   :  { %4743 = shalt.err (!%p4740_p7)
}
  0x22   :  { %s4955_s22 = smov 128   ;;  %s4956_s23 = smov 8  }
  0x23   :  { %64 = dma.hbm_to_vmem [thread:$0]  %s5869_s3, 256, %s59_s25, [#allocation6], %s4955_s22, %s4955_s22, %s4956_s23  }
  0x24   :  { %s4957_s2 = smov [#allocation8]   ;;  %s4958_s27 = smov [#allocation11]  }
  0x25   :  { %s95_s26 = sshll.u32 %s4957_s2, 4  ;;  %s116_s28 = sshll.u32 %s4958_s27, 4  ;;  %s96_s26 = int_to_ptr.vmem [resolvable:$true] %s95_s26  ;;  %s117_s28 = int_to_ptr.vmem [resolvable:$true] %s116_s28 }
  0x26   :  { %s4744_s4 = scalar_lea.hbm %s5845_s14, 16 }
  0x27   :  { %p4745_p8 = scmp.ne.s32.totalorder %s5845_s14, %s4744_s4  ;;  %p4748_p9 = scmp.lt.u32.totalorder %s4744_s4, %s5845_s14 }
  0x29   :  { %p4750_p10 = pnand %p4748_p9, %p4745_p8 }
  0x2b   :  { %4753 = shalt.err (!%p4750_p10)
}
  0x2c   :  { %s4754_s25 = scalar_lea.vmem %s96_s26, 16  ;;  %s4758_s3 = scalar_lea.vmem %s96_s26, 32 }
  0x2d   :  { %p4755_p11 = scmp.ne.s32.totalorder %s96_s26, %s4754_s25  ;;  %p4759_p12 = scmp.lt.s32.totalorder %s96_s26, %s96_s26 }
  0x2e   :  { %p4760_p13 = scmp.lt.s32.totalorder %s4758_s3, %s4754_s25 }
  0x30   :  { %p4761_p0 = por %p4760_p13, %p4759_p12 }
  0x32   :  { %p4762_p1 = pnand %p4761_p0, %p4755_p11 }
  0x34   :  { %4765 = shalt.err (!%p4762_p1)
}
  0x35   :  { %98 = dma.hbm_to_vmem [thread:$0]  %s5845_s14, 16, %s96_s26, [#allocation9]  }
  0x36   :  { %s4766_s19 = scalar_lea.hbm %s5848_s17, 64 }
  0x37   :  { %p4767_p2 = scmp.ne.s32.totalorder %s5848_s17, %s4766_s19  ;;  %p4770_p3 = scmp.lt.u32.totalorder %s4766_s19, %s5848_s17 }
  0x39   :  { %p4772_p4 = pnand %p4770_p3, %p4767_p2 }
  0x3b   :  { %4775 = shalt.err (!%p4772_p4)
}
  0x3c   :  { %s4776_s0 = scalar_lea.vmem %s117_s28, 64  ;;  %p4781_p6 = scmp.lt.s32.totalorder %s117_s28, %s117_s28 }
  0x3d   :  { %p4777_p5 = scmp.ne.s32.totalorder %s117_s28, %s4776_s0  ;;  %p4782_p7 = scmp.lt.s32.totalorder %s4776_s0, %s4776_s0 }
  0x3f   :  { %p4783_p8 = por %p4782_p7, %p4781_p6 }
  0x41   :  { %p4784_p9 = pnand %p4783_p8, %p4777_p5 }
  0x43   :  { %4787 = shalt.err (!%p4784_p9)
}
  0x44   :  { %s4959_s14 = smov 32   ;;  %s4960_s26 = smov 2  }
  0x45   :  { %122 = dma.hbm_to_vmem [thread:$0]  %s5848_s17, 64, %s117_s28, [#allocation12], %s4959_s14, %s4959_s14, %s4960_s26  }
  0x46   :  { %s4961_s5 = smov [#allocation2]   ;;  %s5870_s23 = sld [smem:[#allocation24_spill]] }
  0x47   :  { %s38_s25 = sshll.u32 %s4961_s5, 4  ;;  %s39_s25 = int_to_ptr.vmem [resolvable:$true] %s38_s25 }
  0x4c   :  { %s4788_s1 = scalar_lea.hbm %s5870_s23, 128 }
  0x4d   :  { %p4789_p10 = scmp.ne.s32.totalorder %s5870_s23, %s4788_s1  ;;  %p4792_p11 = scmp.lt.u32.totalorder %s4788_s1, %s5870_s23 }
  0x4f   :  { %p4794_p12 = pnand %p4792_p11, %p4789_p10 }
  0x51   :  { %4797 = shalt.err (!%p4794_p12)
}
  0x52   :  { %s4798_s27 = scalar_lea.vmem %s39_s25, 128  ;;  %p4803_p0 = scmp.lt.s32.totalorder %s39_s25, %s39_s25 }
  0x53   :  { %p4799_p13 = scmp.ne.s32.totalorder %s39_s25, %s4798_s27  ;;  %p4804_p1 = scmp.lt.s32.totalorder %s4798_s27, %s4798_s27 }
  0x55   :  { %p4805_p2 = por %p4804_p1, %p4803_p0 }
  0x57   :  { %p4806_p3 = pnand %p4805_p2, %p4799_p13 }
  0x59   :  { %4809 = shalt.err (!%p4806_p3)
}
  0x5a   :  { %s4962_s17 = smov 64   ;;  %s4963_s28 = smov 4  }
  0x5b   :  { %44 = dma.hbm_to_vmem [thread:$0]  %s5870_s23, 128, %s39_s25, [#allocation3], %s4962_s17, %s4962_s17, %s4963_s28  }
  0x5c   :  { %s4964_s4 = smov [#allocation7]   ;;  %s4965_s5 = smov [#allocation10]  }
  0x5d   :  { %s81_s30 = sshll.u32 %s4964_s4, 4  ;;  %s107_s3 = sshll.u32 %s4965_s5, 4  ;;  %s82_s30 = int_to_ptr.vmem [resolvable:$true] %s81_s30  ;;  %s108_s3 = int_to_ptr.vmem [resolvable:$true] %s107_s3 }
  0x5e   :  { %s4810_s24 = scalar_lea.hbm %s5842_s11, 16 }
  0x5f   :  { %p4811_p4 = scmp.ne.s32.totalorder %s5842_s11, %s4810_s24  ;;  %p4814_p5 = scmp.lt.u32.totalorder %s4810_s24, %s5842_s11 }
  0x61   :  { %p4816_p6 = pnand %p4814_p5, %p4811_p4 }
  0x63   :  { %4819 = shalt.err (!%p4816_p6)
}
  0x64   :  { %s4820_s25 = scalar_lea.vmem %s82_s30, 16  ;;  %s4824_s23 = scalar_lea.vmem %s82_s30, 32 }
  0x65   :  { %p4821_p7 = scmp.ne.s32.totalorder %s82_s30, %s4820_s25  ;;  %p4825_p8 = scmp.lt.s32.totalorder %s82_s30, %s82_s30 }
  0x66   :  { %p4826_p9 = scmp.lt.s32.totalorder %s4824_s23, %s4820_s25 }
  0x68   :  { %p4827_p10 = por %p4826_p9, %p4825_p8 }
  0x6a   :  { %p4828_p11 = pnand %p4827_p10, %p4821_p7 }
  0x6c   :  { %4831 = shalt.err (!%p4828_p11)
}
  0x6d   :  { %84 = dma.hbm_to_vmem [thread:$0]  %s5842_s11, 16, %s82_s30, [#allocation6]  }
  0x6e   :  { %s4832_s5 = scalar_lea.hbm %s5847_s16, 16 }
  0x6f   :  { %p4833_p12 = scmp.ne.s32.totalorder %s5847_s16, %s4832_s5  ;;  %p4836_p13 = scmp.lt.u32.totalorder %s4832_s5, %s5847_s16 }
  0x71   :  { %p4838_p0 = pnand %p4836_p13, %p4833_p12 }
  0x73   :  { %4841 = shalt.err (!%p4838_p0)
}
  0x74   :  { %s4842_s21 = scalar_lea.vmem %s108_s3, 16  ;;  %s4846_s2 = scalar_lea.vmem %s108_s3, 32 }
  0x75   :  { %p4843_p1 = scmp.ne.s32.totalorder %s108_s3, %s4842_s21  ;;  %p4847_p2 = scmp.lt.s32.totalorder %s108_s3, %s108_s3 }
  0x76   :  { %p4848_p3 = scmp.lt.s32.totalorder %s4846_s2, %s4842_s21 }
  0x78   :  { %p4849_p4 = por %p4848_p3, %p4847_p2 }
  0x7a   :  { %p4850_p5 = pnand %p4849_p4, %p4843_p1 }
  0x7c   :  { %4853 = shalt.err (!%p4850_p5)
}
  0x7d   :  { %110 = dma.hbm_to_vmem [thread:$0]  %s5847_s16, 16, %s108_s3, [#allocation9]  }
  0x7e   :  { %s4966_s27 = smov [#allocation13]   ;;  %s4854_s29 = scalar_lea.hbm %s5849_s18, 64 }
  0x7f   :  { %s128_s25 = sshll.u32 %s4966_s27, 4  ;;  %p4855_p6 = scmp.ne.s32.totalorder %s5849_s18, %s4854_s29  ;;  %s129_s25 = int_to_ptr.vmem [resolvable:$true] %s128_s25 }
  0x80   :  { %p4858_p7 = scmp.lt.u32.totalorder %s4854_s29, %s5849_s18 }
  0x82   :  { %p4860_p8 = pnand %p4858_p7, %p4855_p6 }
  0x84   :  { %4863 = shalt.err (!%p4860_p8)
}
  0x85   :  { %s4864_s1 = scalar_lea.vmem %s129_s25, 64  ;;  %p4869_p10 = scmp.lt.s32.totalorder %s129_s25, %s129_s25 }
  0x86   :  { %p4865_p9 = scmp.ne.s32.totalorder %s129_s25, %s4864_s1  ;;  %p4870_p11 = scmp.lt.s32.totalorder %s4864_s1, %s4864_s1 }
  0x88   :  { %p4871_p12 = por %p4870_p11, %p4869_p10 }
  0x8a   :  { %p4872_p13 = pnand %p4871_p12, %p4865_p9 }
  0x8c   :  { %4875 = shalt.err (!%p4872_p13)
}
  0x8d   :  { %134 = dma.hbm_to_vmem [thread:$0]  %s5849_s18, 64, %s129_s25, [#allocation12], %s4959_s14, %s4959_s14, %s4960_s26  }
  0x8e   :  { %4942 = dma.done.wait [#allocation3], 128  }
  0x8f   :  { %4943 = vsyncadd [#allocation3], 4294967168 }
  0x90   :  { %4944 = dma.done.wait [#allocation6], 272  }
  0x91   :  { %4945 = vsyncadd [#allocation6], 4294967024 }
  0x92   :  { %4946 = dma.done.wait [#allocation9], 32  }
  0x93   :  { %4947 = vsyncadd [#allocation9], 4294967264 }
  0x94   :  { %4948 = dma.done.wait [#allocation12], 128  }
  0x95   :  { %4949 = vsyncadd [#allocation12], 4294967168  ;;  %v158_v0 = vld [vmem:[#allocation2 + $0x4] sm:$0xf]  ;;  %s4967_s24 = smov 24   ;;  %vm163_vm0 = vcmask 195584  }
  0x96   :  { %160 = vrot.lane.b32.xlu0 %v158_v0, %s4967_s24  ;;  %v156_v1 = vld [vmem:[#allocation2] sm:$0xf]  ;;  %s4968_s19 = smov 123   ;;  %s4969_s21 = smov 127   ;;  %vm169_vm1 = vcmask 162816   ;;  %v4974_v5 = vmov 0  }
  0x97   :  { %s4970_s18 = smov 125   ;;  %s4971_s2 = smov 121   ;;  %4408 = vset.pattern.permute.xlu0 %v4974_v5  ;;  %4407 = vset.pattern.permute.xlu1 %v4974_v5  ;;  %vm202_vm2 = vcmask 1043456   ;;  %vm378_vm3 = vcmask 654336   ;;  %vm311_vm4 = vcmask 130048   ;;  %vm468_vm5 = vcmask 97280  }
  0x98   :  { %s5871_s27 = sld [smem:[#allocation25_spill]]  ;;  %s4972_s25 = smov 124   ;;  %vm624_vm6 = vcmask 64512   ;;  %vm4979_vm7 = vmmov 0   ;;  %vm914_vm8 = vcmask 261120   ;;  %vm1134_vm9 = vcmask 1041409  }
  0x99   :  { %s4973_s23 = smov 126   ;;  %s4975_s28 = smov 122   ;;  %vm3503_vm10 = vcmask 1047559   ;;  %vm3508_vm11 = vcmask 261126   ;;  %vm3512_vm12 = vcmask 254976  }
  0x9a   :  { %s4976_s29 = smov 120   ;;  %s5872_s5 = sld [smem:[#allocation26_spill]] }
  0x9b   :  { %s5873_s30 = sld [smem:[#allocation28_spill]]  ;;  %s5874_s4 = sld [smem:[#allocation27_spill]] }
  0x9c   :  { %s4980_s3 = smov 96  }
  0x9e   :  { %v205_v4 = vld [vmem:[%s5871_s27] sm:$0xff]  ;;  %v206_v26 = vld [vmem:[%s5871_s27 + $0x8] sm:$0xff] }
  0x9f   :  { %3814 = vmatprep.mubr.msk.f32.mxu0 %vm169_vm1, %v205_v4 }
  0xa0   :  { %v208_v6 = vld [vmem:[%s5872_s5 + $0x8] sm:$0xff]  ;;  %v207_v7 = vld [vmem:[%s5872_s5] sm:$0xff] }
  0xa1   :  { %v366_v34 = vld [vmem:[%s5873_s30] sm:$0xff]  ;;  %v367_v36 = vld [vmem:[%s5873_s30 + $0x8] sm:$0xff] }
  0xa2   :  { %v364_v35 = vld [vmem:[%s5874_s4] sm:$0xff] }
  0xa3   :  { %3837 = vmatprep.mubr.msk.f32.mxu1 %vm378_vm3, %v364_v35 }
 0x108   :  { %v161_v2 = vpop.permute.xlu0 %160 }
 0x109   :  { %v164_v3 = vsel %vm163_vm0, %v156_v1, %v161_v2 }
 0x10a   :  { %174 = vrot.lane.b32.xlu1 %v164_v3, %s4968_s19  ;;  %171 = vrot.lane.b32.xlu0 %v164_v3, %s4969_s21 }
 0x10e   :  { %185 = vrot.lane.b32.xlu1 %v164_v3, %s4970_s18  ;;  %188 = vrot.lane.b32.xlu0 %v164_v3, %s4971_s2 }
 0x112   :  { %166 = vrot.lane.b32.xlu1 %v164_v3, %s4972_s25  ;;  %178 = vrot.lane.b32.xlu0 %v164_v3, %s4973_s23 }
 0x116   :  { %181 = vrot.lane.b32.xlu1 %v164_v3, %s4975_s28  ;;  %192 = vrot.lane.b32.xlu0 %v164_v3, %s4976_s29 }
 0x11a   :  { %216 = vperm.xlu0 %4408, %v208_v6   ;;  %211 = vperm.xlu1 %4407, %v207_v7  }
 0x17c   :  { %v175_v8 = vpop.permute.xlu1 %174  ;;  %v172_v9 = vpop.permute.xlu0 %171 }
 0x17d   :  { %v177_v13 = vsel %vm169_vm1, %v172_v9, %v175_v8 }
 0x17e   :  { %v197_v17 = vrot.slane %v177_v13, 4 }
 0x180   :  { %v186_v10 = vpop.permute.xlu1 %185  ;;  %v189_v11 = vpop.permute.xlu0 %188 }
 0x181   :  { %v191_v14 = vsel %vm169_vm1, %v186_v10, %v189_v11 }
 0x182   :  { %v200_v18 = vrot.slane %v191_v14, 4 }
 0x184   :  { %v167_v12 = vpop.permute.xlu1 %166  ;;  %v179_v15 = vpop.permute.xlu0 %178 }
 0x185   :  { %v170_v16 = vsel %vm169_vm1, %v164_v3, %v167_v12 }
 0x186   :  { %v203_v21 = vsel %vm202_vm2, %v170_v16, %v197_v17 }
 0x188   :  { %v182_v19 = vpop.permute.xlu1 %181  ;;  %v193_v23 = vpop.permute.xlu0 %192 }
 0x189   :  { %v184_v20 = vsel %vm169_vm1, %v179_v15, %v182_v19  ;;  %v195_v25 = vsel %vm169_vm1, %v167_v12, %v193_v23  ;;  %v365_v12 = vld [vmem:[%s5874_s4 + $0x8] sm:$0xff] }
 0x18a   :  { %v204_v22 = vsel %vm202_vm2, %v184_v20, %v200_v18  ;;  %v521_v20 = vld [vmem:[#allocation5] sm:$0xff] }
 0x18b   :  { %v4161_v24 = vpack.c.bf16 %v204_v22, %v203_v21  ;;  %v524_v21 = vld [vmem:[%s5837_s6 + $0x8] sm:$0xff]  ;;  %v523_v22 = vld [vmem:[%s5837_s6] sm:$0xff] }
 0x18d   :  { %4162 = vmatprep.subr.bf16.mxu0 %v4161_v24 }
 0x18e   :  { %4164 = vmatpush3.bf16.msra.mxu0 %v4161_v24 }
 0x18f   :  { %3812 = vmatprep.subr.msk.mxu0 %vm202_vm2, %v195_v25 }
 0x192   :  { %3813 = vmatpush3.msk.msra.mxu0 %vm202_vm2, %v195_v25 }
 0x193   :  { %3815 = vmatmul.mubr.msk.f32.vlgmr.msra.gmra.mrb[0].mxu0 %vm169_vm1, %v206_v26 }
 0x194   :  { %3860 = vmatprep.mubr.msk.f32.mxu0 %vm378_vm3, %v521_v20 }
 0x199   :  { %v217_v27 = vpop.permute.xlu0 %216  ;;  %v212_v28 = vpop.permute.xlu1 %211 }
 0x266   :  { %v3816_v29 = vpop.f32.mrb[0].mxu0 }
 0x267   :  { %v300_v30 = vadd.f32 %v3816_v29, %v217_v27  ;;  %v294_v31 = vpop.f32.mrb[1].mxu0 }
 0x268   :  { %v295_v32 = vadd.f32 %v294_v31, %v212_v28 }
 0x26a   :  { %v4419_v33 = vpack.i.bf16 %v300_v30, %v295_v32 }
 0x26c   :  { %4420 = vrot.lane.b32.xlu0 %v4419_v33, %s4968_s19  ;;  %4410 = vrot.lane.b32.xlu1 %v4419_v33, %s4972_s25 }
 0x270   :  { %4430 = vrot.lane.b32.xlu0 %v4419_v33, %s4975_s28  ;;  %4415 = vrot.lane.b32.xlu1 %v4419_v33, %s4969_s21 }
 0x274   :  { %4440 = vrot.lane.b32.xlu0 %v4419_v33, %s4971_s2  ;;  %4425 = vrot.lane.b32.xlu1 %v4419_v33, %s4973_s23 }
 0x278   :  { %370 = vperm.xlu0 %4408, %v366_v34   ;;  %4435 = vrot.lane.b32.xlu1 %v4419_v33, %s4970_s18 }
 0x27c   :  { %4445 = vrot.lane.b32.xlu1 %v4419_v33, %s4976_s29 }
 0x280   :  { %375 = vperm.xlu1 %4407, %v367_v36  }
 0x2de   :  { %v4421_v37 = vpop.permute.xlu0 %4420  ;;  %v4411_v38 = vpop.permute.xlu1 %4410 }
 0x2df   :  { %v4413_v39 = vunpack.i.h.bf16 %v4411_v38  ;;  %v4412_v40 = vunpack.i.l.bf16 %v4411_v38  ;;  %v4423_v46 = vunpack.i.h.bf16 %v4421_v37  ;;  %v4422_v47 = vunpack.i.l.bf16 %v4421_v37 }
 0x2e1   :  { %v312_v41 = vsel %vm311_vm4, %v295_v32, %v4412_v40  ;;  %v313_v42 = vsel %vm311_vm4, %v300_v30, %v4413_v39 }
 0x2e2   :  { %v4431_v43 = vpop.permute.xlu0 %4430  ;;  %v4416_v44 = vpop.permute.xlu1 %4415  ;;  %v4165_v45 = vpack.c.bf16 %v313_v42, %v312_v41 }
 0x2e3   :  { %v4418_v48 = vunpack.i.h.bf16 %v4416_v44  ;;  %v4417_v49 = vunpack.i.l.bf16 %v4416_v44  ;;  %v4433_v54 = vunpack.i.h.bf16 %v4431_v43  ;;  %v4432_v55 = vunpack.i.l.bf16 %v4431_v43 }
 0x2e4   :  { %4166 = vmatprep.subr.bf16.mxu1 %v4165_v45 }
 0x2e5   :  { %4168 = vmatpush3.bf16.msra.mxu1 %v4165_v45  ;;  %v326_v50 = vsel %vm311_vm4, %v4417_v49, %v4422_v47  ;;  %v327_v51 = vsel %vm311_vm4, %v4418_v48, %v4423_v46 }
 0x2e6   :  { %v4426_v52 = vpop.permute.xlu1 %4425  ;;  %v4169_v53 = vpack.c.bf16 %v327_v51, %v326_v50  ;;  %v4441_v58 = vpop.permute.xlu0 %4440 }
 0x2e7   :  { %v4428_v56 = vunpack.i.h.bf16 %v4426_v52  ;;  %v4427_v57 = vunpack.i.l.bf16 %v4426_v52  ;;  %v4443_v63 = vunpack.i.h.bf16 %v4441_v58  ;;  %v4442_v0 = vunpack.i.l.bf16 %v4441_v58 }
 0x2e8   :  { %4170 = vmatprep.subr.bf16.mxu1 %v4169_v53 }
 0x2e9   :  { %4172 = vmatpush3.bf16.msra.mxu1 %v4169_v53  ;;  %v340_v59 = vsel %vm311_vm4, %v4427_v57, %v4432_v55  ;;  %v341_v60 = vsel %vm311_vm4, %v4428_v56, %v4433_v54 }
 0x2ea   :  { %v4436_v61 = vpop.permute.xlu1 %4435  ;;  %v4173_v62 = vpack.c.bf16 %v341_v60, %v340_v59 }
 0x2eb   :  { %v4438_v1 = vunpack.i.h.bf16 %v4436_v61  ;;  %v4437_v2 = vunpack.i.l.bf16 %v4436_v61 }
 0x2ec   :  { %4174 = vmatprep.subr.bf16.mxu1 %v4173_v62 }
 0x2ed   :  { %4176 = vmatpush3.bf16.msra.mxu1 %v4173_v62  ;;  %v354_v3 = vsel %vm311_vm4, %v4437_v2, %v4442_v0  ;;  %v355_v4 = vsel %vm311_vm4, %v4438_v1, %v4443_v63  ;;  %v522_v62 = vld [vmem:[#allocation5 + $0x8] sm:$0xff] }
 0x2ee   :  { %v4446_v5 = vpop.permute.xlu1 %4445  ;;  %v4177_v6 = vpack.c.bf16 %v355_v4, %v354_v3 }
 0x2ef   :  { %v4448_v7 = vunpack.i.h.bf16 %v4446_v5  ;;  %v4447_v8 = vunpack.i.l.bf16 %v4446_v5 }
 0x2f0   :  { %4178 = vmatprep.subr.bf16.mxu1 %v4177_v6 }
 0x2f1   :  { %4180 = vmatpush3.bf16.msra.mxu1 %v4177_v6  ;;  %v362_v9 = vsel %vm311_vm4, %v4412_v40, %v4447_v8  ;;  %v363_v10 = vsel %vm311_vm4, %v4413_v39, %v4448_v7  ;;  %v677_v6 = vld [vmem:[%s5838_s7] sm:$0xff]  ;;  %v680_v7 = vld [vmem:[%s5839_s8 + $0x8] sm:$0xff] }
 0x2f2   :  { %v4181_v11 = vpack.c.bf16 %v363_v10, %v362_v9  ;;  %v679_v8 = vld [vmem:[%s5839_s8] sm:$0xff] }
 0x2f4   :  { %4182 = vmatprep.subr.bf16.mxu1 %v4181_v11 }
 0x2f5   :  { %4184 = vmatpush3.bf16.msra.mxu1 %v4181_v11 }
 0x2f7   :  { %v371_v15 = vpop.permute.xlu0 %370 }
 0x2f8   :  { %3838 = vmatmul.mubr.msk.f32.vlgmr.msra.gmra.mrb[0].mxu1 %vm378_vm3, %v365_v12 }
 0x2f9   :  { %3883 = vmatprep.mubr.msk.f32.mxu1 %vm378_vm3, %v677_v6  ;;  %v5347_v6 = vld [vmem:[#allocation7] ss:$0 sm:$0xff] }
 0x2ff   :  { %v376_v13 = vpop.permute.xlu1 %375 }
 0x3cb   :  { %v3839_v14 = vpop.f32.mrb[0].mxu1 }
 0x3cc   :  { %v457_v16 = vadd.f32 %v3839_v14, %v376_v13  ;;  %v451_v17 = vpop.f32.mrb[1].mxu1 }
 0x3cd   :  { %v452_v18 = vadd.f32 %v451_v17, %v371_v15 }
 0x3cf   :  { %v4454_v19 = vpack.i.bf16 %v457_v16, %v452_v18 }
 0x3d1   :  { %4455 = vrot.lane.b32.xlu1 %v4454_v19, %s4969_s21  ;;  %4450 = vrot.lane.b32.xlu0 %v4454_v19, %s4972_s25 }
 0x3d5   :  { %4465 = vrot.lane.b32.xlu1 %v4454_v19, %s4973_s23  ;;  %4460 = vrot.lane.b32.xlu0 %v4454_v19, %s4968_s19 }
 0x3d9   :  { %4475 = vrot.lane.b32.xlu1 %v4454_v19, %s4970_s18  ;;  %4470 = vrot.lane.b32.xlu0 %v4454_v19, %s4975_s28 }
 0x3dd   :  { %4485 = vrot.lane.b32.xlu1 %v4454_v19, %s4976_s29  ;;  %4480 = vrot.lane.b32.xlu0 %v4454_v19, %s4971_s2 }
 0x3e1   :  { %532 = vperm.xlu1 %4407, %v524_v21   ;;  %527 = vperm.xlu0 %4408, %v523_v22  }
 0x443   :  { %v4456_v23 = vpop.permute.xlu1 %4455  ;;  %v4451_v24 = vpop.permute.xlu0 %4450 }
 0x444   :  { %v4453_v25 = vunpack.i.h.bf16 %v4451_v24  ;;  %v4452_v26 = vunpack.i.l.bf16 %v4451_v24  ;;  %v4458_v32 = vunpack.i.h.bf16 %v4456_v23  ;;  %v4457_v33 = vunpack.i.l.bf16 %v4456_v23 }
 0x446   :  { %v469_v27 = vsel %vm468_vm5, %v452_v18, %v4452_v26  ;;  %v470_v28 = vsel %vm468_vm5, %v457_v16, %v4453_v25 }
 0x447   :  { %v4466_v29 = vpop.permute.xlu1 %4465  ;;  %v4461_v30 = vpop.permute.xlu0 %4460  ;;  %v4185_v31 = vpack.c.bf16 %v470_v28, %v469_v27 }
 0x448   :  { %v4463_v34 = vunpack.i.h.bf16 %v4461_v30  ;;  %v4462_v35 = vunpack.i.l.bf16 %v4461_v30  ;;  %v4468_v41 = vunpack.i.h.bf16 %v4466_v29  ;;  %v4467_v42 = vunpack.i.l.bf16 %v4466_v29 }
 0x449   :  { %4186 = vmatprep.subr.bf16.mxu0 %v4185_v31 }
 0x44a   :  { %4188 = vmatpush3.bf16.msra.mxu0 %v4185_v31  ;;  %v483_v36 = vsel %vm468_vm5, %v4457_v33, %v4462_v35  ;;  %v484_v37 = vsel %vm468_vm5, %v4458_v32, %v4463_v34 }
 0x44b   :  { %v4476_v38 = vpop.permute.xlu1 %4475  ;;  %v4471_v39 = vpop.permute.xlu0 %4470  ;;  %v4189_v40 = vpack.c.bf16 %v484_v37, %v483_v36 }
 0x44c   :  { %v4473_v43 = vunpack.i.h.bf16 %v4471_v39  ;;  %v4472_v44 = vunpack.i.l.bf16 %v4471_v39  ;;  %v4478_v47 = vunpack.i.h.bf16 %v4476_v38  ;;  %v4477_v48 = vunpack.i.l.bf16 %v4476_v38 }
 0x44d   :  { %4190 = vmatprep.subr.bf16.mxu0 %v4189_v40 }
 0x44e   :  { %4192 = vmatpush3.bf16.msra.mxu0 %v4189_v40  ;;  %v497_v45 = vsel %vm468_vm5, %v4467_v42, %v4472_v44  ;;  %v498_v46 = vsel %vm468_vm5, %v4468_v41, %v4473_v43 }
 0x44f   :  { %v4486_v49 = vpop.permute.xlu1 %4485  ;;  %v4481_v50 = vpop.permute.xlu0 %4480  ;;  %v4193_v51 = vpack.c.bf16 %v498_v46, %v497_v45 }
 0x450   :  { %v4488_v52 = vunpack.i.h.bf16 %v4486_v49  ;;  %v4487_v53 = vunpack.i.l.bf16 %v4486_v49  ;;  %v4483_v54 = vunpack.i.h.bf16 %v4481_v50  ;;  %v4482_v55 = vunpack.i.l.bf16 %v4481_v50  ;;  %v779_v49 = vld [vmem:[%s5840_s9 + $0x8] sm:$0xff]  ;;  %v778_v50 = vld [vmem:[%s5840_s9] sm:$0xff] }
 0x451   :  { %4194 = vmatprep.subr.bf16.mxu0 %v4193_v51 }
 0x452   :  { %4196 = vmatpush3.bf16.msra.mxu0 %v4193_v51  ;;  %v511_v56 = vsel %vm468_vm5, %v4477_v48, %v4482_v55  ;;  %v512_v57 = vsel %vm468_vm5, %v4478_v47, %v4483_v54  ;;  %v519_v58 = vsel %vm468_vm5, %v4452_v26, %v4487_v53  ;;  %v520_v59 = vsel %vm468_vm5, %v4453_v25, %v4488_v52  ;;  %v678_v48 = vld [vmem:[%s5838_s7 + $0x8] sm:$0xff]  ;;  %v910_v53 = vld [vmem:[%s5841_s10] sm:$0xff] }
 0x453   :  { %v4197_v60 = vpack.c.bf16 %v512_v57, %v511_v56  ;;  %v4201_v61 = vpack.c.bf16 %v520_v59, %v519_v58  ;;  %v4977_v51 = vmov 0.0   ;;  %v4978_v52 = vmov 0.0|0.0   ;;  %v911_v54 = vld [vmem:[%s5841_s10 + $0x8] sm:$0xff] }
 0x454   :  { %v5319_v58 = vpack.c.bf16 %v911_v54, %v910_v53  ;;  %v1057_v54 = vld [vmem:[%s5844_s13 + $0x18] sm:$0xff] }
 0x455   :  { %4198 = vmatprep.subr.bf16.mxu0 %v4197_v60 }
 0x456   :  { %4200 = vmatpush3.bf16.msra.mxu0 %v4197_v60  ;;  %v912_v60 = vld [vmem:[%s5841_s10 + $0x10] sm:$0xff] }
 0x457   :  { %4202 = vmatprep.subr.bf16.mxu0 %v4201_v61 }
 0x45a   :  { %4204 = vmatpush3.bf16.msra.mxu0 %v4201_v61  ;;  %v913_v61 = vld [vmem:[%s5841_s10 + $0x18] sm:$0xff] }
 0x45b   :  { %788 = vmatprep.subr.mxu0 %v779_v49 }
 0x45d   :  { %3861 = vmatmul.mubr.msk.f32.vlgmr.msra.gmra.mrb[2].mxu0 %vm378_vm3, %v522_v62 }
 0x45e   :  { %852 = vmatprep.mubr.f32.mxu0 %v4977_v51  ;;  %789 = vmatpush1.msra.mxu0 %v778_v50 }
 0x45f   :  { %4225 = vmatprep.subr.bf16.mxu0 %v4978_v52 }
 0x460   :  { %v533_v63 = vpop.permute.xlu1 %532  ;;  %v528_v1 = vpop.permute.xlu0 %527 }
 0x530   :  { %v3862_v0 = vpop.f32.mrb[2].mxu0 }
 0x531   :  { %v613_v2 = vadd.f32 %v3862_v0, %v533_v63  ;;  %v607_v3 = vpop.f32.mrb[3].mxu0  ;;  %v5331_v63 = vpack.c.bf16 %v913_v61, %v912_v60  ;;  %v1052_v60 = vld [vmem:[%s5843_s12 + $0x10] sm:$0xff]  ;;  %v1053_v61 = vld [vmem:[%s5843_s12 + $0x18] sm:$0xff] }
 0x532   :  { %v608_v4 = vadd.f32 %v607_v3, %v528_v1  ;;  %v904_v1 = vld [vmem:[#allocation11] sm:$0x3] }
 0x534   :  { %v4494_v5 = vpack.i.bf16 %v613_v2, %v608_v4 }
 0x536   :  { %4495 = vrot.lane.b32.xlu1 %v4494_v5, %s4969_s21  ;;  %4490 = vrot.lane.b32.xlu0 %v4494_v5, %s4972_s25 }
 0x53a   :  { %4505 = vrot.lane.b32.xlu1 %v4494_v5, %s4973_s23  ;;  %4500 = vrot.lane.b32.xlu0 %v4494_v5, %s4968_s19 }
 0x53e   :  { %4515 = vrot.lane.b32.xlu1 %v4494_v5, %s4970_s18  ;;  %4510 = vrot.lane.b32.xlu0 %v4494_v5, %s4975_s28 }
 0x542   :  { %4525 = vrot.lane.b32.xlu1 %v4494_v5, %s4976_s29  ;;  %4520 = vrot.lane.b32.xlu0 %v4494_v5, %s4971_s2 }
 0x546   :  { %688 = vperm.xlu1 %4407, %v680_v7   ;;  %683 = vperm.xlu0 %4408, %v679_v8  }
 0x5a8   :  { %v4496_v9 = vpop.permute.xlu1 %4495  ;;  %v4491_v10 = vpop.permute.xlu0 %4490 }
 0x5a9   :  { %v4493_v11 = vunpack.i.h.bf16 %v4491_v10  ;;  %v4492_v12 = vunpack.i.l.bf16 %v4491_v10  ;;  %v4498_v18 = vunpack.i.h.bf16 %v4496_v9  ;;  %v4497_v19 = vunpack.i.l.bf16 %v4496_v9 }
 0x5ab   :  { %v625_v13 = vsel %vm624_vm6, %v608_v4, %v4492_v12  ;;  %v626_v14 = vsel %vm624_vm6, %v613_v2, %v4493_v11 }
 0x5ac   :  { %v4506_v15 = vpop.permute.xlu1 %4505  ;;  %v4501_v16 = vpop.permute.xlu0 %4500  ;;  %v4205_v17 = vpack.c.bf16 %v626_v14, %v625_v13 }
 0x5ad   :  { %v4503_v20 = vunpack.i.h.bf16 %v4501_v16  ;;  %v4502_v21 = vunpack.i.l.bf16 %v4501_v16  ;;  %v4508_v27 = vunpack.i.h.bf16 %v4506_v15  ;;  %v4507_v28 = vunpack.i.l.bf16 %v4506_v15 }
 0x5ae   :  { %4206 = vmatprep.subr.bf16.mxu1 %v4205_v17 }
 0x5af   :  { %4208 = vmatpush3.bf16.msra.mxu1 %v4205_v17  ;;  %v639_v22 = vsel %vm624_vm6, %v4497_v19, %v4502_v21  ;;  %v640_v23 = vsel %vm624_vm6, %v4498_v18, %v4503_v20  ;;  %v905_v17 = vld [vmem:[#allocation13] sm:$0x3] }
 0x5b0   :  { %v4516_v24 = vpop.permute.xlu1 %4515  ;;  %v4511_v25 = vpop.permute.xlu0 %4510  ;;  %v4209_v26 = vpack.c.bf16 %v640_v23, %v639_v22 }
 0x5b1   :  { %v4513_v29 = vunpack.i.h.bf16 %v4511_v25  ;;  %v4512_v30 = vunpack.i.l.bf16 %v4511_v25  ;;  %v4518_v33 = vunpack.i.h.bf16 %v4516_v24  ;;  %v4517_v34 = vunpack.i.l.bf16 %v4516_v24 }
 0x5b2   :  { %4210 = vmatprep.subr.bf16.mxu1 %v4209_v26 }
 0x5b3   :  { %4212 = vmatpush3.bf16.msra.mxu1 %v4209_v26  ;;  %v653_v31 = vsel %vm624_vm6, %v4507_v28, %v4512_v30  ;;  %v654_v32 = vsel %vm624_vm6, %v4508_v27, %v4513_v29 }
 0x5b4   :  { %v4526_v35 = vpop.permute.xlu1 %4525  ;;  %v4521_v36 = vpop.permute.xlu0 %4520  ;;  %v4213_v37 = vpack.c.bf16 %v654_v32, %v653_v31  ;;  %v1009_v31 = vrot.slane %v905_v17, 1 }
 0x5b5   :  { %v4528_v38 = vunpack.i.h.bf16 %v4526_v35  ;;  %v4527_v39 = vunpack.i.l.bf16 %v4526_v35  ;;  %v4523_v40 = vunpack.i.h.bf16 %v4521_v36  ;;  %v4522_v41 = vunpack.i.l.bf16 %v4521_v36 }
 0x5b6   :  { %4214 = vmatprep.subr.bf16.mxu1 %v4213_v37 }
 0x5b7   :  { %4216 = vmatpush3.bf16.msra.mxu1 %v4213_v37  ;;  %v667_v42 = vsel %vm624_vm6, %v4517_v34, %v4522_v41  ;;  %v668_v43 = vsel %vm624_vm6, %v4518_v33, %v4523_v40  ;;  %v675_v44 = vsel %vm624_vm6, %v4492_v12, %v4527_v39  ;;  %v676_v45 = vsel %vm624_vm6, %v4493_v11, %v4528_v38 }
 0x5b8   :  { %v4217_v46 = vpack.c.bf16 %v668_v43, %v667_v42  ;;  %v4221_v47 = vpack.c.bf16 %v676_v45, %v675_v44 }
 0x5ba   :  { %4218 = vmatprep.subr.bf16.mxu1 %v4217_v46 }
 0x5bb   :  { %4220 = vmatpush3.bf16.msra.mxu1 %v4217_v46 }
 0x5bc   :  { %4222 = vmatprep.subr.bf16.mxu1 %v4221_v47 }
 0x5bf   :  { %4224 = vmatpush3.bf16.msra.mxu1 %v4221_v47 }
 0x5c0   :  { %4375 = vmatprep.subr.mxu1 %v779_v49  ;;  %v1055_v49 = vld [vmem:[%s5844_s13 + $0x8] sm:$0xff] }
 0x5c2   :  { %3884 = vmatmul.mubr.msk.f32.vlgmr.msra.gmra.mrb[2].mxu1 %vm378_vm3, %v678_v48  ;;  %v1054_v48 = vld [vmem:[%s5844_s13] sm:$0xff] }
 0x5c3   :  { %4376 = vmatpush1.msra.mxu1 %v778_v50  ;;  %864 = vmatprep.mubr.f32.mxu1 %v4977_v51  ;;  %v1056_v50 = vld [vmem:[%s5844_s13 + $0x10] sm:$0xff]  ;;  %v5381_v53 = vpack.c.bf16 %v1055_v49, %v1054_v48 }
 0x5c4   :  { %4231 = vmatprep.subr.bf16.mxu1 %v4978_v52 }
 0x5c5   :  { %v684_v56 = vpop.permute.xlu0 %683  ;;  %v689_v62 = vpop.permute.xlu1 %688 }
 0x695   :  { %v3885_v55 = vpop.f32.mrb[2].mxu1 }
 0x696   :  { %v763_v57 = vpop.f32.mrb[3].mxu1  ;;  %v5333_v0 = vadd.f32 %v3885_v55, %v689_v62  ;;  %v5387_v55 = vpack.c.bf16 %v1057_v54, %v1056_v50  ;;  %v5405_v62 = vpack.c.bf16 %v1053_v61, %v1052_v60 }
 0x697   :  { %v764_v59 = vadd.f32 %v763_v57, %v684_v56  ;;  %v1050_v56 = vld [vmem:[%s5843_s12] sm:$0xff]  ;;  %v1051_v57 = vld [vmem:[%s5843_s12 + $0x8] sm:$0xff] }
 0x699   :  { %774 = vrot.lane.b32.xlu0 %v764_v59, %s4976_s29  ;;  %3586 = vmatmul.mubr.msk.f32.vlgmr.msra.gmra.mrb[4].mxu0 %vm624_vm6, %v764_v59  ;;  %v5396_v59 = vpack.c.bf16 %v1051_v57, %v1050_v56 }
 0x69a   :  { %4227 = vmatpush3.bf16.msra.mxu0 %v5319_v58  ;;  %858 = vmatprep.mubr.f32.mxu0 %v4977_v51 }
 0x69b   :  { %4228 = vmatprep.subr.bf16.mxu0 %v4978_v52 }
 0x69d   :  { %3587 = vmatmul.mubr.msk.f32.gmra.mrb[6].mxu0 %vm624_vm6, %v5333_v0 }
 0x69e   :  { %4230 = vmatpush3.bf16.msra.mxu0 %v5331_v63  ;;  %3894 = vmatprep.mubr.msk.f32.mxu0 %vm4979_vm7, %v4977_v51 }
 0x69f   :  { %4237 = vmatprep.subr.bf16.mxu0 %v4978_v52 }
 0x6a1   :  { %3895 = vmatmul.mubr.msk.f32.vlgmr.msra.gmra.mrb[8].mxu0 %vm914_vm8, %v904_v1 }
 0x6a2   :  { %3916 = vmatprep.mubr.msk.f32.mxu0 %vm4979_vm7, %v4977_v51  ;;  %4239 = vmatpush3.bf16.msra.mxu0 %v5396_v59 }
 0x6a3   :  { %4240 = vmatprep.subr.bf16.mxu0 %v4978_v52 }
 0x6a6   :  { %4242 = vmatpush3.bf16.msra.mxu0 %v5405_v62 }
 0x6a7   :  { %4249 = vmatprep.subr.bf16.mxu0 %v4978_v52 }
 0x70b   :  { %v775_v2 = vpop.permute.xlu0 %774 }
 0x70c   :  { %3588 = vmatmul.mubr.msk.f32.vlgmr.msra.gmra.mrb[4].mxu1 %vm624_vm6, %v775_v2 }
 0x70d   :  { %870 = vmatprep.mubr.f32.mxu1 %v4977_v51  ;;  %4233 = vmatpush3.bf16.msra.mxu1 %v5381_v53 }
 0x70e   :  { %4234 = vmatprep.subr.bf16.mxu1 %v4978_v52 }
 0x711   :  { %4236 = vmatpush3.bf16.msra.mxu1 %v5387_v55 }
 0x712   :  { %4243 = vmatprep.subr.bf16.mxu1 %v4978_v52 }
 0x76c   :  { %v854_v3 = vpop.f32.mrb[4].mxu0 }
 0x76d   :  { %v856_v4 = vpop.f32.mrb[5].mxu0 }
 0x76e   :  { %v879_v5 = vrot.slane %v856_v4, 1 }
 0x770   :  { %v883_v7 = vadd.f32 %v879_v5, %v854_v3  ;;  %v860_v8 = vpop.f32.mrb[6].mxu0 }
 0x771   :  { %v862_v9 = vpop.f32.mrb[7].mxu0 }
 0x772   :  { %v5350_v10 = vadd.f32 %v5347_v6, %v883_v7  ;;  %v896_v11 = vrot.slane %v862_v9, 1 }
 0x774   :  { %v5352_v12 = vadd.f32 %v896_v11, %v860_v8  ;;  %v984_v13 = vpop.f32.mrb[8].mxu0  ;;  %v907_v11 = vld [vmem:[#allocation11 + $0x2] sm:$0x3] }
 0x775   :  { %v992_v14 = vadd.f32 %v984_v13, %v5350_v10  ;;  %v3896_v15 = vpop.f32.mrb[9].mxu0  ;;  %v989_v23 = vrot.slane %v984_v13, 1 }
 0x777   :  { %4529 = vtanh.f32 %v992_v14  ;;  %v3592_v18 = vmul.f32 -1.442695, %v992_v14 }
 0x779   :  { %4531 = vpow2.f32 %v3592_v18 }
 0x781   :  { %v4530_v16 = vpop.eup %4529 }
 0x782   :  { %1020 = vrot.lane.b32.xlu0 %v4530_v16, %s4962_s17 }
 0x783   :  { %v4532_v22 = vpop.eup %4531 }
 0x784   :  { %v1000_v26 = vadd.f32 1.0, %v4532_v22 }
 0x786   :  { %1010 = vrot.lane.b32.xlu0 %v905_v17, %s4959_s14 }
 0x7df   :  { %v866_v19 = vpop.f32.mrb[4].mxu1 }
 0x7e0   :  { %v868_v20 = vpop.f32.mrb[5].mxu1 }
 0x7e1   :  { %v880_v21 = vrot.slane %v868_v20, 1  ;;  %v5443_v20 = vld [vmem:[#allocation8] ss:$0 sm:$0xff] }
 0x7e3   :  { %v884_v24 = vadd.f32 %v880_v21, %v866_v19 }
 0x7e5   :  { %v5358_v25 = vadd.f32 %v5347_v6, %v884_v24 }
 0x7e7   :  { %v993_v27 = vadd.f32 %v989_v23, %v5358_v25 }
 0x7e9   :  { %4533 = vtanh.f32 %v993_v27  ;;  %v3593_v33 = vmul.f32 -1.442695, %v993_v27 }
 0x7ea   :  { %4535 = vrcp.f32 %v1000_v26 }
 0x7eb   :  { %4537 = vpow2.f32 %v3593_v33  ;;  %v909_v33 = vld [vmem:[#allocation13 + $0x2] sm:$0x3] }
 0x7f3   :  { %v4534_v28 = vpop.eup %4533 }
 0x7f4   :  { %v4536_v29 = vpop.eup %4535  ;;  %v1021_v30 = vpop.permute.xlu0 %1020  ;;  %1022 = vrot.lane.b32.xlu1 %v4534_v28, %s4962_s17 }
 0x7f5   :  { %v1026_v32 = vmul.f32 %v4536_v29, %v1021_v30  ;;  %v4538_v34 = vpop.eup %4537 }
 0x7f6   :  { %v1001_v35 = vadd.f32 1.0, %v4538_v34 }
 0x7f7   :  { %1030 = vrot.lane.b32.xlu0 %v1026_v32, %s4959_s14 }
 0x7f8   :  { %1012 = vrot.lane.b32.xlu1 %v1009_v31, %s4959_s14  ;;  %4539 = vrcp.f32 %v1001_v35  ;;  %v1011_v36 = vpop.permute.xlu0 %1010 }
 0x7f9   :  { %v1016_v40 = vmul.f32 %v4536_v29, %v1011_v36 }
 0x802   :  { %v4540_v37 = vpop.eup %4539 }
 0x866   :  { %v1023_v38 = vpop.permute.xlu1 %1022 }
 0x867   :  { %v1027_v39 = vmul.f32 %v4540_v37, %v1023_v38 }
 0x869   :  { %v1031_v41 = vpop.permute.xlu0 %1030  ;;  %1032 = vrot.lane.b32.xlu1 %v1027_v39, %s4959_s14 }
 0x86a   :  { %v5365_v42 = vadd.f32 %v1031_v41, %v1016_v40  ;;  %v1013_v44 = vpop.permute.xlu1 %1012 }
 0x86b   :  { %v1017_v45 = vmul.f32 %v4540_v37, %v1013_v44 }
 0x86c   :  { %4541 = vtanh.f32 %v5365_v42 }
 0x876   :  { %v4542_v43 = vpop.eup %4541 }
 0x877   :  { %1042 = vrot.lane.b32.xlu0 %v4542_v43, %s4962_s17 }
 0x8db   :  { %v1033_v46 = vpop.permute.xlu1 %1032 }
 0x8dc   :  { %v5369_v47 = vadd.f32 %v1033_v46, %v1017_v45 }
 0x8de   :  { %4543 = vtanh.f32 %v5369_v47 }
 0x8e8   :  { %v4544_v1 = vpop.eup %4543 }
 0x8e9   :  { %1044 = vrot.lane.b32.xlu1 %v4544_v1, %s4962_s17  ;;  %v1043_v2 = vpop.permute.xlu0 %1042  ;;  %v1339_v1 = vrot.slane %v5365_v42, 6 }
 0x8ea   :  { %v1048_v5 = vmul.f32 %v4536_v29, %v1043_v2 }
 0x8ed   :  { %776 = vrot.lane.b32.xlu1 %v5333_v0, %s4976_s29 }
 0x95b   :  { %v1045_v3 = vpop.permute.xlu1 %1044 }
 0x95c   :  { %v1049_v4 = vmul.f32 %v4540_v37, %v1045_v3 }
 0x95e   :  { %v1133_v7 = vrot.slane %v1049_v4, 7 }
 0x95f   :  { %v777_v8 = vpop.permute.xlu1 %776 }
 0x960   :  { %3589 = vmatmul.mubr.msk.f32.gmra.mrb[6].mxu1 %vm624_vm6, %v777_v8  ;;  %v1135_v9 = vsel %vm1134_vm9, %v1133_v7, %v1048_v5  ;;  %v1340_v8 = vrot.slane %v5369_v47, 6 }
 0x961   :  { %1136 = vrot.lane.b32.xlu0 %v1135_v9, %s4959_s14  ;;  %3905 = vmatprep.mubr.msk.f32.mxu1 %vm4979_vm7, %v4977_v51 }
 0x964   :  { %3906 = vmatmul.mubr.msk.f32.vlgmr.msra.gmra.mrb[8].mxu1 %vm914_vm8, %v907_v11 }
 0x965   :  { %4245 = vmatpush3.bf16.msra.mxu1 %v5319_v58  ;;  %3927 = vmatprep.mubr.msk.f32.mxu1 %vm4979_vm7, %v4977_v51 }
 0x966   :  { %4246 = vmatprep.subr.bf16.mxu1 %v4978_v52 }
 0x969   :  { %4248 = vmatpush3.bf16.msra.mxu1 %v5331_v63 }
 0x96a   :  { %4255 = vmatprep.subr.bf16.mxu1 %v4978_v52 }
 0x9d3   :  { %v1137_v0 = vpop.permute.xlu0 %1136 }
 0x9d4   :  { %3917 = vmatmul.mubr.msk.f32.vlgmr.msra.gmra.mrb[10].mxu0 %vm914_vm8, %v1137_v0  ;;  %3928 = vmatmul.mubr.msk.f32.vlgmr.msra.gmra.mrb[10].mxu1 %vm914_vm8, %v1137_v0 }
 0x9d5   :  { %4251 = vmatpush3.bf16.msra.mxu0 %v5381_v53  ;;  %3938 = vmatprep.mubr.msk.f32.mxu0 %vm4979_vm7, %v4977_v51 }
 0x9d6   :  { %4252 = vmatprep.subr.bf16.mxu0 %v4978_v52  ;;  %4257 = vmatpush3.bf16.msra.mxu1 %v5396_v59 }
 0x9d7   :  { %4258 = vmatprep.subr.bf16.mxu1 %v4978_v52  ;;  %3949 = vmatprep.mubr.msk.f32.mxu1 %vm4979_vm7, %v4977_v51 }
 0x9d9   :  { %4254 = vmatpush3.bf16.msra.mxu0 %v5387_v55 }
 0x9da   :  { %4261 = vmatprep.subr.bf16.mxu0 %v4978_v52  ;;  %4260 = vmatpush3.bf16.msra.mxu1 %v5405_v62 }
 0x9db   :  { %4267 = vmatprep.subr.bf16.mxu1 %v4978_v52 }
 0xa33   :  { %v872_v13 = vpop.f32.mrb[6].mxu1 }
 0xa34   :  { %v874_v14 = vpop.f32.mrb[7].mxu1 }
 0xa35   :  { %v897_v15 = vrot.slane %v874_v14, 1 }
 0xa37   :  { %v5441_v16 = vadd.f32 %v897_v15, %v872_v13  ;;  %v1127_v17 = vpop.f32.mrb[8].mxu1 }
 0xa38   :  { %v3907_v18 = vpop.f32.mrb[9].mxu1 }
 0xaa7   :  { %v1206_v19 = vpop.f32.mrb[10].mxu0  ;;  %v1312_v21 = vpop.f32.mrb[10].mxu1 }
 0xaa8   :  { %v1207_v22 = vadd.f32 %v1206_v19, %v1127_v17  ;;  %v1317_v23 = vrot.slane %v1312_v21, 6  ;;  %v3918_v24 = vpop.f32.mrb[11].mxu0  ;;  %v3929_v26 = vpop.f32.mrb[11].mxu1  ;;  %v1318_v27 = vrot.slane %v1312_v21, 7 }
 0xaaa   :  { %v1217_v28 = vadd.f32 %v5443_v20, %v1207_v22  ;;  %v1321_v29 = vadd.f32 %v1317_v23, %v5350_v10  ;;  %v1322_v30 = vadd.f32 %v1318_v27, %v5358_v25 }
 0xaac   :  { %4545 = vtanh.f32 %v1217_v28  ;;  %v3597_v35 = vmul.f32 -1.442695, %v1217_v28  ;;  %v3599_v36 = vmul.f32 -1.442695, %v1321_v29  ;;  %v3600_v37 = vmul.f32 -1.442695, %v1322_v30 }
 0xaad   :  { %4547 = vtanh.f32 %v1321_v29 }
 0xaae   :  { %4549 = vtanh.f32 %v1322_v30 }
 0xaaf   :  { %4551 = vpow2.f32 %v3597_v35 }
 0xab0   :  { %4553 = vpow2.f32 %v3599_v36 }
 0xab1   :  { %4555 = vpow2.f32 %v3600_v37 }
 0xab6   :  { %v4546_v31 = vpop.eup %4545 }
 0xab7   :  { %v4548_v32 = vpop.eup %4547  ;;  %1231 = vrot.lane.b32.xlu1 %v4546_v31, %s4962_s17 }
 0xab8   :  { %1347 = vrot.lane.b32.xlu0 %v4548_v32, %s4962_s17  ;;  %v4550_v34 = vpop.eup %4549 }
 0xab9   :  { %v4552_v38 = vpop.eup %4551 }
 0xaba   :  { %v4554_v39 = vpop.eup %4553  ;;  %v1221_v40 = vadd.f32 1.0, %v4552_v38 }
 0xabb   :  { %1349 = vrot.lane.b32.xlu1 %v4550_v34, %s4962_s17  ;;  %v1329_v41 = vadd.f32 1.0, %v4554_v39  ;;  %v4556_v43 = vpop.eup %4555 }
 0xabc   :  { %1226 = vrot.lane.b32.xlu0 %v909_v33, %s4959_s14  ;;  %4557 = vrcp.f32 %v1221_v40  ;;  %v1330_v44 = vadd.f32 1.0, %v4556_v43 }
 0xabd   :  { %4559 = vrcp.f32 %v1329_v41 }
 0xabe   :  { %4561 = vrcp.f32 %v1330_v44 }
 0xac6   :  { %v4558_v45 = vpop.eup %4557 }
 0xac7   :  { %v4560_v48 = vpop.eup %4559 }
 0xac8   :  { %v4562_v56 = vpop.eup %4561  ;;  %v1343_v3 = vmul.f32 %v4560_v48, %v1339_v1 }
 0xac9   :  { %v1344_v11 = vmul.f32 %v4562_v56, %v1340_v8 }
 0xb29   :  { %v1232_v46 = vpop.permute.xlu1 %1231 }
 0xb2a   :  { %v1348_v49 = vpop.permute.xlu0 %1347  ;;  %v1234_v50 = vmul.f32 %v4558_v45, %v1232_v46 }
 0xb2b   :  { %v1353_v54 = vmul.f32 %v4560_v48, %v1348_v49 }
 0xb2c   :  { %1236 = vrot.lane.b32.xlu1 %v1234_v50, %s4959_s14 }
 0xb2d   :  { %1357 = vrot.lane.b32.xlu0 %v1353_v54, %s4959_s14  ;;  %v1350_v57 = vpop.permute.xlu1 %1349 }
 0xb2e   :  { %v1354_v60 = vmul.f32 %v4562_v56, %v1350_v57  ;;  %v1227_v61 = vpop.permute.xlu0 %1226 }
 0xb2f   :  { %v1229_v2 = vmul.f32 %v4558_v45, %v1227_v61 }
 0xb30   :  { %1359 = vrot.lane.b32.xlu1 %v1354_v60, %s4959_s14 }
 0xb9e   :  { %v1237_v4 = vpop.permute.xlu1 %1236 }
 0xb9f   :  { %v1358_v5 = vpop.permute.xlu0 %1357  ;;  %v5456_v7 = vadd.f32 %v1237_v4, %v1229_v2 }
 0xba0   :  { %v5459_v9 = vadd.f32 %v1358_v5, %v1343_v3 }
 0xba1   :  { %4563 = vtanh.f32 %v5456_v7 }
 0xba2   :  { %4565 = vtanh.f32 %v5459_v9  ;;  %v1360_v0 = vpop.permute.xlu1 %1359 }
 0xba3   :  { %v5463_v13 = vadd.f32 %v1360_v0, %v1344_v11 }
 0xba5   :  { %4567 = vtanh.f32 %v5463_v13 }
 0xbab   :  { %v4564_v42 = vpop.eup %4563 }
 0xbac   :  { %v4566_v14 = vpop.eup %4565  ;;  %1242 = vrot.lane.b32.xlu0 %v4564_v42, %s4962_s17  ;;  %v1649_v42 = vrot.slane %v5459_v9, 6 }
 0xbad   :  { %1369 = vrot.lane.b32.xlu1 %v4566_v14, %s4962_s17 }
 0xbaf   :  { %v4568_v15 = vpop.eup %4567 }
 0xbb0   :  { %1371 = vrot.lane.b32.xlu0 %v4568_v15, %s4962_s17 }
 0xc1e   :  { %v1243_v47 = vpop.permute.xlu0 %1242 }
 0xc1f   :  { %v1370_v17 = vpop.permute.xlu1 %1369  ;;  %v1245_v18 = vmul.f32 %v4558_v45, %v1243_v47 }
 0xc20   :  { %v1375_v19 = vmul.f32 %v4560_v48, %v1370_v17 }
 0xc21   :  { %1378 = vrot.lane.b32.xlu1 %v1245_v18, %s4959_s14 }
 0xc22   :  { %v1372_v21 = vpop.permute.xlu0 %1371  ;;  %v1454_v23 = vrot.slane %v1375_v19, 2  ;;  %v1650_v19 = vrot.slane %v5463_v13, 6 }
 0xc23   :  { %v1376_v22 = vmul.f32 %v4562_v56, %v1372_v21 }
 0xc25   :  { %v1455_v24 = vrot.slane %v1376_v22, 1 }
 0xc27   :  { %v1456_v26 = vsel %vm1134_vm9, %v1455_v24, %v1454_v23 }
 0xc28   :  { %1457 = vrot.lane.b32.xlu0 %v1456_v26, %s4959_s14 }
 0xc93   :  { %v1379_v27 = vpop.permute.xlu1 %1378 }
 0xc94   :  { %3939 = vmatmul.mubr.msk.f32.vlgmr.msra.gmra.mrb[12].mxu0 %vm914_vm8, %v1379_v27 }
 0xc95   :  { %4263 = vmatpush3.bf16.msra.mxu0 %v5319_v58  ;;  %3960 = vmatprep.mubr.msk.f32.mxu0 %vm4979_vm7, %v4977_v51 }
 0xc96   :  { %4264 = vmatprep.subr.bf16.mxu0 %v4978_v52 }
 0xc99   :  { %4266 = vmatpush3.bf16.msra.mxu0 %v5331_v63 }
 0xc9a   :  { %4273 = vmatprep.subr.bf16.mxu0 %v4978_v52  ;;  %v1458_v28 = vpop.permute.xlu0 %1457 }
 0xc9b   :  { %3950 = vmatmul.mubr.msk.f32.vlgmr.msra.gmra.mrb[12].mxu1 %vm914_vm8, %v1458_v28 }
 0xc9c   :  { %3961 = vmatmul.mubr.msk.f32.vlgmr.msra.gmra.mrb[14].mxu0 %vm914_vm8, %v1458_v28  ;;  %4269 = vmatpush3.bf16.msra.mxu1 %v5381_v53 }
 0xc9d   :  { %3971 = vmatprep.mubr.msk.f32.mxu1 %vm4979_vm7, %v4977_v51  ;;  %4270 = vmatprep.subr.bf16.mxu1 %v4978_v52 }
 0xc9e   :  { %4275 = vmatpush3.bf16.msra.mxu0 %v5396_v59  ;;  %3982 = vmatprep.mubr.msk.f32.mxu0 %vm4979_vm7, %v4977_v51 }
 0xc9f   :  { %4276 = vmatprep.subr.bf16.mxu0 %v4978_v52 }
 0xca0   :  { %4272 = vmatpush3.bf16.msra.mxu1 %v5387_v55 }
 0xca1   :  { %4279 = vmatprep.subr.bf16.mxu1 %v4978_v52 }
 0xca2   :  { %4278 = vmatpush3.bf16.msra.mxu0 %v5405_v62 }
 0xca3   :  { %4285 = vmatprep.subr.bf16.mxu0 %v4978_v52 }
 0xd67   :  { %v1448_v29 = vpop.f32.mrb[12].mxu0 }
 0xd68   :  { %v3940_v30 = vpop.f32.mrb[13].mxu0 }
 0xd6e   :  { %v1527_v31 = vpop.f32.mrb[12].mxu1 }
 0xd6f   :  { %v1622_v32 = vpop.f32.mrb[14].mxu0  ;;  %v1528_v33 = vadd.f32 %v1527_v31, %v1448_v29  ;;  %v3951_v35 = vpop.f32.mrb[13].mxu1 }
 0xd70   :  { %v1627_v34 = vrot.slane %v1622_v32, 4  ;;  %v3962_v36 = vpop.f32.mrb[15].mxu0  ;;  %v1628_v37 = vrot.slane %v1622_v32, 5 }
 0xd71   :  { %v1531_v38 = vadd.f32 %v5443_v20, %v1528_v33 }
 0xd72   :  { %v1631_v39 = vadd.f32 %v1627_v34, %v5350_v10  ;;  %v1632_v40 = vadd.f32 %v1628_v37, %v5358_v25 }
 0xd73   :  { %4569 = vtanh.f32 %v1531_v38  ;;  %v3603_v45 = vmul.f32 -1.442695, %v1531_v38 }
 0xd74   :  { %4571 = vtanh.f32 %v1631_v39  ;;  %v3605_v46 = vmul.f32 -1.442695, %v1631_v39  ;;  %v3606_v48 = vmul.f32 -1.442695, %v1632_v40 }
 0xd75   :  { %4573 = vtanh.f32 %v1632_v40 }
 0xd76   :  { %4575 = vpow2.f32 %v3603_v45 }
 0xd77   :  { %4577 = vpow2.f32 %v3605_v46 }
 0xd78   :  { %4579 = vpow2.f32 %v3606_v48 }
 0xd7d   :  { %v4570_v41 = vpop.eup %4569 }
 0xd7e   :  { %v4572_v43 = vpop.eup %4571  ;;  %1541 = vrot.lane.b32.xlu1 %v4570_v41, %s4962_s17 }
 0xd7f   :  { %1657 = vrot.lane.b32.xlu0 %v4572_v43, %s4962_s17  ;;  %v4574_v44 = vpop.eup %4573 }
 0xd80   :  { %v4576_v49 = vpop.eup %4575 }
 0xd81   :  { %v4578_v50 = vpop.eup %4577  ;;  %v1535_v54 = vadd.f32 1.0, %v4576_v49 }
 0xd82   :  { %1659 = vrot.lane.b32.xlu1 %v4574_v44, %s4962_s17  ;;  %v1639_v56 = vadd.f32 1.0, %v4578_v50  ;;  %v4580_v57 = vpop.eup %4579 }
 0xd83   :  { %4581 = vrcp.f32 %v1535_v54  ;;  %v1640_v60 = vadd.f32 1.0, %v4580_v57 }
 0xd84   :  { %4583 = vrcp.f32 %v1639_v56 }
 0xd85   :  { %4585 = vrcp.f32 %v1640_v60 }
 0xd8d   :  { %v4582_v61 = vpop.eup %4581 }
 0xd8e   :  { %v4584_v2 = vpop.eup %4583  ;;  %v1539_v14 = vmul.f32 %v4582_v61, %v5456_v7 }
 0xd8f   :  { %v4586_v8 = vpop.eup %4585  ;;  %v1653_v47 = vmul.f32 %v4584_v2, %v1649_v42 }
 0xd90   :  { %v1654_v22 = vmul.f32 %v4586_v8, %v1650_v19 }
 0xdf0   :  { %v1542_v1 = vpop.permute.xlu1 %1541 }
 0xdf1   :  { %v1544_v3 = vmul.f32 %v4582_v61, %v1542_v1  ;;  %v1658_v4 = vpop.permute.xlu0 %1657 }
 0xdf2   :  { %v1663_v5 = vmul.f32 %v4584_v2, %v1658_v4 }
 0xdf3   :  { %1546 = vrot.lane.b32.xlu0 %v1544_v3, %s4959_s14 }
 0xdf4   :  { %1667 = vrot.lane.b32.xlu1 %v1663_v5, %s4959_s14  ;;  %v1660_v11 = vpop.permute.xlu1 %1659 }
 0xdf5   :  { %v1664_v0 = vmul.f32 %v4586_v8, %v1660_v11 }
 0xdf7   :  { %1669 = vrot.lane.b32.xlu0 %v1664_v0, %s4959_s14 }
 0xe65   :  { %v1547_v15 = vpop.permute.xlu0 %1546 }
 0xe66   :  { %v5504_v17 = vadd.f32 %v1547_v15, %v1539_v14  ;;  %v1668_v18 = vpop.permute.xlu1 %1667 }
 0xe67   :  { %v5507_v21 = vadd.f32 %v1668_v18, %v1653_v47 }
 0xe68   :  { %4587 = vtanh.f32 %v5504_v17 }
 0xe69   :  { %4589 = vtanh.f32 %v5507_v21  ;;  %v1670_v23 = vpop.permute.xlu0 %1669 }
 0xe6a   :  { %v5511_v24 = vadd.f32 %v1670_v23, %v1654_v22  ;;  %v1959_v22 = vrot.slane %v5507_v21, 6 }
 0xe6c   :  { %4591 = vtanh.f32 %v5511_v24 }
 0xe72   :  { %v4588_v7 = vpop.eup %4587 }
 0xe73   :  { %v4590_v9 = vpop.eup %4589  ;;  %1552 = vrot.lane.b32.xlu1 %v4588_v7, %s4962_s17 }
 0xe74   :  { %1679 = vrot.lane.b32.xlu0 %v4590_v9, %s4962_s17 }
 0xe76   :  { %v4592_v26 = vpop.eup %4591 }
 0xe77   :  { %1681 = vrot.lane.b32.xlu1 %v4592_v26, %s4962_s17 }
 0xee5   :  { %v1553_v13 = vpop.permute.xlu1 %1552 }
 0xee6   :  { %v1555_v27 = vmul.f32 %v4582_v61, %v1553_v13  ;;  %v1680_v28 = vpop.permute.xlu0 %1679 }
 0xee7   :  { %v1685_v29 = vmul.f32 %v4584_v2, %v1680_v28 }
 0xee8   :  { %1688 = vrot.lane.b32.xlu0 %v1555_v27, %s4959_s14  ;;  %v1960_v27 = vrot.slane %v5511_v24, 6 }
 0xee9   :  { %v1682_v30 = vpop.permute.xlu1 %1681  ;;  %v1764_v32 = vrot.slane %v1685_v29, 4 }
 0xeea   :  { %v1686_v31 = vmul.f32 %v4586_v8, %v1682_v30 }
 0xeec   :  { %v1765_v33 = vrot.slane %v1686_v31, 3 }
 0xeee   :  { %v1766_v34 = vsel %vm1134_vm9, %v1765_v33, %v1764_v32 }
 0xeef   :  { %1767 = vrot.lane.b32.xlu1 %v1766_v34, %s4959_s14 }
 0xf5a   :  { %v1689_v35 = vpop.permute.xlu0 %1688 }
 0xf5b   :  { %3972 = vmatmul.mubr.msk.f32.vlgmr.msra.gmra.mrb[14].mxu1 %vm914_vm8, %v1689_v35 }
 0xf5c   :  { %4281 = vmatpush3.bf16.msra.mxu1 %v5319_v58  ;;  %3993 = vmatprep.mubr.msk.f32.mxu1 %vm4979_vm7, %v4977_v51 }
 0xf5d   :  { %4282 = vmatprep.subr.bf16.mxu1 %v4978_v52 }
 0xf60   :  { %4284 = vmatpush3.bf16.msra.mxu1 %v5331_v63 }
 0xf61   :  { %4291 = vmatprep.subr.bf16.mxu1 %v4978_v52  ;;  %v1768_v36 = vpop.permute.xlu1 %1767 }
 0xf62   :  { %3983 = vmatmul.mubr.msk.f32.vlgmr.msra.gmra.mrb[16].mxu0 %vm914_vm8, %v1768_v36 }
 0xf63   :  { %3994 = vmatmul.mubr.msk.f32.vlgmr.msra.gmra.mrb[16].mxu1 %vm914_vm8, %v1768_v36  ;;  %4287 = vmatpush3.bf16.msra.mxu0 %v5381_v53 }
 0xf64   :  { %4004 = vmatprep.mubr.msk.f32.mxu0 %vm4979_vm7, %v4977_v51  ;;  %4288 = vmatprep.subr.bf16.mxu0 %v4978_v52 }
 0xf65   :  { %4293 = vmatpush3.bf16.msra.mxu1 %v5396_v59  ;;  %4015 = vmatprep.mubr.msk.f32.mxu1 %vm4979_vm7, %v4977_v51 }
 0xf66   :  { %4294 = vmatprep.subr.bf16.mxu1 %v4978_v52 }
 0xf67   :  { %4290 = vmatpush3.bf16.msra.mxu0 %v5387_v55 }
 0xf68   :  { %4297 = vmatprep.subr.bf16.mxu0 %v4978_v52 }
 0xf69   :  { %4296 = vmatpush3.bf16.msra.mxu1 %v5405_v62 }
 0xf6a   :  { %4303 = vmatprep.subr.bf16.mxu1 %v4978_v52 }
0x102e   :  { %v1758_v37 = vpop.f32.mrb[14].mxu1 }
0x102f   :  { %v3973_v38 = vpop.f32.mrb[15].mxu1 }
0x1035   :  { %v1837_v39 = vpop.f32.mrb[16].mxu0 }
0x1036   :  { %v1932_v40 = vpop.f32.mrb[16].mxu1  ;;  %v1838_v41 = vadd.f32 %v1837_v39, %v1758_v37  ;;  %v3984_v44 = vpop.f32.mrb[17].mxu0 }
0x1037   :  { %v1937_v43 = vrot.slane %v1932_v40, 2  ;;  %v3995_v45 = vpop.f32.mrb[17].mxu1  ;;  %v1938_v46 = vrot.slane %v1932_v40, 3 }
0x1038   :  { %v1841_v48 = vadd.f32 %v5443_v20, %v1838_v41 }
0x1039   :  { %v1941_v49 = vadd.f32 %v1937_v43, %v5350_v10  ;;  %v1942_v50 = vadd.f32 %v1938_v46, %v5358_v25 }
0x103a   :  { %4593 = vtanh.f32 %v1841_v48  ;;  %v3609_v60 = vmul.f32 -1.442695, %v1841_v48 }
0x103b   :  { %4595 = vtanh.f32 %v1941_v49  ;;  %v3611_v61 = vmul.f32 -1.442695, %v1941_v49  ;;  %v3612_v1 = vmul.f32 -1.442695, %v1942_v50 }
0x103c   :  { %4597 = vtanh.f32 %v1942_v50 }
0x103d   :  { %4599 = vpow2.f32 %v3609_v60  ;;  %v5595_v60 = vadd.f32 %v5347_v6, %v5441_v16 }
0x103e   :  { %4601 = vpow2.f32 %v3611_v61 }
0x103f   :  { %4603 = vpow2.f32 %v3612_v1 }
0x1044   :  { %v4594_v54 = vpop.eup %4593 }
0x1045   :  { %v4596_v56 = vpop.eup %4595  ;;  %1851 = vrot.lane.b32.xlu0 %v4594_v54, %s4962_s17 }
0x1046   :  { %1967 = vrot.lane.b32.xlu1 %v4596_v56, %s4962_s17  ;;  %v4598_v57 = vpop.eup %4597 }
0x1047   :  { %v4600_v10 = vpop.eup %4599 }
0x1048   :  { %v4602_v2 = vpop.eup %4601  ;;  %v1845_v25 = vadd.f32 1.0, %v4600_v10 }
0x1049   :  { %1969 = vrot.lane.b32.xlu0 %v4598_v57, %s4962_s17  ;;  %v1949_v3 = vadd.f32 1.0, %v4602_v2  ;;  %v4604_v4 = vpop.eup %4603  ;;  %v5591_v57 = vadd.f32 %v5347_v6, %v5352_v12 }
0x104a   :  { %4605 = vrcp.f32 %v1845_v25  ;;  %v1950_v5 = vadd.f32 1.0, %v4604_v4 }
0x104b   :  { %4607 = vrcp.f32 %v1949_v3 }
0x104c   :  { %4609 = vrcp.f32 %v1950_v5 }
0x1054   :  { %v4606_v8 = vpop.eup %4605 }
0x1055   :  { %v4608_v0 = vpop.eup %4607  ;;  %v1849_v23 = vmul.f32 %v4606_v8, %v5504_v17 }
0x1056   :  { %v4610_v47 = vpop.eup %4609  ;;  %v1963_v7 = vmul.f32 %v4608_v0, %v1959_v22 }
0x1057   :  { %v1964_v29 = vmul.f32 %v4610_v47, %v1960_v27 }
0x10b7   :  { %v1852_v11 = vpop.permute.xlu0 %1851 }
0x10b8   :  { %v1968_v42 = vpop.permute.xlu1 %1967  ;;  %v1854_v14 = vmul.f32 %v4606_v8, %v1852_v11 }
0x10b9   :  { %v1973_v15 = vmul.f32 %v4608_v0, %v1968_v42 }
0x10ba   :  { %1856 = vrot.lane.b32.xlu1 %v1854_v14, %s4959_s14 }
0x10bb   :  { %1977 = vrot.lane.b32.xlu0 %v1973_v15, %s4959_s14  ;;  %v1970_v18 = vpop.permute.xlu0 %1969 }
0x10bc   :  { %v1974_v19 = vmul.f32 %v4610_v47, %v1970_v18 }
0x10be   :  { %1979 = vrot.lane.b32.xlu1 %v1974_v19, %s4959_s14 }
0x112c   :  { %v1857_v9 = vpop.permute.xlu1 %1856 }
0x112d   :  { %v1978_v26 = vpop.permute.xlu0 %1977  ;;  %v5552_v13 = vadd.f32 %v1857_v9, %v1849_v23 }
0x112e   :  { %v5555_v28 = vadd.f32 %v1978_v26, %v1963_v7 }
0x112f   :  { %4611 = vtanh.f32 %v5552_v13 }
0x1130   :  { %4613 = vtanh.f32 %v5555_v28  ;;  %v1980_v30 = vpop.permute.xlu1 %1979 }
0x1131   :  { %v5559_v31 = vadd.f32 %v1980_v30, %v1964_v29  ;;  %v2268_v29 = vrot.slane %v5555_v28, 6 }
0x1133   :  { %4615 = vtanh.f32 %v5559_v31  ;;  %v2269_v30 = vrot.slane %v5559_v31, 6 }
0x1139   :  { %v4612_v17 = vpop.eup %4611 }
0x113a   :  { %v4614_v21 = vpop.eup %4613  ;;  %1862 = vrot.lane.b32.xlu0 %v4612_v17, %s4962_s17 }
0x113b   :  { %1989 = vrot.lane.b32.xlu1 %v4614_v21, %s4962_s17 }
0x113d   :  { %v4616_v32 = vpop.eup %4615 }
0x113e   :  { %1991 = vrot.lane.b32.xlu0 %v4616_v32, %s4962_s17 }
0x11ac   :  { %v1863_v24 = vpop.permute.xlu0 %1862 }
0x11ad   :  { %v1990_v33 = vpop.permute.xlu1 %1989  ;;  %v1865_v34 = vmul.f32 %v4606_v8, %v1863_v24 }
0x11ae   :  { %v1995_v35 = vmul.f32 %v4608_v0, %v1990_v33 }
0x11af   :  { %1998 = vrot.lane.b32.xlu1 %v1865_v34, %s4959_s14 }
0x11b0   :  { %v1992_v36 = vpop.permute.xlu0 %1991  ;;  %v2074_v38 = vrot.slane %v1995_v35, 6 }
0x11b1   :  { %v1996_v37 = vmul.f32 %v4610_v47, %v1992_v36 }
0x11b3   :  { %v2075_v39 = vrot.slane %v1996_v37, 5 }
0x11b5   :  { %v2076_v40 = vsel %vm1134_vm9, %v2075_v39, %v2074_v38 }
0x11b6   :  { %2077 = vrot.lane.b32.xlu0 %v2076_v40, %s4959_s14 }
0x1221   :  { %v1999_v41 = vpop.permute.xlu1 %1998 }
0x1222   :  { %4005 = vmatmul.mubr.msk.f32.vlgmr.msra.gmra.mrb[18].mxu0 %vm914_vm8, %v1999_v41 }
0x1223   :  { %4299 = vmatpush3.bf16.msra.mxu0 %v5319_v58  ;;  %4026 = vmatprep.mubr.msk.f32.mxu0 %vm4979_vm7, %v4977_v51 }
0x1224   :  { %4300 = vmatprep.subr.bf16.mxu0 %v4978_v52 }
0x1227   :  { %4302 = vmatpush3.bf16.msra.mxu0 %v5331_v63 }
0x1228   :  { %4309 = vmatprep.subr.bf16.mxu0 %v4978_v52  ;;  %v2078_v43 = vpop.permute.xlu0 %2077 }
0x1229   :  { %4016 = vmatmul.mubr.msk.f32.vlgmr.msra.gmra.mrb[18].mxu1 %vm914_vm8, %v2078_v43 }
0x122a   :  { %4027 = vmatmul.mubr.msk.f32.vlgmr.msra.gmra.mrb[20].mxu0 %vm914_vm8, %v2078_v43  ;;  %4305 = vmatpush3.bf16.msra.mxu1 %v5381_v53 }
0x122b   :  { %4311 = vmatpush3.bf16.msra.mxu0 %v5396_v59  ;;  %4306 = vmatprep.subr.bf16.mxu1 %v4978_v52 }
0x122c   :  { %4037 = vmatprep.mubr.msk.f32.mxu1 %vm4979_vm7, %v4977_v51  ;;  %4312 = vmatprep.subr.bf16.mxu0 %v4978_v52 }
0x122d   :  { %4048 = vmatprep.mubr.msk.f32.mxu0 %vm4979_vm7, %v4977_v51 }
0x122e   :  { %4308 = vmatpush3.bf16.msra.mxu1 %v5387_v55 }
0x122f   :  { %4314 = vmatpush3.bf16.msra.mxu0 %v5405_v62  ;;  %4315 = vmatprep.subr.bf16.mxu1 %v4978_v52 }
0x1230   :  { %4321 = vmatprep.subr.bf16.mxu0 %v4978_v52 }
0x12f5   :  { %v2068_v44 = vpop.f32.mrb[18].mxu0 }
0x12f6   :  { %v4006_v45 = vpop.f32.mrb[19].mxu0 }
0x12fc   :  { %v2147_v46 = vpop.f32.mrb[18].mxu1 }
0x12fd   :  { %v2242_v48 = vpop.f32.mrb[20].mxu0  ;;  %v2148_v49 = vadd.f32 %v2147_v46, %v2068_v44  ;;  %v4017_v54 = vpop.f32.mrb[19].mxu1 }
0x12fe   :  { %v2247_v50 = vrot.slane %v2242_v48, 1  ;;  %v4028_v56 = vpop.f32.mrb[21].mxu0  ;;  %v2250_v1 = vadd.f32 %v2242_v48, %v5591_v57 }
0x12ff   :  { %v2151_v61 = vadd.f32 %v5443_v20, %v2148_v49 }
0x1300   :  { %v2251_v10 = vadd.f32 %v2247_v50, %v5595_v60  ;;  %v3617_v12 = vmul.f32 -1.442695, %v2250_v1 }
0x1301   :  { %4617 = vtanh.f32 %v2151_v61  ;;  %v3615_v6 = vmul.f32 -1.442695, %v2151_v61 }
0x1302   :  { %4619 = vtanh.f32 %v2250_v1  ;;  %v3618_v16 = vmul.f32 -1.442695, %v2251_v10 }
0x1303   :  { %4621 = vtanh.f32 %v2251_v10 }
0x1304   :  { %4623 = vpow2.f32 %v3615_v6 }
0x1305   :  { %4625 = vpow2.f32 %v3617_v12 }
0x1306   :  { %4627 = vpow2.f32 %v3618_v16 }
0x130b   :  { %v4618_v2 = vpop.eup %4617 }
0x130c   :  { %2161 = vrot.lane.b32.xlu1 %v4618_v2, %s4962_s17  ;;  %v4620_v25 = vpop.eup %4619 }
0x130d   :  { %v4622_v3 = vpop.eup %4621 }
0x130e   :  { %2278 = vrot.lane.b32.xlu0 %v4622_v3, %s4962_s17  ;;  %v4624_v4 = vpop.eup %4623 }
0x130f   :  { %v4626_v5 = vpop.eup %4625  ;;  %v2155_v8 = vadd.f32 1.0, %v4624_v4 }
0x1310   :  { %2276 = vrot.lane.b32.xlu1 %v4620_v25, %s4962_s17  ;;  %v4628_v11 = vpop.eup %4627  ;;  %v2258_v0 = vadd.f32 1.0, %v4626_v5 }
0x1311   :  { %4629 = vrcp.f32 %v2155_v8  ;;  %v2259_v42 = vadd.f32 1.0, %v4628_v11 }
0x1312   :  { %4631 = vrcp.f32 %v2258_v0 }
0x1313   :  { %4633 = vrcp.f32 %v2259_v42 }
0x131b   :  { %v4630_v14 = vpop.eup %4629 }
0x131c   :  { %v4632_v18 = vpop.eup %4631  ;;  %v2159_v26 = vmul.f32 %v4630_v14, %v5552_v13 }
0x131d   :  { %v4634_v19 = vpop.eup %4633  ;;  %v2272_v32 = vmul.f32 %v4632_v18, %v2268_v29 }
0x131e   :  { %v2273_v21 = vmul.f32 %v4634_v19, %v2269_v30 }
0x137e   :  { %v2162_v15 = vpop.permute.xlu1 %2161 }
0x137f   :  { %v2164_v47 = vmul.f32 %v4630_v14, %v2162_v15 }
0x1380   :  { %v2279_v22 = vpop.permute.xlu0 %2278 }
0x1381   :  { %2166 = vrot.lane.b32.xlu0 %v2164_v47, %s4959_s14  ;;  %v2283_v7 = vmul.f32 %v4634_v19, %v2279_v22 }
0x1382   :  { %v2277_v23 = vpop.permute.xlu1 %2276 }
0x1383   :  { %v2282_v9 = vmul.f32 %v4632_v18, %v2277_v23  ;;  %2288 = vrot.lane.b32.xlu1 %v2283_v7, %s4959_s14 }
0x1385   :  { %2286 = vrot.lane.b32.xlu0 %v2282_v9, %s4959_s14 }
0x13f3   :  { %v2167_v27 = vpop.permute.xlu0 %2166 }
0x13f4   :  { %v5609_v17 = vadd.f32 %v2167_v27, %v2159_v26 }
0x13f5   :  { %v2289_v24 = vpop.permute.xlu1 %2288 }
0x13f6   :  { %4635 = vtanh.f32 %v5609_v17  ;;  %v5612_v34 = vadd.f32 %v2289_v24, %v2273_v21 }
0x13f7   :  { %v2287_v33 = vpop.permute.xlu0 %2286 }
0x13f8   :  { %v5614_v35 = vadd.f32 %v2287_v33, %v2272_v32  ;;  %4637 = vtanh.f32 %v5612_v34 }
0x13fa   :  { %4639 = vtanh.f32 %v5614_v35  ;;  %v2577_v21 = vrot.slane %v5614_v35, 6 }
0x1400   :  { %v4636_v13 = vpop.eup %4635 }
0x1401   :  { %2172 = vrot.lane.b32.xlu1 %v4636_v13, %s4962_s17 }
0x1402   :  { %v4638_v28 = vpop.eup %4637 }
0x1403   :  { %2300 = vrot.lane.b32.xlu0 %v4638_v28, %s4962_s17 }
0x1404   :  { %v4640_v31 = vpop.eup %4639 }
0x1405   :  { %2298 = vrot.lane.b32.xlu1 %v4640_v31, %s4962_s17  ;;  %v2578_v31 = vrot.slane %v5612_v34, 6 }
0x1473   :  { %v2173_v36 = vpop.permute.xlu1 %2172 }
0x1474   :  { %v2175_v37 = vmul.f32 %v4630_v14, %v2173_v36 }
0x1475   :  { %v2301_v38 = vpop.permute.xlu0 %2300 }
0x1476   :  { %2307 = vrot.lane.b32.xlu0 %v2175_v37, %s4959_s14  ;;  %v2305_v39 = vmul.f32 %v4634_v19, %v2301_v38 }
0x1477   :  { %v2299_v40 = vpop.permute.xlu1 %2298 }
0x1478   :  { %v2304_v41 = vmul.f32 %v4632_v18, %v2299_v40  ;;  %v2383_v43 = vrot.slane %v2305_v39, 7 }
0x147a   :  { %v2384_v44 = vsel %vm1134_vm9, %v2383_v43, %v2304_v41 }
0x147b   :  { %2385 = vrot.lane.b32.xlu1 %v2384_v44, %s4959_s14 }
0x14e8   :  { %v2308_v45 = vpop.permute.xlu0 %2307 }
0x14e9   :  { %4038 = vmatmul.mubr.msk.f32.vlgmr.msra.gmra.mrb[20].mxu1 %vm914_vm8, %v2308_v45 }
0x14ea   :  { %4317 = vmatpush3.bf16.msra.mxu1 %v5319_v58  ;;  %4059 = vmatprep.mubr.msk.f32.mxu1 %vm4979_vm7, %v4977_v51 }
0x14eb   :  { %4318 = vmatprep.subr.bf16.mxu1 %v4978_v52 }
0x14ed   :  { %v2386_v46 = vpop.permute.xlu1 %2385 }
0x14ee   :  { %4320 = vmatpush3.bf16.msra.mxu1 %v5331_v63  ;;  %4049 = vmatmul.mubr.msk.f32.vlgmr.msra.gmra.mrb[22].mxu0 %vm914_vm8, %v2386_v46 }
0x14ef   :  { %4327 = vmatprep.subr.bf16.mxu1 %v4978_v52  ;;  %4323 = vmatpush3.bf16.msra.mxu0 %v5381_v53 }
0x14f0   :  { %4324 = vmatprep.subr.bf16.mxu0 %v4978_v52  ;;  %4070 = vmatprep.mubr.msk.f32.mxu0 %vm4979_vm7, %v4977_v51 }
0x14f1   :  { %4060 = vmatmul.mubr.msk.f32.vlgmr.msra.gmra.mrb[22].mxu1 %vm914_vm8, %v2386_v46 }
0x14f2   :  { %4329 = vmatpush3.bf16.msra.mxu1 %v5396_v59  ;;  %4081 = vmatprep.mubr.msk.f32.mxu1 %vm4979_vm7, %v4977_v51 }
0x14f3   :  { %4330 = vmatprep.subr.bf16.mxu1 %v4978_v52  ;;  %4326 = vmatpush3.bf16.msra.mxu0 %v5387_v55 }
0x14f4   :  { %4333 = vmatprep.subr.bf16.mxu0 %v4978_v52 }
0x14f6   :  { %4332 = vmatpush3.bf16.msra.mxu1 %v5405_v62 }
0x14f7   :  { %4339 = vmatprep.subr.bf16.mxu1 %v4978_v52 }
0x15bc   :  { %v2377_v48 = vpop.f32.mrb[20].mxu1 }
0x15bd   :  { %v4039_v49 = vpop.f32.mrb[21].mxu1 }
0x15c1   :  { %v2455_v50 = vpop.f32.mrb[22].mxu0 }
0x15c2   :  { %v2456_v54 = vadd.f32 %v2455_v50, %v2377_v48  ;;  %v4050_v56 = vpop.f32.mrb[23].mxu0 }
0x15c4   :  { %v2550_v61 = vpop.f32.mrb[22].mxu1  ;;  %v2459_v25 = vadd.f32 %v5443_v20, %v2456_v54 }
0x15c5   :  { %v2555_v1 = vrot.slane %v2550_v61, 6  ;;  %v2556_v10 = vrot.slane %v2550_v61, 7  ;;  %v4061_v2 = vpop.f32.mrb[23].mxu1 }
0x15c6   :  { %4641 = vtanh.f32 %v2459_v25  ;;  %v3621_v5 = vmul.f32 -1.442695, %v2459_v25 }
0x15c7   :  { %v2559_v3 = vadd.f32 %v2555_v1, %v5591_v57  ;;  %v2560_v6 = vadd.f32 %v2556_v10, %v5595_v60 }
0x15c9   :  { %4643 = vtanh.f32 %v2559_v3  ;;  %v3623_v8 = vmul.f32 -1.442695, %v2559_v3  ;;  %v3624_v11 = vmul.f32 -1.442695, %v2560_v6 }
0x15ca   :  { %4645 = vtanh.f32 %v2560_v6 }
0x15cb   :  { %4647 = vpow2.f32 %v3621_v5 }
0x15cc   :  { %4649 = vpow2.f32 %v3623_v8 }
0x15cd   :  { %4651 = vpow2.f32 %v3624_v11 }
0x15d0   :  { %v4642_v12 = vpop.eup %4641 }
0x15d1   :  { %2469 = vrot.lane.b32.xlu0 %v4642_v12, %s4962_s17 }
0x15d3   :  { %v4644_v16 = vpop.eup %4643 }
0x15d4   :  { %2585 = vrot.lane.b32.xlu1 %v4644_v16, %s4962_s17  ;;  %v4646_v4 = vpop.eup %4645 }
0x15d5   :  { %2587 = vrot.lane.b32.xlu0 %v4646_v4, %s4962_s17  ;;  %v4648_v0 = vpop.eup %4647 }
0x15d6   :  { %v4650_v42 = vpop.eup %4649  ;;  %v2463_v14 = vadd.f32 1.0, %v4648_v0 }
0x15d7   :  { %v2567_v15 = vadd.f32 1.0, %v4650_v42  ;;  %v4652_v47 = vpop.eup %4651 }
0x15d8   :  { %4653 = vrcp.f32 %v2463_v14  ;;  %v2568_v18 = vadd.f32 1.0, %v4652_v47 }
0x15d9   :  { %4655 = vrcp.f32 %v2567_v15 }
0x15da   :  { %4657 = vrcp.f32 %v2568_v18 }
0x15e2   :  { %v4654_v19 = vpop.eup %4653 }
0x15e3   :  { %v4656_v23 = vpop.eup %4655  ;;  %v2467_v32 = vmul.f32 %v4654_v19, %v5609_v17 }
0x15e4   :  { %v4658_v27 = vpop.eup %4657  ;;  %v2581_v33 = vmul.f32 %v4656_v23, %v2577_v21 }
0x15e5   :  { %v2582_v37 = vmul.f32 %v4658_v27, %v2578_v31 }
0x1643   :  { %v2470_v22 = vpop.permute.xlu0 %2469 }
0x1644   :  { %v2472_v7 = vmul.f32 %v4654_v19, %v2470_v22 }
0x1646   :  { %v2586_v9 = vpop.permute.xlu1 %2585  ;;  %2474 = vrot.lane.b32.xlu1 %v2472_v7, %s4959_s14 }
0x1647   :  { %v2591_v26 = vmul.f32 %v4656_v23, %v2586_v9  ;;  %v2588_v29 = vpop.permute.xlu0 %2587 }
0x1648   :  { %v2592_v30 = vmul.f32 %v4658_v27, %v2588_v29 }
0x1649   :  { %2595 = vrot.lane.b32.xlu0 %v2591_v26, %s4959_s14 }
0x164a   :  { %2597 = vrot.lane.b32.xlu1 %v2592_v30, %s4959_s14 }
0x16b8   :  { %v2475_v24 = vpop.permute.xlu1 %2474 }
0x16b9   :  { %v5656_v13 = vadd.f32 %v2475_v24, %v2467_v32 }
0x16bb   :  { %v2596_v28 = vpop.permute.xlu0 %2595  ;;  %4659 = vtanh.f32 %v5656_v13 }
0x16bc   :  { %v5659_v36 = vadd.f32 %v2596_v28, %v2581_v33  ;;  %v2598_v38 = vpop.permute.xlu1 %2597 }
0x16bd   :  { %v5663_v39 = vadd.f32 %v2598_v38, %v2582_v37 }
0x16be   :  { %4661 = vtanh.f32 %v5659_v36  ;;  %v2887_v28 = vrot.slane %v5659_v36, 6 }
0x16bf   :  { %4663 = vtanh.f32 %v5663_v39 }
0x16c5   :  { %v4660_v17 = vpop.eup %4659 }
0x16c6   :  { %2480 = vrot.lane.b32.xlu0 %v4660_v17, %s4962_s17 }
0x16c8   :  { %v4662_v35 = vpop.eup %4661 }
0x16c9   :  { %2607 = vrot.lane.b32.xlu1 %v4662_v35, %s4962_s17  ;;  %v4664_v40 = vpop.eup %4663 }
0x16ca   :  { %2609 = vrot.lane.b32.xlu0 %v4664_v40, %s4962_s17  ;;  %v2888_v40 = vrot.slane %v5663_v39, 6 }
0x1738   :  { %v2481_v34 = vpop.permute.xlu0 %2480 }
0x1739   :  { %v2483_v41 = vmul.f32 %v4654_v19, %v2481_v34 }
0x173b   :  { %v2608_v43 = vpop.permute.xlu1 %2607  ;;  %2616 = vrot.lane.b32.xlu1 %v2483_v41, %s4959_s14 }
0x173c   :  { %v2613_v44 = vmul.f32 %v4656_v23, %v2608_v43  ;;  %v2610_v45 = vpop.permute.xlu0 %2609 }
0x173d   :  { %v2614_v46 = vmul.f32 %v4658_v27, %v2610_v45 }
0x173e   :  { %v2692_v48 = vrot.slane %v2613_v44, 2 }
0x173f   :  { %v2693_v49 = vrot.slane %v2614_v46, 1 }
0x1741   :  { %v2694_v50 = vsel %vm1134_vm9, %v2693_v49, %v2692_v48 }
0x1742   :  { %2695 = vrot.lane.b32.xlu0 %v2694_v50, %s4959_s14 }
0x17ad   :  { %v2617_v54 = vpop.permute.xlu1 %2616 }
0x17ae   :  { %4071 = vmatmul.mubr.msk.f32.vlgmr.msra.gmra.mrb[24].mxu0 %vm914_vm8, %v2617_v54 }
0x17af   :  { %4335 = vmatpush3.bf16.msra.mxu0 %v5319_v58  ;;  %4092 = vmatprep.mubr.msk.f32.mxu0 %vm4979_vm7, %v4977_v51 }
0x17b0   :  { %4336 = vmatprep.subr.bf16.mxu0 %v4978_v52 }
0x17b3   :  { %4338 = vmatpush3.bf16.msra.mxu0 %v5331_v63 }
0x17b4   :  { %4345 = vmatprep.subr.bf16.mxu0 %v4978_v52  ;;  %v2696_v56 = vpop.permute.xlu0 %2695 }
0x17b5   :  { %4082 = vmatmul.mubr.msk.f32.vlgmr.msra.gmra.mrb[24].mxu1 %vm914_vm8, %v2696_v56 }
0x17b6   :  { %4093 = vmatmul.mubr.msk.f32.vlgmr.msra.gmra.mrb[26].mxu0 %vm914_vm8, %v2696_v56  ;;  %4341 = vmatpush3.bf16.msra.mxu1 %v5381_v53 }
0x17b7   :  { %4103 = vmatprep.mubr.msk.f32.mxu1 %vm4979_vm7, %v4977_v51  ;;  %4342 = vmatprep.subr.bf16.mxu1 %v4978_v52 }
0x17b8   :  { %4347 = vmatpush3.bf16.msra.mxu0 %v5396_v59  ;;  %4114 = vmatprep.mubr.msk.f32.mxu0 %vm4979_vm7, %v4977_v51 }
0x17b9   :  { %4348 = vmatprep.subr.bf16.mxu0 %v4978_v52 }
0x17ba   :  { %4344 = vmatpush3.bf16.msra.mxu1 %v5387_v55 }
0x17bb   :  { %4351 = vmatprep.subr.bf16.mxu1 %v4978_v52 }
0x17bc   :  { %4350 = vmatpush3.bf16.msra.mxu0 %v5405_v62 }
0x17bd   :  { %4357 = vmatprep.subr.bf16.mxu0 %v4978_v52 }
0x1881   :  { %v2686_v61 = vpop.f32.mrb[24].mxu0 }
0x1882   :  { %v4072_v1 = vpop.f32.mrb[25].mxu0 }
0x1888   :  { %v2765_v10 = vpop.f32.mrb[24].mxu1 }
0x1889   :  { %v2860_v2 = vpop.f32.mrb[26].mxu0  ;;  %v2766_v25 = vadd.f32 %v2765_v10, %v2686_v61  ;;  %v4083_v6 = vpop.f32.mrb[25].mxu1 }
0x188a   :  { %v2865_v3 = vrot.slane %v2860_v2, 4  ;;  %v4094_v12 = vpop.f32.mrb[27].mxu0  ;;  %v2866_v16 = vrot.slane %v2860_v2, 5 }
0x188b   :  { %v2769_v4 = vadd.f32 %v5443_v20, %v2766_v25 }
0x188c   :  { %v2869_v5 = vadd.f32 %v2865_v3, %v5591_v57  ;;  %v2870_v8 = vadd.f32 %v2866_v16, %v5595_v60 }
0x188d   :  { %4665 = vtanh.f32 %v2769_v4  ;;  %v3627_v14 = vmul.f32 -1.442695, %v2769_v4 }
0x188e   :  { %4667 = vtanh.f32 %v2869_v5  ;;  %v3629_v15 = vmul.f32 -1.442695, %v2869_v5  ;;  %v3630_v20 = vmul.f32 -1.442695, %v2870_v8  ;;  %v5741_v5 = vld [vmem:[#allocation8] ss:$0 sm:$0xff] }
0x188f   :  { %4669 = vtanh.f32 %v2870_v8 }
0x1890   :  { %4671 = vpow2.f32 %v3627_v14 }
0x1891   :  { %4673 = vpow2.f32 %v3629_v15 }
0x1892   :  { %4675 = vpow2.f32 %v3630_v20 }
0x1897   :  { %v4666_v11 = vpop.eup %4665 }
0x1898   :  { %v4668_v0 = vpop.eup %4667  ;;  %2779 = vrot.lane.b32.xlu1 %v4666_v11, %s4962_s17 }
0x1899   :  { %2895 = vrot.lane.b32.xlu0 %v4668_v0, %s4962_s17  ;;  %v4670_v42 = vpop.eup %4669 }
0x189a   :  { %v4672_v47 = vpop.eup %4671 }
0x189b   :  { %v4674_v18 = vpop.eup %4673  ;;  %v2773_v19 = vadd.f32 1.0, %v4672_v47 }
0x189c   :  { %2897 = vrot.lane.b32.xlu1 %v4670_v42, %s4962_s17  ;;  %v2877_v22 = vadd.f32 1.0, %v4674_v18  ;;  %v4676_v23 = vpop.eup %4675 }
0x189d   :  { %4677 = vrcp.f32 %v2773_v19  ;;  %v2878_v7 = vadd.f32 1.0, %v4676_v23 }
0x189e   :  { %4679 = vrcp.f32 %v2877_v22 }
0x189f   :  { %4681 = vrcp.f32 %v2878_v7 }
0x18a7   :  { %v4678_v9 = vpop.eup %4677 }
0x18a8   :  { %v4680_v27 = vpop.eup %4679  ;;  %v2777_v31 = vmul.f32 %v4678_v9, %v5656_v13 }
0x18a9   :  { %v4682_v32 = vpop.eup %4681  ;;  %v2891_v38 = vmul.f32 %v4680_v27, %v2887_v28 }
0x18aa   :  { %v2892_v41 = vmul.f32 %v4682_v32, %v2888_v40 }
0x190a   :  { %v2780_v26 = vpop.permute.xlu1 %2779 }
0x190b   :  { %v2782_v29 = vmul.f32 %v4678_v9, %v2780_v26  ;;  %v2896_v30 = vpop.permute.xlu0 %2895 }
0x190c   :  { %v2901_v21 = vmul.f32 %v4680_v27, %v2896_v30 }
0x190d   :  { %2784 = vrot.lane.b32.xlu0 %v2782_v29, %s4959_s14 }
0x190e   :  { %2905 = vrot.lane.b32.xlu1 %v2901_v21, %s4959_s14  ;;  %v2898_v24 = vpop.permute.xlu1 %2897 }
0x190f   :  { %v2902_v33 = vmul.f32 %v4682_v32, %v2898_v24 }
0x1911   :  { %2907 = vrot.lane.b32.xlu0 %v2902_v33, %s4959_s14 }
0x197f   :  { %v2785_v37 = vpop.permute.xlu0 %2784 }
0x1980   :  { %v5704_v17 = vadd.f32 %v2785_v37, %v2777_v31  ;;  %v2906_v35 = vpop.permute.xlu1 %2905 }
0x1981   :  { %v5707_v34 = vadd.f32 %v2906_v35, %v2891_v38 }
0x1982   :  { %4683 = vtanh.f32 %v5704_v17 }
0x1983   :  { %4685 = vtanh.f32 %v5707_v34  ;;  %v2908_v43 = vpop.permute.xlu0 %2907 }
0x1984   :  { %v5711_v44 = vadd.f32 %v2908_v43, %v2892_v41 }
0x1986   :  { %4687 = vtanh.f32 %v5711_v44  ;;  %v3198_v28 = vrot.slane %v5711_v44, 6 }
0x198c   :  { %v4684_v13 = vpop.eup %4683 }
0x198d   :  { %v4686_v36 = vpop.eup %4685  ;;  %2790 = vrot.lane.b32.xlu1 %v4684_v13, %s4962_s17 }
0x198e   :  { %2917 = vrot.lane.b32.xlu0 %v4686_v36, %s4962_s17 }
0x1990   :  { %v4688_v45 = vpop.eup %4687 }
0x1991   :  { %2919 = vrot.lane.b32.xlu1 %v4688_v45, %s4962_s17 }
0x19ff   :  { %v2791_v39 = vpop.permute.xlu1 %2790 }
0x1a00   :  { %v2793_v46 = vmul.f32 %v4678_v9, %v2791_v39  ;;  %v2918_v48 = vpop.permute.xlu0 %2917 }
0x1a01   :  { %v2923_v49 = vmul.f32 %v4680_v27, %v2918_v48 }
0x1a02   :  { %2926 = vrot.lane.b32.xlu0 %v2793_v46, %s4959_s14 }
0x1a03   :  { %v2920_v50 = vpop.permute.xlu1 %2919  ;;  %v3002_v56 = vrot.slane %v2923_v49, 4 }
0x1a04   :  { %v2924_v54 = vmul.f32 %v4682_v32, %v2920_v50  ;;  %v3197_v32 = vrot.slane %v5707_v34, 6 }
0x1a06   :  { %v3003_v61 = vrot.slane %v2924_v54, 3 }
0x1a08   :  { %v3004_v1 = vsel %vm1134_vm9, %v3003_v61, %v3002_v56 }
0x1a09   :  { %3005 = vrot.lane.b32.xlu1 %v3004_v1, %s4959_s14 }
0x1a74   :  { %v2927_v10 = vpop.permute.xlu0 %2926 }
0x1a75   :  { %4104 = vmatmul.mubr.msk.f32.vlgmr.msra.gmra.mrb[26].mxu1 %vm914_vm8, %v2927_v10 }
0x1a76   :  { %4353 = vmatpush3.bf16.msra.mxu1 %v5319_v58  ;;  %4125 = vmatprep.mubr.msk.f32.mxu1 %vm4979_vm7, %v4977_v51 }
0x1a77   :  { %4354 = vmatprep.subr.bf16.mxu1 %v4978_v52 }
0x1a7a   :  { %4356 = vmatpush3.bf16.msra.mxu1 %v5331_v63 }
0x1a7b   :  { %4363 = vmatprep.subr.bf16.mxu1 %v4978_v52  ;;  %v3006_v2 = vpop.permute.xlu1 %3005 }
0x1a7c   :  { %4115 = vmatmul.mubr.msk.f32.vlgmr.msra.gmra.mrb[28].mxu0 %vm914_vm8, %v3006_v2 }
0x1a7d   :  { %4126 = vmatmul.mubr.msk.f32.vlgmr.msra.gmra.mrb[28].mxu1 %vm914_vm8, %v3006_v2  ;;  %4359 = vmatpush3.bf16.msra.mxu0 %v5381_v53 }
0x1a7e   :  { %4365 = vmatpush3.bf16.msra.mxu1 %v5396_v59  ;;  %4360 = vmatprep.subr.bf16.mxu0 %v4978_v52 }
0x1a7f   :  { %4366 = vmatprep.subr.bf16.mxu1 %v4978_v52  ;;  %4147 = vmatprep.mubr.msk.f32.mxu1 %vm4979_vm7, %v4977_v51 }
0x1a80   :  { %4136 = vmatprep.mubr.msk.f32.mxu0 %vm4979_vm7, %v4977_v51 }
0x1a81   :  { %4362 = vmatpush3.bf16.msra.mxu0 %v5387_v55 }
0x1a82   :  { %4368 = vmatpush3.bf16.msra.mxu1 %v5405_v62  ;;  %4369 = vmatprep.subr.bf16.mxu0 %v4978_v52 }
0x1b48   :  { %v2996_v58 = vpop.f32.mrb[26].mxu1 }
0x1b49   :  { %v4105_v63 = vpop.f32.mrb[27].mxu1 }
0x1b4f   :  { %v3075_v59 = vpop.f32.mrb[28].mxu0 }
0x1b50   :  { %v3170_v53 = vpop.f32.mrb[28].mxu1  ;;  %v3076_v25 = vadd.f32 %v3075_v59, %v2996_v58  ;;  %v4116_v6 = vpop.f32.mrb[29].mxu0 }
0x1b51   :  { %v3175_v3 = vrot.slane %v3170_v53, 2  ;;  %v4127_v12 = vpop.f32.mrb[29].mxu1  ;;  %v3176_v16 = vrot.slane %v3170_v53, 3 }
0x1b52   :  { %v3079_v8 = vadd.f32 %v5741_v5, %v3076_v25 }
0x1b53   :  { %v3179_v4 = vadd.f32 %v3175_v3, %v5591_v57  ;;  %v3180_v62 = vadd.f32 %v3176_v16, %v5595_v60 }
0x1b54   :  { %v3633_v57 = vmul.f32 -1.442695, %v3079_v8 }
0x1b55   :  { %4689 = vtanh.f32 %v3179_v4  ;;  %v3635_v42 = vmul.f32 -1.442695, %v3179_v4  ;;  %v3636_v14 = vmul.f32 -1.442695, %v3180_v62 }
0x1b56   :  { %4691 = vtanh.f32 %v3079_v8 }
0x1b57   :  { %4693 = vtanh.f32 %v3180_v62 }
0x1b58   :  { %4695 = vpow2.f32 %v3635_v42 }
0x1b59   :  { %4697 = vpow2.f32 %v3633_v57  ;;  %v3415_v57 = vld [vmem:[%s5846_s15 + $0x8] sm:$0xff] }
0x1b5a   :  { %4699 = vpow2.f32 %v3636_v14  ;;  %v3416_v14 = vld [vmem:[%s5846_s15 + $0x10] sm:$0xff] }
0x1b5f   :  { %v4690_v55 = vpop.eup %4689 }
0x1b60   :  { %3205 = vrot.lane.b32.xlu0 %v4690_v55, %s4962_s17  ;;  %v4692_v11 = vpop.eup %4691 }
0x1b61   :  { %v4694_v0 = vpop.eup %4693 }
0x1b62   :  { %3207 = vrot.lane.b32.xlu1 %v4694_v0, %s4962_s17  ;;  %v4696_v15 = vpop.eup %4695 }
0x1b63   :  { %v4698_v60 = vpop.eup %4697  ;;  %v3187_v20 = vadd.f32 1.0, %v4696_v15 }
0x1b64   :  { %3089 = vrot.lane.b32.xlu0 %v4692_v11, %s4962_s17  ;;  %v4700_v47 = vpop.eup %4699  ;;  %v3083_v18 = vadd.f32 1.0, %v4698_v60  ;;  %v3417_v60 = vld [vmem:[%s5846_s15 + $0x18] sm:$0xff] }
0x1b65   :  { %v3188_v19 = vadd.f32 1.0, %v4700_v47  ;;  %4701 = vrcp.f32 %v3187_v20  ;;  %v4373_v20 = vpack.c.bf16 %v3417_v60, %v3416_v14 }
0x1b66   :  { %4703 = vrcp.f32 %v3083_v18 }
0x1b67   :  { %4705 = vrcp.f32 %v3188_v19 }
0x1b6f   :  { %v4702_v22 = vpop.eup %4701 }
0x1b70   :  { %v4704_v9 = vpop.eup %4703  ;;  %v3201_v24 = vmul.f32 %v4702_v22, %v3197_v32 }
0x1b71   :  { %v4706_v26 = vpop.eup %4705  ;;  %v3087_v38 = vmul.f32 %v4704_v9, %v5704_v17 }
0x1b72   :  { %v3202_v37 = vmul.f32 %v4706_v26, %v3198_v28 }
0x1bd2   :  { %v3206_v23 = vpop.permute.xlu0 %3205 }
0x1bd3   :  { %v3211_v7 = vmul.f32 %v4702_v22, %v3206_v23 }
0x1bd4   :  { %v3208_v27 = vpop.permute.xlu1 %3207 }
0x1bd5   :  { %3215 = vrot.lane.b32.xlu1 %v3211_v7, %s4959_s14  ;;  %v3212_v30 = vmul.f32 %v4706_v26, %v3208_v27 }
0x1bd6   :  { %v3090_v29 = vpop.permute.xlu0 %3089 }
0x1bd7   :  { %v3092_v21 = vmul.f32 %v4704_v9, %v3090_v29  ;;  %3217 = vrot.lane.b32.xlu0 %v3212_v30, %s4959_s14 }
0x1bd9   :  { %3094 = vrot.lane.b32.xlu1 %v3092_v21, %s4959_s14 }
0x1c47   :  { %v3216_v33 = vpop.permute.xlu1 %3215 }
0x1c48   :  { %v3221_v31 = vadd.f32 %v3216_v33, %v3201_v24 }
0x1c49   :  { %v3218_v35 = vpop.permute.xlu0 %3217 }
0x1c4a   :  { %4707 = vtanh.f32 %v3221_v31  ;;  %v3222_v41 = vadd.f32 %v3218_v35, %v3202_v37 }
0x1c4b   :  { %v3095_v40 = vpop.permute.xlu1 %3094 }
0x1c4c   :  { %v3097_v43 = vadd.f32 %v3095_v40, %v3087_v38  ;;  %4709 = vtanh.f32 %v3222_v41  ;;  %v3516_v13 = vrot.slane %v3222_v41, 7 }
0x1c4e   :  { %4711 = vtanh.f32 %v3097_v43  ;;  %v5755_v36 = vsel %vm3503_vm10, %v3516_v13, %v3221_v31 }
0x1c54   :  { %v4708_v34 = vpop.eup %4707 }
0x1c55   :  { %3227 = vrot.lane.b32.xlu0 %v4708_v34, %s4962_s17 }
0x1c56   :  { %v4710_v44 = vpop.eup %4709 }
0x1c57   :  { %3229 = vrot.lane.b32.xlu1 %v4710_v44, %s4962_s17 }
0x1c58   :  { %v4712_v45 = vpop.eup %4711 }
0x1c59   :  { %3100 = vrot.lane.b32.xlu0 %v4712_v45, %s4962_s17 }
0x1cc7   :  { %v3228_v17 = vpop.permute.xlu0 %3227 }
0x1cc8   :  { %v3233_v39 = vmul.f32 %v4702_v22, %v3228_v17 }
0x1cc9   :  { %v3230_v46 = vpop.permute.xlu1 %3229 }
0x1cca   :  { %v3312_v48 = vrot.slane %v3233_v39, 6  ;;  %v3234_v49 = vmul.f32 %v4706_v26, %v3230_v46 }
0x1ccb   :  { %v3101_v50 = vpop.permute.xlu0 %3100 }
0x1ccc   :  { %v3103_v54 = vmul.f32 %v4704_v9, %v3101_v50  ;;  %v3313_v56 = vrot.slane %v3234_v49, 5  ;;  %v3502_v61 = vrot.slane %v3234_v49, 7 }
0x1cce   :  { %3236 = vrot.lane.b32.xlu1 %v3103_v54, %s4959_s14  ;;  %v3314_v1 = vsel %vm1134_vm9, %v3313_v56, %v3312_v48  ;;  %v3504_v10 = vsel %vm3503_vm10, %v3502_v61, %v3233_v39 }
0x1ccf   :  { %3315 = vrot.lane.b32.xlu0 %v3314_v1, %s4959_s14 }
0x1d40   :  { %v3237_v2 = vpop.permute.xlu1 %3236 }
0x1d41   :  { %4137 = vmatmul.mubr.msk.f32.vlgmr.msra.gmra.mrb[30].mxu0 %vm914_vm8, %v3237_v2  ;;  %v3316_v58 = vpop.permute.xlu0 %3315 }
0x1d42   :  { %4158 = vmatprep.mubr.msk.f32.mxu0 %vm4979_vm7, %v4977_v51  ;;  %4148 = vmatmul.mubr.msk.f32.vlgmr.msra.gmra.mrb[30].mxu1 %vm914_vm8, %v3316_v58 }
0x1e14   :  { %v3306_v63 = vpop.f32.mrb[30].mxu0 }
0x1e15   :  { %v4138_v59 = vpop.f32.mrb[31].mxu0  ;;  %v3385_v53 = vpop.f32.mrb[30].mxu1 }
0x1e16   :  { %v3386_v25 = vadd.f32 %v3385_v53, %v3306_v63  ;;  %v4149_v3 = vpop.f32.mrb[31].mxu1 }
0x1e18   :  { %v3389_v6 = vadd.f32 %v5741_v5, %v3386_v25  ;;  %v3414_v5 = vld [vmem:[%s5846_s15] sm:$0xff]  ;;  %s4981_s15 = smov [#allocation15]  }
0x1e19   :  { %v4370_v15 = vpack.c.bf16 %v3415_v57, %v3414_v5 }
0x1e1a   :  { %4713 = vtanh.f32 %v3389_v6  ;;  %v3639_v16 = vmul.f32 -1.442695, %v3389_v6 }
0x1e1b   :  { %4371 = vmatpush3.bf16.msra.mxu0 %v4370_v15 }
0x1e1c   :  { %4715 = vpow2.f32 %v3639_v16  ;;  %4372 = vmatprep.subr.bf16.mxu0 %v4978_v52 }
0x1e1f   :  { %4374 = vmatpush3.bf16.msra.mxu0 %v4373_v20 }
0x1e24   :  { %v4714_v12 = vpop.eup %4713 }
0x1e25   :  { %3399 = vrot.lane.b32.xlu1 %v4714_v12, %s4962_s17 }
0x1e26   :  { %v4716_v4 = vpop.eup %4715 }
0x1e27   :  { %v3393_v8 = vadd.f32 1.0, %v4716_v4 }
0x1e29   :  { %4717 = vrcp.f32 %v3393_v8 }
0x1e33   :  { %v4718_v62 = vpop.eup %4717 }
0x1e34   :  { %v3397_v11 = vmul.f32 %v4718_v62, %v3097_v43 }
0x1e97   :  { %v3400_v51 = vpop.permute.xlu1 %3399 }
0x1e98   :  { %v3402_v55 = vmul.f32 %v4718_v62, %v3400_v51 }
0x1e9a   :  { %3404 = vrot.lane.b32.xlu0 %v3402_v55, %s4959_s14 }
0x1f0c   :  { %v3405_v0 = vpop.permute.xlu0 %3404 }
0x1f0d   :  { %v3407_v42 = vadd.f32 %v3405_v0, %v3397_v11 }
0x1f0f   :  { %4719 = vtanh.f32 %v3407_v42 }
0x1f19   :  { %v4720_v47 = vpop.eup %4719 }
0x1f1a   :  { %3410 = vrot.lane.b32.xlu1 %v4720_v47, %s4962_s17  ;;  %s3543_s17 = sshll.u32 %s4981_s15, 4  ;;  %s3544_s17 = int_to_ptr.vmem [resolvable:$true] %s3543_s17 }
0x1f1b   :  { %s4876_s24 = scalar_lea.vmem %s3544_s17, 64  ;;  %p4881_p1 = scmp.lt.s32.totalorder %s3544_s17, %s3544_s17 }
0x1f1c   :  { %p4877_p0 = scmp.ne.s32.totalorder %s3544_s17, %s4876_s24  ;;  %p4882_p2 = scmp.lt.s32.totalorder %s4876_s24, %s4876_s24 }
0x1f1e   :  { %3505 = vrot.lane.b32.xlu1 %v3504_v10, %s4959_s14  ;;  %p4883_p3 = por %p4882_p2, %p4881_p1 }
0x1f20   :  { %p4884_p4 = pnand %p4883_p3, %p4877_p0 }
0x1f22   :  { %3523 = vrot.lane.b32.xlu1 %v3407_v42, %s4980_s3 }
0x1f8c   :  { %v3411_v18 = vpop.permute.xlu1 %3410 }
0x1f8d   :  { %v3413_v19 = vmul.f32 %v4718_v62, %v3411_v18 }
0x1f8f   :  { %3426 = vrot.lane.b32.xlu0 %v3413_v19, %s4959_s14 }
0x1f90   :  { %v3506_v22 = vpop.permute.xlu1 %3505 }
0x1f91   :  { %3509 = vst.msk [vmem:[#allocation15 - $0x6] sm:$0xc0] %vm3508_vm11, %v3506_v22 }
0x1f93   :  { %3518 = vrot.lane.b32.xlu0 %v5755_v36, %s4980_s3 }
0x1f94   :  { %v3524_v23 = vpop.permute.xlu1 %3523 }
0x1f95   :  { %3527 = vst.msk [vmem:[#allocation17 + $0x2] sm:$0x3] %vm3512_vm12, %v3524_v23 }
0x2001   :  { %v3427_v52 = vpop.permute.xlu0 %3426 }
0x2002   :  { %3513 = vst.msk [vmem:[#allocation15 + $0x2] sm:$0x3] %vm3512_vm12, %v3427_v52  ;;  %4159 = vmatmul.mubr.msk.f32.vlgmr.msra.gmra.mrb[32].mxu0 %vm914_vm8, %v3427_v52 }
0x2005   :  { %v3519_v7 = vpop.permute.xlu0 %3518 }
0x2006   :  { %3521 = vst.msk [vmem:[#allocation17 - $0x6] sm:$0xc0] %vm3508_vm11, %v3519_v7 }
0x2007   :  { %4887 = shalt.err (!%p4884_p4)
}
0x2008   :  { %s4888_s30 = scalar_lea.hbm %s5851_s20, 64 }
0x2009   :  { %p4889_p5 = scmp.ne.s32.totalorder %s5851_s20, %s4888_s30  ;;  %p4892_p6 = scmp.lt.u32.totalorder %s4888_s30, %s5851_s20 }
0x200b   :  { %p4894_p7 = pnand %p4892_p6, %p4889_p5 }
0x200d   :  { %4897 = shalt.err (!%p4894_p7)
}
0x200e   :  { %3549 = dma.vmem_to_hbm [thread:$0]  %s3544_s17, 64, %s5851_s20, [#allocation16], %s4959_s14, %s4959_s14, %s4960_s26  }
0x200f   :  { %s4982_s8 = smov [#allocation17]  }
0x2010   :  { %s3555_s18 = sshll.u32 %s4982_s8, 4  ;;  %s3556_s18 = int_to_ptr.vmem [resolvable:$true] %s3555_s18 }
0x2011   :  { %s4898_s2 = scalar_lea.vmem %s3556_s18, 64  ;;  %p4903_p9 = scmp.lt.s32.totalorder %s3556_s18, %s3556_s18 }
0x2012   :  { %p4899_p8 = scmp.ne.s32.totalorder %s3556_s18, %s4898_s2  ;;  %p4904_p10 = scmp.lt.s32.totalorder %s4898_s2, %s4898_s2 }
0x2014   :  { %p4905_p11 = por %p4904_p10, %p4903_p9 }
0x2016   :  { %p4906_p12 = pnand %p4905_p11, %p4899_p8 }
0x2018   :  { %4909 = shalt.err (!%p4906_p12)
}
0x2019   :  { %s5875_s13 = sld [smem:[#allocation31_spill]] }
0x201f   :  { %s4910_s4 = scalar_lea.hbm %s5875_s13, 64 }
0x2020   :  { %p4911_p13 = scmp.ne.s32.totalorder %s5875_s13, %s4910_s4  ;;  %p4914_p0 = scmp.lt.u32.totalorder %s4910_s4, %s5875_s13 }
0x2022   :  { %p4916_p1 = pnand %p4914_p0, %p4911_p13 }
0x2024   :  { %4919 = shalt.err (!%p4916_p1)
}
0x2025   :  { %3561 = dma.vmem_to_hbm [thread:$0]  %s3556_s18, 64, %s5875_s13, [#allocation16], %s4959_s14, %s4959_s14, %s4960_s26   ;;  %v3640_v9 = vld [vmem:[#allocation10] ss:$0 sm:$0xff]  ;;  %vm3500_vm13 = vcmask 9216  }
0x2026   :  { %s4983_s9 = smov [#allocation14]  }
0x2027   :  { %s3534_s1 = sshll.u32 %s4983_s9, 4  ;;  %s3535_s1 = int_to_ptr.vmem [resolvable:$true] %s3534_s1 }
0x2028   :  { %s4920_s16 = scalar_lea.vmem %s3535_s1, 32  ;;  %p4925_p3 = scmp.lt.s32.totalorder %s3535_s1, %s3535_s1 }
0x2029   :  { %p4921_p2 = scmp.ne.s32.totalorder %s3535_s1, %s4920_s16  ;;  %p4926_p4 = scmp.lt.s32.totalorder %s4920_s16, %s4920_s16 }
0x202b   :  { %p4927_p5 = por %p4926_p4, %p4925_p3 }
0x202d   :  { %p4928_p6 = pnand %p4927_p5, %p4921_p2 }
0x20d5   :  { %v3496_v26 = vpop.f32.mrb[32].mxu0 }
0x20d6   :  { %v3497_v27 = vadd.f32 %v3640_v9, %v3496_v26  ;;  %v4160_v29 = vpop.f32.mrb[33].mxu0 }
0x20d8   :  { %3501 = vst.msk [vmem:[#allocation14] sm:$0x3] %vm3500_vm13, %v3497_v27 }
0x20d9   :  { %4931 = shalt.err (!%p4928_p6)
}
0x20da   :  { %s5876_s17 = sld [smem:[#allocation30_spill]] }
0x20e0   :  { %s4932_s14 = scalar_lea.hbm %s5876_s17, 32 }
0x20e1   :  { %p4933_p7 = scmp.ne.s32.totalorder %s5876_s17, %s4932_s14  ;;  %p4936_p8 = scmp.lt.u32.totalorder %s4932_s14, %s5876_s17 }
0x20e3   :  { %p4938_p9 = pnand %p4936_p8, %p4933_p7 }
0x20e5   :  { %4941 = shalt.err (!%p4938_p9)
}
0x20e6   :  { %3537 = dma.vmem_to_hbm [thread:$0]  %s3535_s1, 32, %s5876_s17, [#allocation4]  }
0x20e7   :  { %4950 = dma.done.wait [#allocation4], 32  }
0x20e8   :  { %4951 = vsyncadd [#allocation4], 4294967264 }
0x20e9   :  { %4952 = dma.done.wait [#allocation16], 128  }
0x20ea   :  { %4953 = vsyncadd [#allocation16], 4294967168 }
0x20eb   :  { %3571 = vsyncpa [#allocation3], 1 }
0x20ec   :  { %3572 = vsyncpa [#allocation6], 1 }
0x20ed   :  { %3573 = vsyncpa [#allocation9], 1 }
0x20ee   :  { %3574 = vsyncpa [#allocation12], 1 }
0x20ef   :  { %3575 = vsyncpa [#allocation4], 1 }
0x20f0   :  { %3576 = vsyncpa [#allocation16], 1 }

</bundles_post_ra>
